<compile_context>
chip_gen: v5e
topology: v5e:2x2
jax: 0.10.0
libtpu: 0.0.40
codegen_flags: <defaults>
</compile_context>

<pallas_src>
import functools

import jax
import jax.numpy as jnp
from jax import lax
from jax.experimental import pallas as pl
from jax.experimental.pallas import tpu as pltpu


# ----------------------------------------------------------------------------
# XLA-side layout / weight packing (single cheap passes, no im2col)
# ----------------------------------------------------------------------------
def _space_to_depth_pad(x, compute_dtype):
    """(B, Cin, H, W) NCHW -> (B, H/2+1, W/2+1, 4*Cin), depth order (dy, dx, ci).

    This is the only XLA layout pass over the input: pad by 1 and group 2x2
    pixel blocks into depth so the stride-2 conv becomes 4 shifted matmuls.
    """
    B, Ci, H, W = x.shape
    Hs, Ws = H // 2 + 1, W // 2 + 1
    xp = jnp.pad(x.astype(compute_dtype), ((0, 0), (0, 0), (1, 1), (1, 1)))
    xp = xp.reshape(B, Ci, Hs, 2, Ws, 2)          # (b, ci, i, dy, j, dx)
    xp = xp.transpose(0, 2, 4, 3, 5, 1)           # (b, i, j, dy, dx, ci)
    return xp.reshape(B, Hs, Ws, 4 * Ci)


def _pack_down_weight(w, compute_dtype):
    """Conv2d weight (Cout, Cin, 4, 4) -> (4, 4*Cin, Cout).

    Tap t = qy*2+qx over the space-to-depth grid; K ordered (dy, dx, ci) to
    match the space-to-depth depth layout.
    """
    Co, Ci = w.shape[0], w.shape[1]
    w6 = w.reshape(Co, Ci, 2, 2, 2, 2)            # (co, ci, qy, dy, qx, dx)
    w6 = w6.transpose(2, 4, 3, 5, 1, 0)           # (qy, qx, dy, dx, ci, co)
    return w6.reshape(4, 4 * Ci, Co).astype(compute_dtype)


def _pack_up_weight(w, compute_dtype):
    """ConvTranspose2d weight (Cin, Cout, 4, 4) -> (9, 4, Cin, Cout).

    4-phase decomposition of the stride-2 transpose conv: tap t = ty*3+tx over
    3x3 windows of the (pad-1) input, phase p = py*2+px selects the output
    sub-pixel.  Phase (py,px) / tap (ty,tx) uses W[:, :, 3+py-2ty, 3+px-2tx]
    when 0 <= ty-py <= 1 and 0 <= tx-px <= 1, else zero.
    """
    Ci, Co = w.shape[0], w.shape[1]
    zero = jnp.zeros((Ci, Co), w.dtype)
    taps = []
    for ty in range(3):
        for tx in range(3):
            phases = []
            for py in range(2):
                for px in range(2):
                    if 0 <= ty - py <= 1 and 0 <= tx - px <= 1:
                        phases.append(w[:, :, 3 + py - 2 * ty, 3 + px - 2 * tx])
                    else:
                        phases.append(zero)
            taps.append(jnp.stack(phases, axis=0))            # (4, Ci, Co)
    return jnp.stack(taps, axis=0).astype(compute_dtype)      # (9, 4, Ci, Co)


# ----------------------------------------------------------------------------
# Kernel 1: fused LeakyReLU(0.2) + Conv2d(k=4, s=2, p=1)  (one batch per step)
# ----------------------------------------------------------------------------
def _down_kernel(x_ref, w_ref, b_ref, o_ref, *, Ho, Wo):
    """x_ref: (1, Ho+1, Wo+1, 4*Cin) bf16 space-to-depth of padded x
       w_ref: (4, 4*Cin, Cout)       bf16, VMEM-resident (constant index_map)
       b_ref: (1, Cout)              f32
       o_ref: (1, Ho, Wo, Cout)      bf16 conv output h
    """
    cout = w_ref.shape[-1]
    x = x_ref[0]
    # LeakyReLU in the storage dtype (bf16 VPU on v6e/v7x; Mosaic upcasts on
    # v5e).  act(0) == 0, so the zero padding baked into the s2d layout is
    # unaffected by applying the activation after padding.
    x = jnp.where(x >= 0, x, jnp.asarray(0.2, x.dtype) * x)

    acc = jnp.zeros((Ho * Wo, cout), jnp.float32)
    for t in range(4):                                   # 2x2 taps on the s2d grid
        qy, qx = t // 2, t % 2
        win = x[qy:qy + Ho, qx:qx + Wo, :].reshape(Ho * Wo, -1)
        acc = acc + jnp.dot(win, w_ref[t], preferred_element_type=jnp.float32)

    h = acc + b_ref[...]
    o_ref[0] = h.reshape(Ho, Wo, cout).astype(o_ref.dtype)


def _down_conv(x_s2d, w_dn, b_dn, *, Ho, Wo):
    B, Hs, Ws, C4 = x_s2d.shape
    Co = w_dn.shape[-1]
    return pl.pallas_call(
        functools.partial(_down_kernel, Ho=Ho, Wo=Wo),
        out_shape=jax.ShapeDtypeStruct((B, Ho, Wo, Co), x_s2d.dtype),
        grid_spec=pltpu.PrefetchScalarGridSpec(
            num_scalar_prefetch=0,
            grid=(B,),
            in_specs=[
                pl.BlockSpec((1, Hs, Ws, C4), lambda b: (b, 0, 0, 0)),
                pl.BlockSpec((4, C4, Co), lambda b: (0, 0, 0)),      # resident
                pl.BlockSpec((1, Co), lambda b: (0, 0)),             # resident
            ],
            out_specs=pl.BlockSpec((1, Ho, Wo, Co), lambda b: (b, 0, 0, 0)),
        ),
        compiler_params=pltpu.CompilerParams(dimension_semantics=("parallel",)),
    )(x_s2d, w_dn, b_dn)


# ----------------------------------------------------------------------------
# Kernel 2: fused ReLU + ConvTranspose2d(k=4, s=2, p=1) + InstanceNorm2d
# ----------------------------------------------------------------------------
def _up_norm_kernel(h_ref, w_ref, o_ref, pad_ref, *, Hh, Wh, eps):
    """h_ref:   (1, Hh, Wh, Cin)     bf16
       w_ref:   (9, 4, Cin, Cout)    bf16, VMEM-resident (constant index_map)
       o_ref:   (1, 4, Hh, Wh, Cout) f32 normalized u, phase-major
       pad_ref: (Hh+2, Wh+2, Cin)    VMEM scratch: zero halo + ReLU(h)
    """
    cin = h_ref.shape[-1]
    cout = w_ref.shape[-1]
    R = Hh * Wh

    # Fused ReLU + zero halo in VMEM (relu(0) == 0, so padding commutes).
    pad_ref[...] = jnp.zeros_like(pad_ref)
    pad_ref[1:Hh + 1, 1:Wh + 1, :] = jnp.maximum(h_ref[0], 0)

    # Each output phase (py, px) of the stride-2 transpose conv is a plain
    # conv over 3x3 windows of the padded input: 9 taps x 4 phases of matmuls,
    # f32 accumulation, no structurally-zero lhs rows.
    accs = [jnp.zeros((R, cout), jnp.float32) for _ in range(4)]
    for t in range(9):
        ty, tx = t // 3, t % 3
        win = pad_ref[ty:ty + Hh, tx:tx + Wh, :].reshape(R, cin)
        for p in range(4):
            accs[p] = accs[p] + jnp.dot(win, w_ref[t, p],
                                        preferred_element_type=jnp.float32)

    # InstanceNorm2d: per-channel stats over all spatial positions = all rows
    # of all 4 phases (permutation invariant -> no de-interleave needed).
    # ConvTranspose bias omitted: a per-channel constant cancels exactly in
    # the mean subtraction (affine=False, track_running_stats=False default).
    n = jnp.float32(4 * R)
    s1 = jnp.sum(accs[0] + accs[1] + accs[2] + accs[3], axis=0, keepdims=True)
    s2 = jnp.sum(accs[0] * accs[0] + accs[1] * accs[1]
                 + accs[2] * accs[2] + accs[3] * accs[3], axis=0, keepdims=True)
    mean = s1 / n
    var = jnp.maximum(s2 / n - mean * mean, 0.0)
    inv = lax.rsqrt(var + eps)
    for p in range(4):
        o_ref[0, p] = ((accs[p] - mean) * inv).reshape(Hh, Wh, cout).astype(o_ref.dtype)


def _up_conv_norm(h, w_up, *, eps=1e-5):
    B, Hh, Wh, Ci = h.shape
    Co = w_up.shape[-1]
    return pl.pallas_call(
        functools.partial(_up_norm_kernel, Hh=Hh, Wh=Wh, eps=eps),
        out_shape=jax.ShapeDtypeStruct((B, 4, Hh, Wh, Co), jnp.float32),
        grid_spec=pltpu.PrefetchScalarGridSpec(
            num_scalar_prefetch=0,
            grid=(B,),
            in_specs=[
                pl.BlockSpec((1, Hh, Wh, Ci), lambda b: (b, 0, 0, 0)),
                pl.BlockSpec((9, 4, Ci, Co), lambda b: (0, 0, 0, 0)),  # resident
            ],
            out_specs=pl.BlockSpec((1, 4, Hh, Wh, Co), lambda b: (b, 0, 0, 0, 0)),
            scratch_shapes=[pltpu.VMEM((Hh + 2, Wh + 2, Ci), h.dtype)],
        ),
        compiler_params=pltpu.CompilerParams(dimension_semantics=("parallel",)),
    )(h, w_up)


# ----------------------------------------------------------------------------
# UnetBlock (innermost) forward
# ----------------------------------------------------------------------------
def unet_block_innermost(x, params, *, compute_dtype=jnp.bfloat16):
    """forward(x) = cat([x, InstanceNorm(ConvT(ReLU(Conv(LeakyReLU(x)))))], 1)."""
    B, Ci, H, W = x.shape
    assert H % 2 == 0 and W % 2 == 0, (H, W)
    inner = params["down_w"].shape[0]
    cout = params["up_w"].shape[1]
    assert params["up_w"].shape[0] == inner
    Ho, Wo = H // 2, W // 2

    x_s2d = _space_to_depth_pad(x, compute_dtype)                 # (B,Ho+1,Wo+1,4Ci)
    w_dn = _pack_down_weight(params["down_w"], compute_dtype)     # (4,4Ci,inner)
    b_dn = params["down_b"].reshape(1, inner).astype(jnp.float32)
    h = _down_conv(x_s2d, w_dn, b_dn, Ho=Ho, Wo=Wo)               # (B,Ho,Wo,inner) bf16

    w_up = _pack_up_weight(params["up_w"], compute_dtype)         # (9,4,inner,cout)
    u = _up_conv_norm(h, w_up)                                    # (B,4,Ho,Wo,cout) f32

    # Phase de-interleave + NHWC->NCHW + skip concat: one fused XLA copy.
    # TODO(synk): folding this store into the up kernel needs strided
    # lane/sublane scatters; not worthwhile vs XLA's transpose+concat fusion.
    u_nchw = (u.reshape(B, 2, 2, Ho, Wo, cout)
               .transpose(0, 5, 3, 1, 4, 2)
               .reshape(B, cout, H, W))
    return jnp.concatenate([x, u_nchw], axis=1)


# ----------------------------------------------------------------------------
# Pure-XLA reference (PyTorch semantics; operands rounded to the MXU dtype so
# the comparison with the bf16 Pallas path is apples-to-apples)
# ----------------------------------------------------------------------------
def _reference(x, params, compute_dtype=jnp.bfloat16):
    def rnd(a):
        return a.astype(compute_dtype).astype(jnp.float32)
    hp = lax.Precision.HIGHEST
    xa = rnd(x)
    # LeakyReLU negative branch evaluated in the MXU storage dtype to mirror
    # the in-kernel bf16 activation.
    neg = rnd(jnp.asarray(0.2, compute_dtype) * xa.astype(compute_dtype))
    a = jnp.where(xa >= 0, xa, neg)
    h = lax.conv_general_dilated(
        rnd(a), rnd(params["down_w"]), window_strides=(2, 2),
        padding=((1, 1), (1, 1)),
        dimension_numbers=("NCHW", "OIHW", "NCHW"), precision=hp,
    ) + params["down_b"][None, :, None, None]
    r = jnp.maximum(h, 0.0)
    w_t = params["up_w"].transpose(1, 0, 2, 3)[:, :, ::-1, ::-1]   # (Cout, Cin, 4, 4)
    u = lax.conv_general_dilated(
        rnd(r), rnd(w_t), window_strides=(1, 1), padding=((2, 2), (2, 2)),
        lhs_dilation=(2, 2),
        dimension_numbers=("NCHW", "OIHW", "NCHW"), precision=hp,
    ) + params["up_b"][None, :, None, None]
    mean = jnp.mean(u, axis=(2, 3), keepdims=True)
    var = jnp.mean((u - mean) ** 2, axis=(2, 3), keepdims=True)
    un = (u - mean) * lax.rsqrt(var + 1e-5)
    return jnp.concatenate([x, un], axis=1)


if __name__ == "__main__":
    key = jax.random.PRNGKey(0)
    k1, k2, k3, k4, k5 = jax.random.split(key, 5)

    B, in_dim, H, W = 2, 4, 16, 16          # x: (2, 4, 16, 16), NCHW
    out_dim, inner_dim = 4, 8               # UnetBlock(out_dim=4, inner_dim=8, innermost=True)

    x = jax.random.normal(k1, (B, in_dim, H, W), jnp.float32)
    params = {
        "down_w": 0.1 * jax.random.normal(k2, (inner_dim, in_dim, 4, 4), jnp.float32),
        "down_b": 0.1 * jax.random.normal(k3, (inner_dim,), jnp.float32),
        "up_w":   0.1 * jax.random.normal(k4, (inner_dim, out_dim, 4, 4), jnp.float32),
        "up_b":   0.1 * jax.random.normal(k5, (out_dim,), jnp.float32),
    }

    fwd = jax.jit(functools.partial(unet_block_innermost, compute_dtype=jnp.bfloat16))
    y = jax.block_until_ready(fwd(x, params))
    assert y.shape == (B, in_dim + out_dim, H, W), y.shape

    # Skip-connection half must be an exact passthrough of x.
    assert bool(jnp.array_equal(y[:, :in_dim], x))

    y_ref = jax.block_until_ready(_reference(x, params, jnp.bfloat16))
    max_err = float(jnp.max(jnp.abs(y - y_ref)))
    assert jnp.allclose(y, y_ref, atol=1e-2, rtol=1e-2), max_err

    print("KERNEL_OK")
</pallas_src>

<mosaic_0001>
module attributes {stable_mosaic.version = 11 : i64} {
  func.func @_down_kernel(%arg0: i32, %arg1: memref<1x9x9x16xbf16, #tpu.memory_space<vmem>>, %arg2: memref<4x16x8xbf16, #tpu.memory_space<vmem>>, %arg3: memref<1x8xf32, #tpu.memory_space<vmem>>, %arg4: memref<1x8x8x8xbf16, #tpu.memory_space<vmem>>) attributes {dimension_semantics = [#tpu.dimension_semantics<parallel>], iteration_bounds = array<i64: 2>, scalar_prefetch = 0 : i64, scratch_operands = 0 : i64, tpu.core_type = #tpu.core_type<tc>, window_params = [{transform_indices = @transform_0, window_bounds = array<i64: 1, 9, 9, 16>}, {pipeline_mode = #tpu.pipeline_mode<synchronous>, transform_indices = @transform_1, window_bounds = array<i64: 4, 16, 8>}, {pipeline_mode = #tpu.pipeline_mode<synchronous>, transform_indices = @transform_2, window_bounds = array<i64: 1, 8>}, {transform_indices = @transform_3, window_bounds = array<i64: 1, 8, 8, 8>}]} {
    %c0 = arith.constant 0 : index
    %c0_0 = arith.constant 0 : index
    %c0_1 = arith.constant 0 : index
    %c0_2 = arith.constant 0 : index
    %0 = vector.load %arg1[%c0, %c0_0, %c0_1, %c0_2] : memref<1x9x9x16xbf16, #tpu.memory_space<vmem>>, vector<1x9x9x16xbf16>
    %1 = vector.shape_cast %0 : vector<1x9x9x16xbf16> to vector<9x9x16xbf16>
    %cst = arith.constant 0.000000e+00 : bf16
    %2 = vector.broadcast %cst : bf16 to vector<9x9x16xbf16>
    %3 = arith.cmpf oge, %1, %2 : vector<9x9x16xbf16>
    %cst_3 = arith.constant 2.001950e-01 : bf16
    %4 = vector.broadcast %cst_3 : bf16 to vector<9x9x16xbf16>
    %5 = arith.mulf %4, %1 : vector<9x9x16xbf16>
    %6 = arith.select %3, %1, %5 : vector<9x9x16xi1>, vector<9x9x16xbf16>
    %cst_4 = arith.constant 0.000000e+00 : f32
    %7 = vector.broadcast %cst_4 : f32 to vector<64x8xf32>
    %8 = vector.extract_strided_slice %6 {offsets = [0, 0, 0], sizes = [8, 8, 16], strides = [1, 1, 1]} : vector<9x9x16xbf16> to vector<8x8x16xbf16>
    %9 = vector.shape_cast %8 : vector<8x8x16xbf16> to vector<64x16xbf16>
    %c0_5 = arith.constant 0 : index
    %c0_6 = arith.constant 0 : index
    %c0_7 = arith.constant 0 : index
    %10 = vector.load %arg2[%c0_5, %c0_6, %c0_7] : memref<4x16x8xbf16, #tpu.memory_space<vmem>>, vector<1x16x8xbf16>
    %11 = vector.shape_cast %10 : vector<1x16x8xbf16> to vector<16x8xbf16>
    %cst_8 = arith.constant dense<0.000000e+00> : vector<64x8xf32>
    %12 = tpu.matmul %9, %11, %cst_8 {dimension_numbers = #tpu.dot_dimension_numbers<[1], [0], [0], [1], [0, 0, 1, 1], [], []>} : vector<64x16xbf16>, vector<16x8xbf16>, vector<64x8xf32> -> vector<64x8xf32>
    %13 = arith.addf %7, %12 : vector<64x8xf32>
    %14 = vector.extract_strided_slice %6 {offsets = [0, 1, 0], sizes = [8, 8, 16], strides = [1, 1, 1]} : vector<9x9x16xbf16> to vector<8x8x16xbf16>
    %15 = vector.shape_cast %14 : vector<8x8x16xbf16> to vector<64x16xbf16>
    %c1 = arith.constant 1 : index
    %c0_9 = arith.constant 0 : index
    %c0_10 = arith.constant 0 : index
    %16 = vector.load %arg2[%c1, %c0_9, %c0_10] : memref<4x16x8xbf16, #tpu.memory_space<vmem>>, vector<1x16x8xbf16>
    %17 = vector.shape_cast %16 : vector<1x16x8xbf16> to vector<16x8xbf16>
    %cst_11 = arith.constant dense<0.000000e+00> : vector<64x8xf32>
    %18 = tpu.matmul %15, %17, %cst_11 {dimension_numbers = #tpu.dot_dimension_numbers<[1], [0], [0], [1], [0, 0, 1, 1], [], []>} : vector<64x16xbf16>, vector<16x8xbf16>, vector<64x8xf32> -> vector<64x8xf32>
    %19 = arith.addf %13, %18 : vector<64x8xf32>
    %20 = vector.extract_strided_slice %6 {offsets = [1, 0, 0], sizes = [8, 8, 16], strides = [1, 1, 1]} : vector<9x9x16xbf16> to vector<8x8x16xbf16>
    %21 = vector.shape_cast %20 : vector<8x8x16xbf16> to vector<64x16xbf16>
    %c2 = arith.constant 2 : index
    %c0_12 = arith.constant 0 : index
    %c0_13 = arith.constant 0 : index
    %22 = vector.load %arg2[%c2, %c0_12, %c0_13] : memref<4x16x8xbf16, #tpu.memory_space<vmem>>, vector<1x16x8xbf16>
    %23 = vector.shape_cast %22 : vector<1x16x8xbf16> to vector<16x8xbf16>
    %cst_14 = arith.constant dense<0.000000e+00> : vector<64x8xf32>
    %24 = tpu.matmul %21, %23, %cst_14 {dimension_numbers = #tpu.dot_dimension_numbers<[1], [0], [0], [1], [0, 0, 1, 1], [], []>} : vector<64x16xbf16>, vector<16x8xbf16>, vector<64x8xf32> -> vector<64x8xf32>
    %25 = arith.addf %19, %24 : vector<64x8xf32>
    %26 = vector.extract_strided_slice %6 {offsets = [1, 1, 0], sizes = [8, 8, 16], strides = [1, 1, 1]} : vector<9x9x16xbf16> to vector<8x8x16xbf16>
    %27 = vector.shape_cast %26 : vector<8x8x16xbf16> to vector<64x16xbf16>
    %c3 = arith.constant 3 : index
    %c0_15 = arith.constant 0 : index
    %c0_16 = arith.constant 0 : index
    %28 = vector.load %arg2[%c3, %c0_15, %c0_16] : memref<4x16x8xbf16, #tpu.memory_space<vmem>>, vector<1x16x8xbf16>
    %29 = vector.shape_cast %28 : vector<1x16x8xbf16> to vector<16x8xbf16>
    %cst_17 = arith.constant dense<0.000000e+00> : vector<64x8xf32>
    %30 = tpu.matmul %27, %29, %cst_17 {dimension_numbers = #tpu.dot_dimension_numbers<[1], [0], [0], [1], [0, 0, 1, 1], [], []>} : vector<64x16xbf16>, vector<16x8xbf16>, vector<64x8xf32> -> vector<64x8xf32>
    %31 = arith.addf %25, %30 : vector<64x8xf32>
    %c0_18 = arith.constant 0 : index
    %c0_19 = arith.constant 0 : index
    %32 = vector.load %arg3[%c0_18, %c0_19] : memref<1x8xf32, #tpu.memory_space<vmem>>, vector<1x8xf32>
    %33 = vector.broadcast %32 : vector<1x8xf32> to vector<64x8xf32>
    %34 = arith.addf %31, %33 : vector<64x8xf32>
    %35 = vector.shape_cast %34 : vector<64x8xf32> to vector<8x8x8xf32>
    %36 = arith.truncf %35 : vector<8x8x8xf32> to vector<8x8x8xbf16>
    %c0_20 = arith.constant 0 : index
    %c0_21 = arith.constant 0 : index
    %c0_22 = arith.constant 0 : index
    %c0_23 = arith.constant 0 : index
    %37 = vector.load %arg4[%c0_20, %c0_21, %c0_22, %c0_23] : memref<1x8x8x8xbf16, #tpu.memory_space<vmem>>, vector<1x8x8x8xbf16>
    %38 = vector.shape_cast %37 : vector<1x8x8x8xbf16> to vector<8x8x8xbf16>
    %39 = vector.shape_cast %36 : vector<8x8x8xbf16> to vector<1x8x8x8xbf16>
    tpu.vector_store %arg4[%c0_20, %c0_21, %c0_22, %c0_23], %39 {strides = array<i32>} : memref<1x8x8x8xbf16, #tpu.memory_space<vmem>>, vector<1x8x8x8xbf16>,
    return
  }
  func.func @transform_0(%arg0: i32) -> (i32, i32, i32, i32) {
    %c0_i32 = arith.constant 0 : i32
    %c0_i32_0 = arith.constant 0 : i32
    %c0_i32_1 = arith.constant 0 : i32
    %c0_i32_2 = arith.constant 0 : i32
    return %arg0, %c0_i32, %c0_i32_0, %c0_i32_1 : i32, i32, i32, i32
  }
  func.func @transform_1(%arg0: i32) -> (i32, i32, i32) {
    %c0_i32 = arith.constant 0 : i32
    %c0_i32_0 = arith.constant 0 : i32
    %c0_i32_1 = arith.constant 0 : i32
    %c0_i32_2 = arith.constant 0 : i32
    return %c0_i32, %c0_i32_0, %c0_i32_1 : i32, i32, i32
  }
  func.func @transform_2(%arg0: i32) -> (i32, i32) {
    %c0_i32 = arith.constant 0 : i32
    %c0_i32_0 = arith.constant 0 : i32
    %c0_i32_1 = arith.constant 0 : i32
    return %c0_i32, %c0_i32_0 : i32, i32
  }
  func.func @transform_3(%arg0: i32) -> (i32, i32, i32, i32) {
    %c0_i32 = arith.constant 0 : i32
    %c0_i32_0 = arith.constant 0 : i32
    %c0_i32_1 = arith.constant 0 : i32
    %c0_i32_2 = arith.constant 0 : i32
    return %arg0, %c0_i32, %c0_i32_0, %c0_i32_1 : i32, i32, i32, i32
  }
}

module attributes {stable_mosaic.version = 11 : i64} {
  func.func @_up_norm_kernel(%arg0: i32, %arg1: memref<1x8x8x8xbf16, #tpu.memory_space<vmem>>, %arg2: memref<9x4x8x4xbf16, #tpu.memory_space<vmem>>, %arg3: memref<1x4x8x8x4xf32, #tpu.memory_space<vmem>>, %arg4: memref<10x10x8xbf16, #tpu.memory_space<vmem>>) attributes {dimension_semantics = [#tpu.dimension_semantics<parallel>], iteration_bounds = array<i64: 2>, scalar_prefetch = 0 : i64, scratch_operands = 1 : i64, tpu.core_type = #tpu.core_type<tc>, window_params = [{transform_indices = @transform_0, window_bounds = array<i64: 1, 8, 8, 8>}, {pipeline_mode = #tpu.pipeline_mode<synchronous>, transform_indices = @transform_1, window_bounds = array<i64: 9, 4, 8, 4>}, {transform_indices = @transform_2, window_bounds = array<i64: 1, 4, 8, 8, 4>}]} {
    %cst = arith.constant 0.000000e+00 : bf16
    %0 = vector.broadcast %cst : bf16 to vector<10x10x8xbf16>
    %c0 = arith.constant 0 : index
    %c0_0 = arith.constant 0 : index
    %c0_1 = arith.constant 0 : index
    %1 = vector.load %arg4[%c0, %c0_0, %c0_1] : memref<10x10x8xbf16, #tpu.memory_space<vmem>>, vector<10x10x8xbf16>
    tpu.vector_store %arg4[%c0, %c0_0, %c0_1], %0 {strides = array<i32>} : memref<10x10x8xbf16, #tpu.memory_space<vmem>>, vector<10x10x8xbf16>,
    %c0_2 = arith.constant 0 : index
    %c0_3 = arith.constant 0 : index
    %c0_4 = arith.constant 0 : index
    %c0_5 = arith.constant 0 : index
    %2 = vector.load %arg1[%c0_2, %c0_3, %c0_4, %c0_5] : memref<1x8x8x8xbf16, #tpu.memory_space<vmem>>, vector<1x8x8x8xbf16>
    %3 = vector.shape_cast %2 : vector<1x8x8x8xbf16> to vector<8x8x8xbf16>
    %cst_6 = arith.constant 0.000000e+00 : bf16
    %4 = vector.broadcast %cst_6 : bf16 to vector<8x8x8xbf16>
    %5 = arith.maximumf %3, %4 : vector<8x8x8xbf16>
    %c1 = arith.constant 1 : index
    %c1_7 = arith.constant 1 : index
    %c0_8 = arith.constant 0 : index
    %6 = vector.load %arg4[%c1, %c1_7, %c0_8] : memref<10x10x8xbf16, #tpu.memory_space<vmem>>, vector<8x8x8xbf16>
    tpu.vector_store %arg4[%c1, %c1_7, %c0_8], %5 {strides = array<i32>} : memref<10x10x8xbf16, #tpu.memory_space<vmem>>, vector<8x8x8xbf16>,
    %cst_9 = arith.constant 0.000000e+00 : f32
    %7 = vector.broadcast %cst_9 : f32 to vector<64x4xf32>
    %cst_10 = arith.constant 0.000000e+00 : f32
    %8 = vector.broadcast %cst_10 : f32 to vector<64x4xf32>
    %cst_11 = arith.constant 0.000000e+00 : f32
    %9 = vector.broadcast %cst_11 : f32 to vector<64x4xf32>
    %cst_12 = arith.constant 0.000000e+00 : f32
    %10 = vector.broadcast %cst_12 : f32 to vector<64x4xf32>
    %c0_13 = arith.constant 0 : index
    %c0_14 = arith.constant 0 : index
    %c0_15 = arith.constant 0 : index
    %11 = vector.load %arg4[%c0_13, %c0_14, %c0_15] : memref<10x10x8xbf16, #tpu.memory_space<vmem>>, vector<8x8x8xbf16>
    %12 = vector.shape_cast %11 : vector<8x8x8xbf16> to vector<64x8xbf16>
    %c0_16 = arith.constant 0 : index
    %c0_17 = arith.constant 0 : index
    %c0_18 = arith.constant 0 : index
    %c0_19 = arith.constant 0 : index
    %13 = vector.load %arg2[%c0_16, %c0_17, %c0_18, %c0_19] : memref<9x4x8x4xbf16, #tpu.memory_space<vmem>>, vector<1x1x8x4xbf16>
    %14 = vector.shape_cast %13 : vector<1x1x8x4xbf16> to vector<8x4xbf16>
    %cst_20 = arith.constant dense<0.000000e+00> : vector<64x4xf32>
    %15 = tpu.matmul %12, %14, %cst_20 {dimension_numbers = #tpu.dot_dimension_numbers<[1], [0], [0], [1], [0, 0, 1, 1], [], []>} : vector<64x8xbf16>, vector<8x4xbf16>, vector<64x4xf32> -> vector<64x4xf32>
    %16 = arith.addf %7, %15 : vector<64x4xf32>
    %c0_21 = arith.constant 0 : index
    %c1_22 = arith.constant 1 : index
    %c0_23 = arith.constant 0 : index
    %c0_24 = arith.constant 0 : index
    %17 = vector.load %arg2[%c0_21, %c1_22, %c0_23, %c0_24] : memref<9x4x8x4xbf16, #tpu.memory_space<vmem>>, vector<1x1x8x4xbf16>
    %18 = vector.shape_cast %17 : vector<1x1x8x4xbf16> to vector<8x4xbf16>
    %cst_25 = arith.constant dense<0.000000e+00> : vector<64x4xf32>
    %19 = tpu.matmul %12, %18, %cst_25 {dimension_numbers = #tpu.dot_dimension_numbers<[1], [0], [0], [1], [0, 0, 1, 1], [], []>} : vector<64x8xbf16>, vector<8x4xbf16>, vector<64x4xf32> -> vector<64x4xf32>
    %20 = arith.addf %8, %19 : vector<64x4xf32>
    %c0_26 = arith.constant 0 : index
    %c2 = arith.constant 2 : index
    %c0_27 = arith.constant 0 : index
    %c0_28 = arith.constant 0 : index
    %21 = vector.load %arg2[%c0_26, %c2, %c0_27, %c0_28] : memref<9x4x8x4xbf16, #tpu.memory_space<vmem>>, vector<1x1x8x4xbf16>
    %22 = vector.shape_cast %21 : vector<1x1x8x4xbf16> to vector<8x4xbf16>
    %cst_29 = arith.constant dense<0.000000e+00> : vector<64x4xf32>
    %23 = tpu.matmul %12, %22, %cst_29 {dimension_numbers = #tpu.dot_dimension_numbers<[1], [0], [0], [1], [0, 0, 1, 1], [], []>} : vector<64x8xbf16>, vector<8x4xbf16>, vector<64x4xf32> -> vector<64x4xf32>
    %24 = arith.addf %9, %23 : vector<64x4xf32>
    %c0_30 = arith.constant 0 : index
    %c3 = arith.constant 3 : index
    %c0_31 = arith.constant 0 : index
    %c0_32 = arith.constant 0 : index
    %25 = vector.load %arg2[%c0_30, %c3, %c0_31, %c0_32] : memref<9x4x8x4xbf16, #tpu.memory_space<vmem>>, vector<1x1x8x4xbf16>
    %26 = vector.shape_cast %25 : vector<1x1x8x4xbf16> to vector<8x4xbf16>
    %cst_33 = arith.constant dense<0.000000e+00> : vector<64x4xf32>
    %27 = tpu.matmul %12, %26, %cst_33 {dimension_numbers = #tpu.dot_dimension_numbers<[1], [0], [0], [1], [0, 0, 1, 1], [], []>} : vector<64x8xbf16>, vector<8x4xbf16>, vector<64x4xf32> -> vector<64x4xf32>
    %28 = arith.addf %10, %27 : vector<64x4xf32>
    %c0_34 = arith.constant 0 : index
    %c1_35 = arith.constant 1 : index
    %c0_36 = arith.constant 0 : index
    %29 = vector.load %arg4[%c0_34, %c1_35, %c0_36] : memref<10x10x8xbf16, #tpu.memory_space<vmem>>, vector<8x8x8xbf16>
    %30 = vector.shape_cast %29 : vector<8x8x8xbf16> to vector<64x8xbf16>
    %c1_37 = arith.constant 1 : index
    %c0_38 = arith.constant 0 : index
    %c0_39 = arith.constant 0 : index
    %c0_40 = arith.constant 0 : index
    %31 = vector.load %arg2[%c1_37, %c0_38, %c0_39, %c0_40] : memref<9x4x8x4xbf16, #tpu.memory_space<vmem>>, vector<1x1x8x4xbf16>
    %32 = vector.shape_cast %31 : vector<1x1x8x4xbf16> to vector<8x4xbf16>
    %cst_41 = arith.constant dense<0.000000e+00> : vector<64x4xf32>
    %33 = tpu.matmul %30, %32, %cst_41 {dimension_numbers = #tpu.dot_dimension_numbers<[1], [0], [0], [1], [0, 0, 1, 1], [], []>} : vector<64x8xbf16>, vector<8x4xbf16>, vector<64x4xf32> -> vector<64x4xf32>
    %34 = arith.addf %16, %33 : vector<64x4xf32>
    %c1_42 = arith.constant 1 : index
    %c1_43 = arith.constant 1 : index
    %c0_44 = arith.constant 0 : index
    %c0_45 = arith.constant 0 : index
    %35 = vector.load %arg2[%c1_42, %c1_43, %c0_44, %c0_45] : memref<9x4x8x4xbf16, #tpu.memory_space<vmem>>, vector<1x1x8x4xbf16>
    %36 = vector.shape_cast %35 : vector<1x1x8x4xbf16> to vector<8x4xbf16>
    %cst_46 = arith.constant dense<0.000000e+00> : vector<64x4xf32>
    %37 = tpu.matmul %30, %36, %cst_46 {dimension_numbers = #tpu.dot_dimension_numbers<[1], [0], [0], [1], [0, 0, 1, 1], [], []>} : vector<64x8xbf16>, vector<8x4xbf16>, vector<64x4xf32> -> vector<64x4xf32>
    %38 = arith.addf %20, %37 : vector<64x4xf32>
    %c1_47 = arith.constant 1 : index
    %c2_48 = arith.constant 2 : index
    %c0_49 = arith.constant 0 : index
    %c0_50 = arith.constant 0 : index
    %39 = vector.load %arg2[%c1_47, %c2_48, %c0_49, %c0_50] : memref<9x4x8x4xbf16, #tpu.memory_space<vmem>>, vector<1x1x8x4xbf16>
    %40 = vector.shape_cast %39 : vector<1x1x8x4xbf16> to vector<8x4xbf16>
    %cst_51 = arith.constant dense<0.000000e+00> : vector<64x4xf32>
    %41 = tpu.matmul %30, %40, %cst_51 {dimension_numbers = #tpu.dot_dimension_numbers<[1], [0], [0], [1], [0, 0, 1, 1], [], []>} : vector<64x8xbf16>, vector<8x4xbf16>, vector<64x4xf32> -> vector<64x4xf32>
    %42 = arith.addf %24, %41 : vector<64x4xf32>
    %c1_52 = arith.constant 1 : index
    %c3_53 = arith.constant 3 : index
    %c0_54 = arith.constant 0 : index
    %c0_55 = arith.constant 0 : index
    %43 = vector.load %arg2[%c1_52, %c3_53, %c0_54, %c0_55] : memref<9x4x8x4xbf16, #tpu.memory_space<vmem>>, vector<1x1x8x4xbf16>
    %44 = vector.shape_cast %43 : vector<1x1x8x4xbf16> to vector<8x4xbf16>
    %cst_56 = arith.constant dense<0.000000e+00> : vector<64x4xf32>
    %45 = tpu.matmul %30, %44, %cst_56 {dimension_numbers = #tpu.dot_dimension_numbers<[1], [0], [0], [1], [0, 0, 1, 1], [], []>} : vector<64x8xbf16>, vector<8x4xbf16>, vector<64x4xf32> -> vector<64x4xf32>
    %46 = arith.addf %28, %45 : vector<64x4xf32>
    %c0_57 = arith.constant 0 : index
    %c2_58 = arith.constant 2 : index
    %c0_59 = arith.constant 0 : index
    %47 = vector.load %arg4[%c0_57, %c2_58, %c0_59] : memref<10x10x8xbf16, #tpu.memory_space<vmem>>, vector<8x8x8xbf16>
    %48 = vector.shape_cast %47 : vector<8x8x8xbf16> to vector<64x8xbf16>
    %c2_60 = arith.constant 2 : index
    %c0_61 = arith.constant 0 : index
    %c0_62 = arith.constant 0 : index
    %c0_63 = arith.constant 0 : index
    %49 = vector.load %arg2[%c2_60, %c0_61, %c0_62, %c0_63] : memref<9x4x8x4xbf16, #tpu.memory_space<vmem>>, vector<1x1x8x4xbf16>
    %50 = vector.shape_cast %49 : vector<1x1x8x4xbf16> to vector<8x4xbf16>
    %cst_64 = arith.constant dense<0.000000e+00> : vector<64x4xf32>
    %51 = tpu.matmul %48, %50, %cst_64 {dimension_numbers = #tpu.dot_dimension_numbers<[1], [0], [0], [1], [0, 0, 1, 1], [], []>} : vector<64x8xbf16>, vector<8x4xbf16>, vector<64x4xf32> -> vector<64x4xf32>
    %52 = arith.addf %34, %51 : vector<64x4xf32>
    %c2_65 = arith.constant 2 : index
    %c1_66 = arith.constant 1 : index
    %c0_67 = arith.constant 0 : index
    %c0_68 = arith.constant 0 : index
    %53 = vector.load %arg2[%c2_65, %c1_66, %c0_67, %c0_68] : memref<9x4x8x4xbf16, #tpu.memory_space<vmem>>, vector<1x1x8x4xbf16>
    %54 = vector.shape_cast %53 : vector<1x1x8x4xbf16> to vector<8x4xbf16>
    %cst_69 = arith.constant dense<0.000000e+00> : vector<64x4xf32>
    %55 = tpu.matmul %48, %54, %cst_69 {dimension_numbers = #tpu.dot_dimension_numbers<[1], [0], [0], [1], [0, 0, 1, 1], [], []>} : vector<64x8xbf16>, vector<8x4xbf16>, vector<64x4xf32> -> vector<64x4xf32>
    %56 = arith.addf %38, %55 : vector<64x4xf32>
    %c2_70 = arith.constant 2 : index
    %c2_71 = arith.constant 2 : index
    %c0_72 = arith.constant 0 : index
    %c0_73 = arith.constant 0 : index
    %57 = vector.load %arg2[%c2_70, %c2_71, %c0_72, %c0_73] : memref<9x4x8x4xbf16, #tpu.memory_space<vmem>>, vector<1x1x8x4xbf16>
    %58 = vector.shape_cast %57 : vector<1x1x8x4xbf16> to vector<8x4xbf16>
    %cst_74 = arith.constant dense<0.000000e+00> : vector<64x4xf32>
    %59 = tpu.matmul %48, %58, %cst_74 {dimension_numbers = #tpu.dot_dimension_numbers<[1], [0], [0], [1], [0, 0, 1, 1], [], []>} : vector<64x8xbf16>, vector<8x4xbf16>, vector<64x4xf32> -> vector<64x4xf32>
    %60 = arith.addf %42, %59 : vector<64x4xf32>
    %c2_75 = arith.constant 2 : index
    %c3_76 = arith.constant 3 : index
    %c0_77 = arith.constant 0 : index
    %c0_78 = arith.constant 0 : index
    %61 = vector.load %arg2[%c2_75, %c3_76, %c0_77, %c0_78] : memref<9x4x8x4xbf16, #tpu.memory_space<vmem>>, vector<1x1x8x4xbf16>
    %62 = vector.shape_cast %61 : vector<1x1x8x4xbf16> to vector<8x4xbf16>
    %cst_79 = arith.constant dense<0.000000e+00> : vector<64x4xf32>
    %63 = tpu.matmul %48, %62, %cst_79 {dimension_numbers = #tpu.dot_dimension_numbers<[1], [0], [0], [1], [0, 0, 1, 1], [], []>} : vector<64x8xbf16>, vector<8x4xbf16>, vector<64x4xf32> -> vector<64x4xf32>
    %64 = arith.addf %46, %63 : vector<64x4xf32>
    %c1_80 = arith.constant 1 : index
    %c0_81 = arith.constant 0 : index
    %c0_82 = arith.constant 0 : index
    %65 = vector.load %arg4[%c1_80, %c0_81, %c0_82] : memref<10x10x8xbf16, #tpu.memory_space<vmem>>, vector<8x8x8xbf16>
    %66 = vector.shape_cast %65 : vector<8x8x8xbf16> to vector<64x8xbf16>
    %c3_83 = arith.constant 3 : index
    %c0_84 = arith.constant 0 : index
    %c0_85 = arith.constant 0 : index
    %c0_86 = arith.constant 0 : index
    %67 = vector.load %arg2[%c3_83, %c0_84, %c0_85, %c0_86] : memref<9x4x8x4xbf16, #tpu.memory_space<vmem>>, vector<1x1x8x4xbf16>
    %68 = vector.shape_cast %67 : vector<1x1x8x4xbf16> to vector<8x4xbf16>
    %cst_87 = arith.constant dense<0.000000e+00> : vector<64x4xf32>
    %69 = tpu.matmul %66, %68, %cst_87 {dimension_numbers = #tpu.dot_dimension_numbers<[1], [0], [0], [1], [0, 0, 1, 1], [], []>} : vector<64x8xbf16>, vector<8x4xbf16>, vector<64x4xf32> -> vector<64x4xf32>
    %70 = arith.addf %52, %69 : vector<64x4xf32>
    %c3_88 = arith.constant 3 : index
    %c1_89 = arith.constant 1 : index
    %c0_90 = arith.constant 0 : index
    %c0_91 = arith.constant 0 : index
    %71 = vector.load %arg2[%c3_88, %c1_89, %c0_90, %c0_91] : memref<9x4x8x4xbf16, #tpu.memory_space<vmem>>, vector<1x1x8x4xbf16>
    %72 = vector.shape_cast %71 : vector<1x1x8x4xbf16> to vector<8x4xbf16>
    %cst_92 = arith.constant dense<0.000000e+00> : vector<64x4xf32>
    %73 = tpu.matmul %66, %72, %cst_92 {dimension_numbers = #tpu.dot_dimension_numbers<[1], [0], [0], [1], [0, 0, 1, 1], [], []>} : vector<64x8xbf16>, vector<8x4xbf16>, vector<64x4xf32> -> vector<64x4xf32>
    %74 = arith.addf %56, %73 : vector<64x4xf32>
    %c3_93 = arith.constant 3 : index
    %c2_94 = arith.constant 2 : index
    %c0_95 = arith.constant 0 : index
    %c0_96 = arith.constant 0 : index
    %75 = vector.load %arg2[%c3_93, %c2_94, %c0_95, %c0_96] : memref<9x4x8x4xbf16, #tpu.memory_space<vmem>>, vector<1x1x8x4xbf16>
    %76 = vector.shape_cast %75 : vector<1x1x8x4xbf16> to vector<8x4xbf16>
    %cst_97 = arith.constant dense<0.000000e+00> : vector<64x4xf32>
    %77 = tpu.matmul %66, %76, %cst_97 {dimension_numbers = #tpu.dot_dimension_numbers<[1], [0], [0], [1], [0, 0, 1, 1], [], []>} : vector<64x8xbf16>, vector<8x4xbf16>, vector<64x4xf32> -> vector<64x4xf32>
    %78 = arith.addf %60, %77 : vector<64x4xf32>
    %c3_98 = arith.constant 3 : index
    %c3_99 = arith.constant 3 : index
    %c0_100 = arith.constant 0 : index
    %c0_101 = arith.constant 0 : index
    %79 = vector.load %arg2[%c3_98, %c3_99, %c0_100, %c0_101] : memref<9x4x8x4xbf16, #tpu.memory_space<vmem>>, vector<1x1x8x4xbf16>
    %80 = vector.shape_cast %79 : vector<1x1x8x4xbf16> to vector<8x4xbf16>
    %cst_102 = arith.constant dense<0.000000e+00> : vector<64x4xf32>
    %81 = tpu.matmul %66, %80, %cst_102 {dimension_numbers = #tpu.dot_dimension_numbers<[1], [0], [0], [1], [0, 0, 1, 1], [], []>} : vector<64x8xbf16>, vector<8x4xbf16>, vector<64x4xf32> -> vector<64x4xf32>
    %82 = arith.addf %64, %81 : vector<64x4xf32>
    %c1_103 = arith.constant 1 : index
    %c1_104 = arith.constant 1 : index
    %c0_105 = arith.constant 0 : index
    %83 = vector.load %arg4[%c1_103, %c1_104, %c0_105] : memref<10x10x8xbf16, #tpu.memory_space<vmem>>, vector<8x8x8xbf16>
    %84 = vector.shape_cast %83 : vector<8x8x8xbf16> to vector<64x8xbf16>
    %c4 = arith.constant 4 : index
    %c0_106 = arith.constant 0 : index
    %c0_107 = arith.constant 0 : index
    %c0_108 = arith.constant 0 : index
    %85 = vector.load %arg2[%c4, %c0_106, %c0_107, %c0_108] : memref<9x4x8x4xbf16, #tpu.memory_space<vmem>>, vector<1x1x8x4xbf16>
    %86 = vector.shape_cast %85 : vector<1x1x8x4xbf16> to vector<8x4xbf16>
    %cst_109 = arith.constant dense<0.000000e+00> : vector<64x4xf32>
    %87 = tpu.matmul %84, %86, %cst_109 {dimension_numbers = #tpu.dot_dimension_numbers<[1], [0], [0], [1], [0, 0, 1, 1], [], []>} : vector<64x8xbf16>, vector<8x4xbf16>, vector<64x4xf32> -> vector<64x4xf32>
    %88 = arith.addf %70, %87 : vector<64x4xf32>
    %c4_110 = arith.constant 4 : index
    %c1_111 = arith.constant 1 : index
    %c0_112 = arith.constant 0 : index
    %c0_113 = arith.constant 0 : index
    %89 = vector.load %arg2[%c4_110, %c1_111, %c0_112, %c0_113] : memref<9x4x8x4xbf16, #tpu.memory_space<vmem>>, vector<1x1x8x4xbf16>
    %90 = vector.shape_cast %89 : vector<1x1x8x4xbf16> to vector<8x4xbf16>
    %cst_114 = arith.constant dense<0.000000e+00> : vector<64x4xf32>
    %91 = tpu.matmul %84, %90, %cst_114 {dimension_numbers = #tpu.dot_dimension_numbers<[1], [0], [0], [1], [0, 0, 1, 1], [], []>} : vector<64x8xbf16>, vector<8x4xbf16>, vector<64x4xf32> -> vector<64x4xf32>
    %92 = arith.addf %74, %91 : vector<64x4xf32>
    %c4_115 = arith.constant 4 : index
    %c2_116 = arith.constant 2 : index
    %c0_117 = arith.constant 0 : index
    %c0_118 = arith.constant 0 : index
    %93 = vector.load %arg2[%c4_115, %c2_116, %c0_117, %c0_118] : memref<9x4x8x4xbf16, #tpu.memory_space<vmem>>, vector<1x1x8x4xbf16>
    %94 = vector.shape_cast %93 : vector<1x1x8x4xbf16> to vector<8x4xbf16>
    %cst_119 = arith.constant dense<0.000000e+00> : vector<64x4xf32>
    %95 = tpu.matmul %84, %94, %cst_119 {dimension_numbers = #tpu.dot_dimension_numbers<[1], [0], [0], [1], [0, 0, 1, 1], [], []>} : vector<64x8xbf16>, vector<8x4xbf16>, vector<64x4xf32> -> vector<64x4xf32>
    %96 = arith.addf %78, %95 : vector<64x4xf32>
    %c4_120 = arith.constant 4 : index
    %c3_121 = arith.constant 3 : index
    %c0_122 = arith.constant 0 : index
    %c0_123 = arith.constant 0 : index
    %97 = vector.load %arg2[%c4_120, %c3_121, %c0_122, %c0_123] : memref<9x4x8x4xbf16, #tpu.memory_space<vmem>>, vector<1x1x8x4xbf16>
    %98 = vector.shape_cast %97 : vector<1x1x8x4xbf16> to vector<8x4xbf16>
    %cst_124 = arith.constant dense<0.000000e+00> : vector<64x4xf32>
    %99 = tpu.matmul %84, %98, %cst_124 {dimension_numbers = #tpu.dot_dimension_numbers<[1], [0], [0], [1], [0, 0, 1, 1], [], []>} : vector<64x8xbf16>, vector<8x4xbf16>, vector<64x4xf32> -> vector<64x4xf32>
    %100 = arith.addf %82, %99 : vector<64x4xf32>
    %c1_125 = arith.constant 1 : index
    %c2_126 = arith.constant 2 : index
    %c0_127 = arith.constant 0 : index
    %101 = vector.load %arg4[%c1_125, %c2_126, %c0_127] : memref<10x10x8xbf16, #tpu.memory_space<vmem>>, vector<8x8x8xbf16>
    %102 = vector.shape_cast %101 : vector<8x8x8xbf16> to vector<64x8xbf16>
    %c5 = arith.constant 5 : index
    %c0_128 = arith.constant 0 : index
    %c0_129 = arith.constant 0 : index
    %c0_130 = arith.constant 0 : index
    %103 = vector.load %arg2[%c5, %c0_128, %c0_129, %c0_130] : memref<9x4x8x4xbf16, #tpu.memory_space<vmem>>, vector<1x1x8x4xbf16>
    %104 = vector.shape_cast %103 : vector<1x1x8x4xbf16> to vector<8x4xbf16>
    %cst_131 = arith.constant dense<0.000000e+00> : vector<64x4xf32>
    %105 = tpu.matmul %102, %104, %cst_131 {dimension_numbers = #tpu.dot_dimension_numbers<[1], [0], [0], [1], [0, 0, 1, 1], [], []>} : vector<64x8xbf16>, vector<8x4xbf16>, vector<64x4xf32> -> vector<64x4xf32>
    %106 = arith.addf %88, %105 : vector<64x4xf32>
    %c5_132 = arith.constant 5 : index
    %c1_133 = arith.constant 1 : index
    %c0_134 = arith.constant 0 : index
    %c0_135 = arith.constant 0 : index
    %107 = vector.load %arg2[%c5_132, %c1_133, %c0_134, %c0_135] : memref<9x4x8x4xbf16, #tpu.memory_space<vmem>>, vector<1x1x8x4xbf16>
    %108 = vector.shape_cast %107 : vector<1x1x8x4xbf16> to vector<8x4xbf16>
    %cst_136 = arith.constant dense<0.000000e+00> : vector<64x4xf32>
    %109 = tpu.matmul %102, %108, %cst_136 {dimension_numbers = #tpu.dot_dimension_numbers<[1], [0], [0], [1], [0, 0, 1, 1], [], []>} : vector<64x8xbf16>, vector<8x4xbf16>, vector<64x4xf32> -> vector<64x4xf32>
    %110 = arith.addf %92, %109 : vector<64x4xf32>
    %c5_137 = arith.constant 5 : index
    %c2_138 = arith.constant 2 : index
    %c0_139 = arith.constant 0 : index
    %c0_140 = arith.constant 0 : index
    %111 = vector.load %arg2[%c5_137, %c2_138, %c0_139, %c0_140] : memref<9x4x8x4xbf16, #tpu.memory_space<vmem>>, vector<1x1x8x4xbf16>
    %112 = vector.shape_cast %111 : vector<1x1x8x4xbf16> to vector<8x4xbf16>
    %cst_141 = arith.constant dense<0.000000e+00> : vector<64x4xf32>
    %113 = tpu.matmul %102, %112, %cst_141 {dimension_numbers = #tpu.dot_dimension_numbers<[1], [0], [0], [1], [0, 0, 1, 1], [], []>} : vector<64x8xbf16>, vector<8x4xbf16>, vector<64x4xf32> -> vector<64x4xf32>
    %114 = arith.addf %96, %113 : vector<64x4xf32>
    %c5_142 = arith.constant 5 : index
    %c3_143 = arith.constant 3 : index
    %c0_144 = arith.constant 0 : index
    %c0_145 = arith.constant 0 : index
    %115 = vector.load %arg2[%c5_142, %c3_143, %c0_144, %c0_145] : memref<9x4x8x4xbf16, #tpu.memory_space<vmem>>, vector<1x1x8x4xbf16>
    %116 = vector.shape_cast %115 : vector<1x1x8x4xbf16> to vector<8x4xbf16>
    %cst_146 = arith.constant dense<0.000000e+00> : vector<64x4xf32>
    %117 = tpu.matmul %102, %116, %cst_146 {dimension_numbers = #tpu.dot_dimension_numbers<[1], [0], [0], [1], [0, 0, 1, 1], [], []>} : vector<64x8xbf16>, vector<8x4xbf16>, vector<64x4xf32> -> vector<64x4xf32>
    %118 = arith.addf %100, %117 : vector<64x4xf32>
    %c2_147 = arith.constant 2 : index
    %c0_148 = arith.constant 0 : index
    %c0_149 = arith.constant 0 : index
    %119 = vector.load %arg4[%c2_147, %c0_148, %c0_149] : memref<10x10x8xbf16, #tpu.memory_space<vmem>>, vector<8x8x8xbf16>
    %120 = vector.shape_cast %119 : vector<8x8x8xbf16> to vector<64x8xbf16>
    %c6 = arith.constant 6 : index
    %c0_150 = arith.constant 0 : index
    %c0_151 = arith.constant 0 : index
    %c0_152 = arith.constant 0 : index
    %121 = vector.load %arg2[%c6, %c0_150, %c0_151, %c0_152] : memref<9x4x8x4xbf16, #tpu.memory_space<vmem>>, vector<1x1x8x4xbf16>
    %122 = vector.shape_cast %121 : vector<1x1x8x4xbf16> to vector<8x4xbf16>
    %cst_153 = arith.constant dense<0.000000e+00> : vector<64x4xf32>
    %123 = tpu.matmul %120, %122, %cst_153 {dimension_numbers = #tpu.dot_dimension_numbers<[1], [0], [0], [1], [0, 0, 1, 1], [], []>} : vector<64x8xbf16>, vector<8x4xbf16>, vector<64x4xf32> -> vector<64x4xf32>
    %124 = arith.addf %106, %123 : vector<64x4xf32>
    %c6_154 = arith.constant 6 : index
    %c1_155 = arith.constant 1 : index
    %c0_156 = arith.constant 0 : index
    %c0_157 = arith.constant 0 : index
    %125 = vector.load %arg2[%c6_154, %c1_155, %c0_156, %c0_157] : memref<9x4x8x4xbf16, #tpu.memory_space<vmem>>, vector<1x1x8x4xbf16>
    %126 = vector.shape_cast %125 : vector<1x1x8x4xbf16> to vector<8x4xbf16>
    %cst_158 = arith.constant dense<0.000000e+00> : vector<64x4xf32>
    %127 = tpu.matmul %120, %126, %cst_158 {dimension_numbers = #tpu.dot_dimension_numbers<[1], [0], [0], [1], [0, 0, 1, 1], [], []>} : vector<64x8xbf16>, vector<8x4xbf16>, vector<64x4xf32> -> vector<64x4xf32>
    %128 = arith.addf %110, %127 : vector<64x4xf32>
    %c6_159 = arith.constant 6 : index
    %c2_160 = arith.constant 2 : index
    %c0_161 = arith.constant 0 : index
    %c0_162 = arith.constant 0 : index
    %129 = vector.load %arg2[%c6_159, %c2_160, %c0_161, %c0_162] : memref<9x4x8x4xbf16, #tpu.memory_space<vmem>>, vector<1x1x8x4xbf16>
    %130 = vector.shape_cast %129 : vector<1x1x8x4xbf16> to vector<8x4xbf16>
    %cst_163 = arith.constant dense<0.000000e+00> : vector<64x4xf32>
    %131 = tpu.matmul %120, %130, %cst_163 {dimension_numbers = #tpu.dot_dimension_numbers<[1], [0], [0], [1], [0, 0, 1, 1], [], []>} : vector<64x8xbf16>, vector<8x4xbf16>, vector<64x4xf32> -> vector<64x4xf32>
    %132 = arith.addf %114, %131 : vector<64x4xf32>
    %c6_164 = arith.constant 6 : index
    %c3_165 = arith.constant 3 : index
    %c0_166 = arith.constant 0 : index
    %c0_167 = arith.constant 0 : index
    %133 = vector.load %arg2[%c6_164, %c3_165, %c0_166, %c0_167] : memref<9x4x8x4xbf16, #tpu.memory_space<vmem>>, vector<1x1x8x4xbf16>
    %134 = vector.shape_cast %133 : vector<1x1x8x4xbf16> to vector<8x4xbf16>
    %cst_168 = arith.constant dense<0.000000e+00> : vector<64x4xf32>
    %135 = tpu.matmul %120, %134, %cst_168 {dimension_numbers = #tpu.dot_dimension_numbers<[1], [0], [0], [1], [0, 0, 1, 1], [], []>} : vector<64x8xbf16>, vector<8x4xbf16>, vector<64x4xf32> -> vector<64x4xf32>
    %136 = arith.addf %118, %135 : vector<64x4xf32>
    %c2_169 = arith.constant 2 : index
    %c1_170 = arith.constant 1 : index
    %c0_171 = arith.constant 0 : index
    %137 = vector.load %arg4[%c2_169, %c1_170, %c0_171] : memref<10x10x8xbf16, #tpu.memory_space<vmem>>, vector<8x8x8xbf16>
    %138 = vector.shape_cast %137 : vector<8x8x8xbf16> to vector<64x8xbf16>
    %c7 = arith.constant 7 : index
    %c0_172 = arith.constant 0 : index
    %c0_173 = arith.constant 0 : index
    %c0_174 = arith.constant 0 : index
    %139 = vector.load %arg2[%c7, %c0_172, %c0_173, %c0_174] : memref<9x4x8x4xbf16, #tpu.memory_space<vmem>>, vector<1x1x8x4xbf16>
    %140 = vector.shape_cast %139 : vector<1x1x8x4xbf16> to vector<8x4xbf16>
    %cst_175 = arith.constant dense<0.000000e+00> : vector<64x4xf32>
    %141 = tpu.matmul %138, %140, %cst_175 {dimension_numbers = #tpu.dot_dimension_numbers<[1], [0], [0], [1], [0, 0, 1, 1], [], []>} : vector<64x8xbf16>, vector<8x4xbf16>, vector<64x4xf32> -> vector<64x4xf32>
    %142 = arith.addf %124, %141 : vector<64x4xf32>
    %c7_176 = arith.constant 7 : index
    %c1_177 = arith.constant 1 : index
    %c0_178 = arith.constant 0 : index
    %c0_179 = arith.constant 0 : index
    %143 = vector.load %arg2[%c7_176, %c1_177, %c0_178, %c0_179] : memref<9x4x8x4xbf16, #tpu.memory_space<vmem>>, vector<1x1x8x4xbf16>
    %144 = vector.shape_cast %143 : vector<1x1x8x4xbf16> to vector<8x4xbf16>
    %cst_180 = arith.constant dense<0.000000e+00> : vector<64x4xf32>
    %145 = tpu.matmul %138, %144, %cst_180 {dimension_numbers = #tpu.dot_dimension_numbers<[1], [0], [0], [1], [0, 0, 1, 1], [], []>} : vector<64x8xbf16>, vector<8x4xbf16>, vector<64x4xf32> -> vector<64x4xf32>
    %146 = arith.addf %128, %145 : vector<64x4xf32>
    %c7_181 = arith.constant 7 : index
    %c2_182 = arith.constant 2 : index
    %c0_183 = arith.constant 0 : index
    %c0_184 = arith.constant 0 : index
    %147 = vector.load %arg2[%c7_181, %c2_182, %c0_183, %c0_184] : memref<9x4x8x4xbf16, #tpu.memory_space<vmem>>, vector<1x1x8x4xbf16>
    %148 = vector.shape_cast %147 : vector<1x1x8x4xbf16> to vector<8x4xbf16>
    %cst_185 = arith.constant dense<0.000000e+00> : vector<64x4xf32>
    %149 = tpu.matmul %138, %148, %cst_185 {dimension_numbers = #tpu.dot_dimension_numbers<[1], [0], [0], [1], [0, 0, 1, 1], [], []>} : vector<64x8xbf16>, vector<8x4xbf16>, vector<64x4xf32> -> vector<64x4xf32>
    %150 = arith.addf %132, %149 : vector<64x4xf32>
    %c7_186 = arith.constant 7 : index
    %c3_187 = arith.constant 3 : index
    %c0_188 = arith.constant 0 : index
    %c0_189 = arith.constant 0 : index
    %151 = vector.load %arg2[%c7_186, %c3_187, %c0_188, %c0_189] : memref<9x4x8x4xbf16, #tpu.memory_space<vmem>>, vector<1x1x8x4xbf16>
    %152 = vector.shape_cast %151 : vector<1x1x8x4xbf16> to vector<8x4xbf16>
    %cst_190 = arith.constant dense<0.000000e+00> : vector<64x4xf32>
    %153 = tpu.matmul %138, %152, %cst_190 {dimension_numbers = #tpu.dot_dimension_numbers<[1], [0], [0], [1], [0, 0, 1, 1], [], []>} : vector<64x8xbf16>, vector<8x4xbf16>, vector<64x4xf32> -> vector<64x4xf32>
    %154 = arith.addf %136, %153 : vector<64x4xf32>
    %c2_191 = arith.constant 2 : index
    %c2_192 = arith.constant 2 : index
    %c0_193 = arith.constant 0 : index
    %155 = vector.load %arg4[%c2_191, %c2_192, %c0_193] : memref<10x10x8xbf16, #tpu.memory_space<vmem>>, vector<8x8x8xbf16>
    %156 = vector.shape_cast %155 : vector<8x8x8xbf16> to vector<64x8xbf16>
    %c8 = arith.constant 8 : index
    %c0_194 = arith.constant 0 : index
    %c0_195 = arith.constant 0 : index
    %c0_196 = arith.constant 0 : index
    %157 = vector.load %arg2[%c8, %c0_194, %c0_195, %c0_196] : memref<9x4x8x4xbf16, #tpu.memory_space<vmem>>, vector<1x1x8x4xbf16>
    %158 = vector.shape_cast %157 : vector<1x1x8x4xbf16> to vector<8x4xbf16>
    %cst_197 = arith.constant dense<0.000000e+00> : vector<64x4xf32>
    %159 = tpu.matmul %156, %158, %cst_197 {dimension_numbers = #tpu.dot_dimension_numbers<[1], [0], [0], [1], [0, 0, 1, 1], [], []>} : vector<64x8xbf16>, vector<8x4xbf16>, vector<64x4xf32> -> vector<64x4xf32>
    %160 = arith.addf %142, %159 : vector<64x4xf32>
    %c8_198 = arith.constant 8 : index
    %c1_199 = arith.constant 1 : index
    %c0_200 = arith.constant 0 : index
    %c0_201 = arith.constant 0 : index
    %161 = vector.load %arg2[%c8_198, %c1_199, %c0_200, %c0_201] : memref<9x4x8x4xbf16, #tpu.memory_space<vmem>>, vector<1x1x8x4xbf16>
    %162 = vector.shape_cast %161 : vector<1x1x8x4xbf16> to vector<8x4xbf16>
    %cst_202 = arith.constant dense<0.000000e+00> : vector<64x4xf32>
    %163 = tpu.matmul %156, %162, %cst_202 {dimension_numbers = #tpu.dot_dimension_numbers<[1], [0], [0], [1], [0, 0, 1, 1], [], []>} : vector<64x8xbf16>, vector<8x4xbf16>, vector<64x4xf32> -> vector<64x4xf32>
    %164 = arith.addf %146, %163 : vector<64x4xf32>
    %c8_203 = arith.constant 8 : index
    %c2_204 = arith.constant 2 : index
    %c0_205 = arith.constant 0 : index
    %c0_206 = arith.constant 0 : index
    %165 = vector.load %arg2[%c8_203, %c2_204, %c0_205, %c0_206] : memref<9x4x8x4xbf16, #tpu.memory_space<vmem>>, vector<1x1x8x4xbf16>
    %166 = vector.shape_cast %165 : vector<1x1x8x4xbf16> to vector<8x4xbf16>
    %cst_207 = arith.constant dense<0.000000e+00> : vector<64x4xf32>
    %167 = tpu.matmul %156, %166, %cst_207 {dimension_numbers = #tpu.dot_dimension_numbers<[1], [0], [0], [1], [0, 0, 1, 1], [], []>} : vector<64x8xbf16>, vector<8x4xbf16>, vector<64x4xf32> -> vector<64x4xf32>
    %168 = arith.addf %150, %167 : vector<64x4xf32>
    %c8_208 = arith.constant 8 : index
    %c3_209 = arith.constant 3 : index
    %c0_210 = arith.constant 0 : index
    %c0_211 = arith.constant 0 : index
    %169 = vector.load %arg2[%c8_208, %c3_209, %c0_210, %c0_211] : memref<9x4x8x4xbf16, #tpu.memory_space<vmem>>, vector<1x1x8x4xbf16>
    %170 = vector.shape_cast %169 : vector<1x1x8x4xbf16> to vector<8x4xbf16>
    %cst_212 = arith.constant dense<0.000000e+00> : vector<64x4xf32>
    %171 = tpu.matmul %156, %170, %cst_212 {dimension_numbers = #tpu.dot_dimension_numbers<[1], [0], [0], [1], [0, 0, 1, 1], [], []>} : vector<64x8xbf16>, vector<8x4xbf16>, vector<64x4xf32> -> vector<64x4xf32>
    %172 = arith.addf %154, %171 : vector<64x4xf32>
    %173 = arith.addf %160, %164 : vector<64x4xf32>
    %174 = arith.addf %173, %168 : vector<64x4xf32>
    %175 = arith.addf %174, %172 : vector<64x4xf32>
    %cst_213 = arith.constant dense<0.000000e+00> : vector<4xf32>
    %176 = vector.multi_reduction <add>, %175, %cst_213 [0] : vector<64x4xf32> to vector<4xf32>
    %177 = vector.shape_cast %176 : vector<4xf32> to vector<1x4xf32>
    %178 = arith.mulf %160, %160 : vector<64x4xf32>
    %179 = arith.mulf %164, %164 : vector<64x4xf32>
    %180 = arith.addf %178, %179 : vector<64x4xf32>
    %181 = arith.mulf %168, %168 : vector<64x4xf32>
    %182 = arith.addf %180, %181 : vector<64x4xf32>
    %183 = arith.mulf %172, %172 : vector<64x4xf32>
    %184 = arith.addf %182, %183 : vector<64x4xf32>
    %cst_214 = arith.constant dense<0.000000e+00> : vector<4xf32>
    %185 = vector.multi_reduction <add>, %184, %cst_214 [0] : vector<64x4xf32> to vector<4xf32>
    %186 = vector.shape_cast %185 : vector<4xf32> to vector<1x4xf32>
    %cst_215 = arith.constant 2.560000e+02 : f32
    %187 = vector.broadcast %cst_215 : f32 to vector<1x4xf32>
    %188 = arith.divf %177, %187 : vector<1x4xf32>
    %cst_216 = arith.constant 2.560000e+02 : f32
    %189 = vector.broadcast %cst_216 : f32 to vector<1x4xf32>
    %190 = arith.divf %186, %189 : vector<1x4xf32>
    %191 = arith.mulf %188, %188 : vector<1x4xf32>
    %192 = arith.subf %190, %191 : vector<1x4xf32>
    %cst_217 = arith.constant 0.000000e+00 : f32
    %193 = vector.broadcast %cst_217 : f32 to vector<1x4xf32>
    %194 = arith.maximumf %192, %193 : vector<1x4xf32>
    %cst_218 = arith.constant 9.99999974E-6 : f32
    %195 = vector.broadcast %cst_218 : f32 to vector<1x4xf32>
    %196 = arith.addf %194, %195 : vector<1x4xf32>
    %197 = math.rsqrt %196 : vector<1x4xf32>
    %198 = vector.broadcast %188 : vector<1x4xf32> to vector<64x4xf32>
    %199 = arith.subf %160, %198 : vector<64x4xf32>
    %200 = vector.broadcast %197 : vector<1x4xf32> to vector<64x4xf32>
    %201 = arith.mulf %199, %200 : vector<64x4xf32>
    %202 = vector.shape_cast %201 : vector<64x4xf32> to vector<8x8x4xf32>
    %c0_219 = arith.constant 0 : index
    %c0_220 = arith.constant 0 : index
    %c0_221 = arith.constant 0 : index
    %c0_222 = arith.constant 0 : index
    %c0_223 = arith.constant 0 : index
    %203 = vector.load %arg3[%c0_219, %c0_220, %c0_221, %c0_222, %c0_223] : memref<1x4x8x8x4xf32, #tpu.memory_space<vmem>>, vector<1x1x8x8x4xf32>
    %204 = vector.shape_cast %203 : vector<1x1x8x8x4xf32> to vector<8x8x4xf32>
    %205 = vector.shape_cast %202 : vector<8x8x4xf32> to vector<1x1x8x8x4xf32>
    tpu.vector_store %arg3[%c0_219, %c0_220, %c0_221, %c0_222, %c0_223], %205 {strides = array<i32>} : memref<1x4x8x8x4xf32, #tpu.memory_space<vmem>>, vector<1x1x8x8x4xf32>,
    %206 = vector.broadcast %188 : vector<1x4xf32> to vector<64x4xf32>
    %207 = arith.subf %164, %206 : vector<64x4xf32>
    %208 = vector.broadcast %197 : vector<1x4xf32> to vector<64x4xf32>
    %209 = arith.mulf %207, %208 : vector<64x4xf32>
    %210 = vector.shape_cast %209 : vector<64x4xf32> to vector<8x8x4xf32>
    %c0_224 = arith.constant 0 : index
    %c1_225 = arith.constant 1 : index
    %c0_226 = arith.constant 0 : index
    %c0_227 = arith.constant 0 : index
    %c0_228 = arith.constant 0 : index
    %211 = vector.load %arg3[%c0_224, %c1_225, %c0_226, %c0_227, %c0_228] : memref<1x4x8x8x4xf32, #tpu.memory_space<vmem>>, vector<1x1x8x8x4xf32>
    %212 = vector.shape_cast %211 : vector<1x1x8x8x4xf32> to vector<8x8x4xf32>
    %213 = vector.shape_cast %210 : vector<8x8x4xf32> to vector<1x1x8x8x4xf32>
    tpu.vector_store %arg3[%c0_224, %c1_225, %c0_226, %c0_227, %c0_228], %213 {strides = array<i32>} : memref<1x4x8x8x4xf32, #tpu.memory_space<vmem>>, vector<1x1x8x8x4xf32>,
    %214 = vector.broadcast %188 : vector<1x4xf32> to vector<64x4xf32>
    %215 = arith.subf %168, %214 : vector<64x4xf32>
    %216 = vector.broadcast %197 : vector<1x4xf32> to vector<64x4xf32>
    %217 = arith.mulf %215, %216 : vector<64x4xf32>
    %218 = vector.shape_cast %217 : vector<64x4xf32> to vector<8x8x4xf32>
    %c0_229 = arith.constant 0 : index
    %c2_230 = arith.constant 2 : index
    %c0_231 = arith.constant 0 : index
    %c0_232 = arith.constant 0 : index
    %c0_233 = arith.constant 0 : index
    %219 = vector.load %arg3[%c0_229, %c2_230, %c0_231, %c0_232, %c0_233] : memref<1x4x8x8x4xf32, #tpu.memory_space<vmem>>, vector<1x1x8x8x4xf32>
    %220 = vector.shape_cast %219 : vector<1x1x8x8x4xf32> to vector<8x8x4xf32>
    %221 = vector.shape_cast %218 : vector<8x8x4xf32> to vector<1x1x8x8x4xf32>
    tpu.vector_store %arg3[%c0_229, %c2_230, %c0_231, %c0_232, %c0_233], %221 {strides = array<i32>} : memref<1x4x8x8x4xf32, #tpu.memory_space<vmem>>, vector<1x1x8x8x4xf32>,
    %222 = vector.broadcast %188 : vector<1x4xf32> to vector<64x4xf32>
    %223 = arith.subf %172, %222 : vector<64x4xf32>
    %224 = vector.broadcast %197 : vector<1x4xf32> to vector<64x4xf32>
    %225 = arith.mulf %223, %224 : vector<64x4xf32>
    %226 = vector.shape_cast %225 : vector<64x4xf32> to vector<8x8x4xf32>
    %c0_234 = arith.constant 0 : index
    %c3_235 = arith.constant 3 : index
    %c0_236 = arith.constant 0 : index
    %c0_237 = arith.constant 0 : index
    %c0_238 = arith.constant 0 : index
    %227 = vector.load %arg3[%c0_234, %c3_235, %c0_236, %c0_237, %c0_238] : memref<1x4x8x8x4xf32, #tpu.memory_space<vmem>>, vector<1x1x8x8x4xf32>
    %228 = vector.shape_cast %227 : vector<1x1x8x8x4xf32> to vector<8x8x4xf32>
    %229 = vector.shape_cast %226 : vector<8x8x4xf32> to vector<1x1x8x8x4xf32>
    tpu.vector_store %arg3[%c0_234, %c3_235, %c0_236, %c0_237, %c0_238], %229 {strides = array<i32>} : memref<1x4x8x8x4xf32, #tpu.memory_space<vmem>>, vector<1x1x8x8x4xf32>,
    return
  }
  func.func @transform_0(%arg0: i32) -> (i32, i32, i32, i32) {
    %c0_i32 = arith.constant 0 : i32
    %c0_i32_0 = arith.constant 0 : i32
    %c0_i32_1 = arith.constant 0 : i32
    %c0_i32_2 = arith.constant 0 : i32
    return %arg0, %c0_i32, %c0_i32_0, %c0_i32_1 : i32, i32, i32, i32
  }
  func.func @transform_1(%arg0: i32) -> (i32, i32, i32, i32) {
    %c0_i32 = arith.constant 0 : i32
    %c0_i32_0 = arith.constant 0 : i32
    %c0_i32_1 = arith.constant 0 : i32
    %c0_i32_2 = arith.constant 0 : i32
    %c0_i32_3 = arith.constant 0 : i32
    return %c0_i32, %c0_i32_0, %c0_i32_1, %c0_i32_2 : i32, i32, i32, i32
  }
  func.func @transform_2(%arg0: i32) -> (i32, i32, i32, i32, i32) {
    %c0_i32 = arith.constant 0 : i32
    %c0_i32_0 = arith.constant 0 : i32
    %c0_i32_1 = arith.constant 0 : i32
    %c0_i32_2 = arith.constant 0 : i32
    %c0_i32_3 = arith.constant 0 : i32
    return %arg0, %c0_i32, %c0_i32_0, %c0_i32_1, %c0_i32_2 : i32, i32, i32, i32, i32
  }
}

</mosaic_0001>

<bundles_post_ra>
// kernel: unet_block_innermost.2
= control target key start
LH: loop header
LB: loop body
LE: loop exit
PB: predicated region body
PF: predicated region fallthrough
CT: control target
= control target key end

     0   :  { %s861_s12 = smov 0   ;;  %s1168_s0 = inlined_call_operand.vmem [shape: bf16[2,9,9,16], index: 0, kind: input, shape index: {}]   ;;  %s1169_s1 = inlined_call_operand.vmem [shape: bf16[4,16,8], index: 1, kind: input, shape index: {}]   ;;  %s1170_s2 = inlined_call_operand.vmem [shape: f32[1,8], index: 2, kind: input, shape index: {}]   ;;  %s1171_s3 = inlined_call_operand.vmem [shape: bf16[2,8,8,8], index: 3, kind: output, shape index: {}]  }
   0x1 LB: > { %s770_s13 = sadd.s32 4294967295, %s839_s12   ;;  %p774_p0 = scmp.ge.s32.totalorder %s839_s12, 1  ;;  %s839_s12 = sphi %s861_s12, %s13_s12  }
   0x2   : > { %p137_p1 = scmp.lt.s32.totalorder %s839_s12, 3 }
   0x4   : > { %p138_p2 = pnand %p774_p0, %p137_p1 }
   0x5   : > { %p161_p3 = scmp.lt.s32.totalorder (!%p138_p2), %s770_s13, 1 }
   0x6   : > { %141 = sbr.rel (%p138_p2) target bundleno = 234 (0xea), region = 32 }
   0xb   : > { %v821_v0 = vld [vmem:[%s1169_s1 + $0x10] sm:$0xff]  ;;  %v819_v1 = vld [vmem:[%s1169_s1] sm:$0xff]  ;;  %v820_v2 = vld [vmem:[%s1169_s1 + $0x8] sm:$0xff]  ;;  %s1211_s13 = smov (!%p161_p3, %s770_s13), 1  ;;  %vm436_vm0 = vcmask 130048  }
   0xc   : > { %v822_v3 = vld [vmem:[%s1169_s1 + $0x18] sm:$0xff]  ;;  %579 = vmatpush.bf16.msra.mxu2 %v821_v0  ;;  %523 = vmatpush.bf16.msra.mxu1 %v819_v1  ;;  %s823_s22 = smul.u32 72, %s1211_s13  ;;  %vm300_vm3 = vsmask.f32 3328  ;;  %vm301_vm4 = vsmask.f32 7440 }
   0xd   : > { %456 = vmatpush.bf16.msra.mxu0 %v820_v2  ;;  %656 = vmatpush.bf16.msra.mxu3 %v822_v3  ;;  %vm956_vm15 = vmor %vm300_vm3, %vm301_vm4  ;;  %v1133_v63 = vld [vmem:[%s1170_s2] ss:$0 sm:$0xff]  ;;  %s818_s28 = sshll.u32 %s1211_s13, 5 }
   0xe   : > { %s887_s25 = scalar_lea.vmem %s1168_s0, %s823_s22  ;;  %s1140_s4 = scalar_lea.vmem %s1171_s3, %s818_s28 }
   0xf   : > { %v174_v4 = vld [vmem:[%s887_s25 + $0x8] sm:$0xf]  ;;  %v176_v5 = vld [vmem:[%s887_s25 + $0x10] sm:$0xf]  ;;  %v172_v6 = vld [vmem:[%s887_s25] sm:$0xf] }
  0x10   : > { %v192_v7 = vunpack.c.l.bf16 %v174_v4  ;;  %v194_v8 = vunpack.c.l.bf16 %v176_v5  ;;  %v190_v9 = vunpack.c.l.bf16 %v172_v6  ;;  %v173_v10 = vld [vmem:[%s887_s25 + $0x4] sm:$0x1]  ;;  %v175_v11 = vld [vmem:[%s887_s25 + $0xc] sm:$0x1]  ;;  %v895_v12 = vld [vmem:[%s887_s25 + $0x14] sm:$0x1] }
  0x11   : > { %v191_v13 = vunpack.c.l.bf16 %v173_v10  ;;  %v193_v14 = vunpack.c.l.bf16 %v175_v11  ;;  %v195_v15 = vunpack.c.l.bf16 %v895_v12  ;;  %v907_v20 = vld [vmem:[%s887_s25 + $0x18] sm:$0xf]  ;;  %v180_v57 = vld [vmem:[%s887_s25 + $0x20] sm:$0xf]  ;;  %v179_v62 = vld [vmem:[%s887_s25 + $0x1c] sm:$0x1] }
  0x12   : > { %vm898_vm1 = vcmp.ge.f32.partialorder %v192_v7, 0.0  ;;  %vm902_vm2 = vcmp.ge.f32.partialorder %v194_v8, 0.0  ;;  %v228_v18 = vmul.f32 0.20019531, %v192_v7  ;;  %v230_v19 = vmul.f32 0.20019531, %v194_v8  ;;  %v188_v16 = vld [vmem:[%s887_s25 + $0x40] sm:$0xf] }
  0x13   : > { %vm264_vm5 = vmpackc.low %vm898_vm1, %vm898_vm1  ;;  %vm912_vm6 = vcmp.ge.f32.partialorder %v190_v9, 0.0  ;;  %v226_v22 = vmul.f32 0.20019531, %v190_v9  ;;  %vm916_vm7 = vcmp.ge.f32.partialorder %v191_v13, 0.0  ;;  %vm920_vm8 = vcmp.ge.f32.partialorder %v193_v14, 0.0 }
  0x14   : > { %v246_v25 = vpack.c.bf16 %v228_v18, %v228_v18  ;;  %v248_v26 = vpack.c.bf16 %v230_v19, %v230_v19  ;;  %vm266_vm9 = vmpackc.low %vm902_vm2, %vm902_vm2  ;;  %v227_v27 = vmul.f32 0.20019531, %v191_v13  ;;  %v229_v28 = vmul.f32 0.20019531, %v193_v14  ;;  %v181_v13 = vld [vmem:[%s887_s25 + $0x24] sm:$0x1] }
  0x15   : > { %v244_v29 = vpack.c.bf16 %v226_v22, %v226_v22  ;;  %vm262_vm10 = vmpackc.low %vm912_vm6, %vm912_vm6  ;;  %vm930_vm11 = vcmp.ge.f32.partialorder %v195_v15, 0.0  ;;  %v231_v31 = vmul.f32 0.20019531, %v195_v15  ;;  %v196_v32 = vunpack.c.l.bf16 %v907_v20 }
  0x16   : > { %v282_v33 = vsel %vm264_vm5, %v174_v4, %v246_v25  ;;  %v935_v34 = vsel %vm266_vm9, %v176_v5, %v248_v26  ;;  %v245_v35 = vpack.c.bf16 %v227_v27, %v227_v27  ;;  %v247_v36 = vpack.c.bf16 %v229_v28, %v229_v28  ;;  %vm263_vm12 = vmpackc.low %vm916_vm7, %vm916_vm7 }
  0x17   : > { %v318_v37 = vshrl.u32 %v282_v33, 16  ;;  %v321_v38 = vshll.u32 %v282_v33, 16  ;;  %v332_v39 = vshrl.u32 %v935_v34, 16  ;;  %v335_v40 = vshll.u32 %v935_v34, 16  ;;  %vm265_vm13 = vmpackc.low %vm920_vm8, %vm920_vm8 }
  0x18   : > { %v487_v41 = vunpack.c.l.b16 %v282_v33  ;;  %v488_v42 = vunpack.c.l.b16 %v935_v34  ;;  %v280_v43 = vsel %vm262_vm10, %v172_v6, %v244_v29  ;;  %v281_v44 = vsel %vm263_vm12, %v173_v10, %v245_v35  ;;  %vm267_vm14 = vmpackc.low %vm930_vm11, %vm930_vm11 }
  0x19   : > { %v320_v45 = vrot.slane %v318_v37, 4  ;;  %v323_v46 = vrot.slane %v321_v38, 5  ;;  %v334_v47 = vrot.slane %v332_v39, 4  ;;  %v337_v48 = vrot.slane %v335_v40, 5  ;;  %v182_v39 = vld [vmem:[%s887_s25 + $0x28] sm:$0xf] }
  0x1a   : > { %v550_v49 = vpack.c.b16 %v488_v42, %v487_v41  ;;  %v304_v50 = vshrl.u32 %v280_v43, 16  ;;  %v307_v51 = vshll.u32 %v280_v43, 16  ;;  %v486_v52 = vunpack.c.l.b16 %v280_v43 }
  0x1b   : > { %v283_v53 = vsel %vm265_vm13, %v175_v11, %v247_v36  ;;  %v313_v54 = vshll.u32 %v281_v44, 16  ;;  %v324_v55 = vor.u32 %v323_v46, %v320_v45  ;;  %v249_v56 = vpack.c.bf16 %v231_v31, %v231_v31  ;;  %v184_v44 = vld [vmem:[%s887_s25 + $0x30] sm:$0xf] }
  0x1c   : > { %802 = vmatmul.msk.bf16.vlgmr.msra.gmra.mxu2 %vm436_vm0, %v550_v49  ;;  %v306_v58 = vrot.slane %v304_v50, 4  ;;  %v309_v59 = vrot.slane %v307_v51, 5  ;;  %v494_v60 = vpack.c.b16 %v487_v41, %v486_v52  ;;  %v327_v61 = vshll.u32 %v283_v53, 16  ;;  %v183_v49 = vld [vmem:[%s887_s25 + $0x2c] sm:$0x1] }
  0x1d   : > { %v315_v0 = vrot.slane %v313_v54, 5  ;;  %v325_v1 = vrot.slane %v324_v55, 4  ;;  %v285_v2 = vsel %vm267_vm14, %v895_v12, %v249_v56  ;;  %v338_v3 = vor.u32 %v337_v48, %v334_v47 }
  0x1e   : > { %792 = vmatmul.msk.bf16.vlgmr.msra.gmra.mxu1 %vm436_vm0, %v494_v60  ;;  %v310_v4 = vor.u32 %v309_v59, %v306_v58  ;;  %v329_v5 = vrot.slane %v327_v61, 5  ;;  %v341_v6 = vshll.u32 %v285_v2, 16  ;;  %v198_v7 = vunpack.c.l.bf16 %v180_v57 }
  0x1f   : > { %v339_v8 = vrot.slane %v338_v3, 4  ;;  %vm962_vm1 = vcmp.ge.f32.partialorder %v196_v32, 0.0  ;;  %v232_v10 = vmul.f32 0.20019531, %v196_v32  ;;  %v197_v11 = vunpack.c.l.bf16 %v179_v62 }
  0x20   : > { %v311_v14 = vrot.slane %v310_v4, 4  ;;  %v330_v15 = vsel %vm956_vm15, %v325_v1, %v329_v5  ;;  %v343_v12 = vrot.slane %v341_v6, 5  ;;  %vm969_vm2 = vcmp.ge.f32.partialorder %v198_v7, 0.0  ;;  %vm268_vm3 = vmpackc.low %vm962_vm1, %vm962_vm1  ;;  %v1024_v1 = vld [vmem:[%s887_s25 + $0x34] sm:$0x1] }
  0x21   : > { %v419_v17 = vunpack.c.l.b16 %v330_v15  ;;  %v234_v18 = vmul.f32 0.20019531, %v198_v7  ;;  %v250_v19 = vpack.c.bf16 %v232_v10, %v232_v10  ;;  %vm976_vm4 = vcmp.ge.f32.partialorder %v197_v11, 0.0  ;;  %vm270_vm5 = vmpackc.low %vm969_vm2, %vm969_vm2  ;;  %v186_v6 = vld [vmem:[%s887_s25 + $0x38] sm:$0xf] }
  0x22   : > { %v316_v22 = vsel %vm956_vm15, %v311_v14, %v315_v0  ;;  %v344_v23 = vsel %vm956_vm15, %v339_v8, %v343_v12  ;;  %v233_v24 = vmul.f32 0.20019531, %v197_v11  ;;  %v199_v25 = vunpack.c.l.bf16 %v181_v13  ;;  %vm269_vm6 = vmpackc.low %vm976_vm4, %vm976_vm4 }
  0x23   : > { %v418_v26 = vunpack.c.l.b16 %v316_v22  ;;  %v987_v27 = vunpack.c.l.b16 %v344_v23  ;;  %v252_v28 = vpack.c.bf16 %v234_v18, %v234_v18  ;;  %v286_v29 = vsel %vm268_vm3, %v907_v20, %v250_v19 }
  0x24   : > { %v346_v30 = vshrl.u32 %v286_v29, 16  ;;  %v349_v31 = vshll.u32 %v286_v29, 16  ;;  %v489_v32 = vunpack.c.l.b16 %v286_v29  ;;  %v251_v33 = vpack.c.bf16 %v233_v24, %v233_v24 }
  0x25   : > { %v426_v35 = vpack.c.b16 %v419_v17, %v418_v26  ;;  %v627_v36 = vpack.c.b16 %v987_v27, %v419_v17  ;;  %v994_v37 = vsel %vm270_vm5, %v180_v57, %v252_v28  ;;  %vm996_vm7 = vcmp.ge.f32.partialorder %v199_v25, 0.0 }
  0x26   : > { %v348_v20 = vrot.slane %v346_v30, 4  ;;  %v351_v40 = vrot.slane %v349_v31, 5  ;;  %v360_v41 = vshrl.u32 %v994_v37, 16  ;;  %v363_v43 = vshll.u32 %v994_v37, 16  ;;  %vm271_vm8 = vmpackc.low %vm996_vm7, %vm996_vm7 }
  0x27   : > { %784 = vmatmul.msk.bf16.vlgmr.msra.gmra.mxu0 %vm436_vm0, %v426_v35  ;;  %812 = vmatmul.msk.bf16.vlgmr.msra.gmra.mxu3 %vm436_vm0, %v627_v36  ;;  %v490_v45 = vunpack.c.l.b16 %v994_v37  ;;  %v495_v46 = vpack.c.b16 %v489_v32, %v488_v42  ;;  %v287_v47 = vsel %vm269_vm6, %v179_v62, %v251_v33  ;;  %v235_v48 = vmul.f32 0.20019531, %v199_v25 }
  0x28   : > { %v362_v50 = vrot.slane %v360_v41, 4  ;;  %v365_v51 = vrot.slane %v363_v43, 5  ;;  %v352_v52 = vor.u32 %v351_v40, %v348_v20  ;;  %v355_v53 = vshll.u32 %v287_v47, 16  ;;  %v187_v40 = vld [vmem:[%s887_s25 + $0x3c] sm:$0x1] }
  0x29   : > { %v551_v54 = vpack.c.b16 %v490_v45, %v489_v32  ;;  %v253_v55 = vpack.c.bf16 %v235_v48, %v235_v48  ;;  %v200_v56 = vunpack.c.l.bf16 %v182_v39  ;;  %v202_v57 = vunpack.c.l.bf16 %v184_v44 }
  0x2a   : > { %v353_v34 = vrot.slane %v352_v52, 4  ;;  %v357_v42 = vrot.slane %v355_v53, 5  ;;  %v366_v58 = vor.u32 %v365_v51, %v362_v50  ;;  %v201_v59 = vunpack.c.l.bf16 %v183_v49 }
  0x2b   : > { %v289_v60 = vsel %vm271_vm8, %v181_v13, %v253_v55  ;;  %vm1015_vm9 = vcmp.ge.f32.partialorder %v200_v56, 0.0  ;;  %vm1019_vm10 = vcmp.ge.f32.partialorder %v202_v57, 0.0  ;;  %v236_v0 = vmul.f32 0.20019531, %v200_v56  ;;  %v189_v56 = vld [vmem:[%s887_s25 + $0x44] sm:$0x1] }
  0x2c   : > { %803 = vmatmul.msk.bf16.gmra.mxu2 %vm436_vm0, %v551_v54  ;;  %v358_v2 = vsel %vm956_vm15, %v353_v34, %v357_v42  ;;  %v367_v3 = vrot.slane %v366_v58, 4  ;;  %v369_v4 = vshll.u32 %v289_v60, 16  ;;  %v238_v5 = vmul.f32 0.20019531, %v202_v57  ;;  %vm272_vm11 = vmpackc.low %vm1015_vm9, %vm1015_vm9 }
  0x2d   : > { %v421_v7 = vunpack.c.l.b16 %v358_v2  ;;  %v254_v8 = vpack.c.bf16 %v236_v0, %v236_v0  ;;  %vm274_vm12 = vmpackc.low %vm1019_vm10, %vm1019_vm10  ;;  %vm1036_vm13 = vcmp.ge.f32.partialorder %v201_v59, 0.0  ;;  %v237_v10 = vmul.f32 0.20019531, %v201_v59 }
  0x2e   : > { %793 = vmatmul.msk.bf16.gmra.mxu1 %vm436_vm0, %v495_v46  ;;  %v371_v11 = vrot.slane %v369_v4, 5  ;;  %v256_v13 = vpack.c.bf16 %v238_v5, %v238_v5  ;;  %vm273_vm14 = vmpackc.low %vm1036_vm13, %vm1036_vm13  ;;  %v203_v12 = vunpack.c.l.bf16 %v1024_v1  ;;  %v204_v17 = vunpack.c.l.bf16 %v186_v6 }
  0x2f   : > { %v290_v14 = vsel %vm272_vm11, %v182_v39, %v254_v8  ;;  %v255_v15 = vpack.c.bf16 %v237_v10, %v237_v10  ;;  %v427_v23 = vpack.c.b16 %v421_v7, %v987_v27  ;;  %v206_v31 = vunpack.c.l.bf16 %v188_v16 }
  0x30   : > { %v372_v18 = vsel %vm956_vm15, %v367_v3, %v371_v11  ;;  %v1048_v19 = vsel %vm274_vm12, %v184_v44, %v256_v13  ;;  %v374_v21 = vshrl.u32 %v290_v14, 16  ;;  %v377_v22 = vshll.u32 %v290_v14, 16 }
  0x31   : > { %v1051_v24 = vunpack.c.l.b16 %v372_v18  ;;  %v388_v25 = vshrl.u32 %v1048_v19, 16  ;;  %v391_v26 = vshll.u32 %v1048_v19, 16  ;;  %v291_v30 = vsel %vm273_vm14, %v183_v49, %v255_v15 }
  0x32   : > { %v376_v28 = vrot.slane %v374_v21, 4  ;;  %v379_v29 = vrot.slane %v377_v22, 5  ;;  %v491_v36 = vunpack.c.l.b16 %v290_v14  ;;  %v492_v38 = vunpack.c.l.b16 %v1048_v19 }
  0x33   : > { %v628_v32 = vpack.c.b16 %v1051_v24, %v421_v7  ;;  %v390_v33 = vrot.slane %v388_v25, 4  ;;  %v393_v35 = vrot.slane %v391_v26, 5  ;;  %v383_v27 = vshll.u32 %v291_v30, 16 }
  0x34   : > { %v380_v39 = vor.u32 %v379_v29, %v376_v28  ;;  %vm1057_vm1 = vcmp.ge.f32.partialorder %v203_v12, 0.0  ;;  %v239_v41 = vmul.f32 0.20019531, %v203_v12  ;;  %vm1065_vm3 = vcmp.ge.f32.partialorder %v204_v17, 0.0 }
  0x35   : > { %vm275_vm2 = vmpackc.low %vm1057_vm1, %vm1057_vm1  ;;  %vm1069_vm4 = vcmp.ge.f32.partialorder %v206_v31, 0.0  ;;  %v394_v46 = vor.u32 %v393_v35, %v390_v33  ;;  %v240_v47 = vmul.f32 0.20019531, %v204_v17  ;;  %v242_v48 = vmul.f32 0.20019531, %v206_v31 }
  0x36   : > { %vm276_vm5 = vmpackc.low %vm1065_vm3, %vm1065_vm3  ;;  %v381_v49 = vrot.slane %v380_v39, 4  ;;  %v385_v50 = vrot.slane %v383_v27, 5  ;;  %v257_v51 = vpack.c.bf16 %v239_v41, %v239_v41  ;;  %v205_v52 = vunpack.c.l.bf16 %v187_v40 }
  0x37   : > { %785 = vmatmul.msk.bf16.gmra.mxu0 %vm436_vm0, %v427_v23  ;;  %813 = vmatmul.msk.bf16.gmra.mxu3 %vm436_vm0, %v628_v32  ;;  %vm278_vm6 = vmpackc.low %vm1069_vm4, %vm1069_vm4  ;;  %v552_v53 = vpack.c.b16 %v492_v38, %v491_v36  ;;  %v258_v54 = vpack.c.bf16 %v240_v47, %v240_v47  ;;  %v260_v55 = vpack.c.bf16 %v242_v48, %v242_v48  ;;  %v395_v58 = vrot.slane %v394_v46, 4 }
  0x38   : > { %v496_v57 = vpack.c.b16 %v491_v36, %v490_v45  ;;  %v293_v34 = vsel %vm275_vm2, %v1024_v1, %v257_v51  ;;  %v241_v42 = vmul.f32 0.20019531, %v205_v52  ;;  %v386_v37 = vsel %vm956_vm15, %v381_v49, %v385_v50 }
  0x39   : > { %v397_v59 = vshll.u32 %v293_v34, 16  ;;  %v294_v60 = vsel %vm276_vm5, %v186_v6, %v258_v54  ;;  %v296_v61 = vsel %vm278_vm6, %v188_v16, %v260_v55  ;;  %vm1099_vm7 = vcmp.ge.f32.partialorder %v205_v52, 0.0 }
  0x3a   : > { %v402_v45 = vshrl.u32 %v294_v60, 16  ;;  %v207_v0 = vunpack.c.l.bf16 %v189_v56  ;;  %v405_v2 = vshll.u32 %v294_v60, 16  ;;  %v610_v3 = vshrl.u32 %v296_v61, 16  ;;  %vm277_vm9 = vmpackc.low %vm1099_vm7, %vm1099_vm7 }
  0x3b   : > { %v399_v1 = vrot.slane %v397_v59, 5  ;;  %v613_v4 = vshll.u32 %v296_v61, 16  ;;  %v259_v5 = vpack.c.bf16 %v241_v42, %v241_v42  ;;  %v423_v6 = vunpack.c.l.b16 %v386_v37 }
  0x3c   : > { %804 = vmatmul.msk.bf16.gmra.mxu2 %vm436_vm0, %v552_v53  ;;  %vm1104_vm8 = vcmp.ge.f32.partialorder %v207_v0, 0.0  ;;  %v243_v10 = vmul.f32 0.20019531, %v207_v0  ;;  %v404_v11 = vrot.slane %v402_v45, 4  ;;  %v407_v13 = vrot.slane %v405_v2, 5 }
  0x3d   : > { %v400_v8 = vsel %vm956_vm15, %v395_v58, %v399_v1  ;;  %v612_v14 = vrot.slane %v610_v3, 4  ;;  %v615_v15 = vrot.slane %v613_v4, 5  ;;  %vm279_vm10 = vmpackc.low %vm1104_vm8, %vm1104_vm8  ;;  %v295_v12 = vsel %vm277_vm9, %v187_v40, %v259_v5 }
  0x3e   : > { %794 = vmatmul.msk.bf16.gmra.mxu1 %vm436_vm0, %v496_v57  ;;  %v424_v9 = vunpack.c.l.b16 %v400_v8  ;;  %v261_v16 = vpack.c.bf16 %v243_v10, %v243_v10  ;;  %v428_v17 = vpack.c.b16 %v423_v6, %v1051_v24  ;;  %v493_v21 = vunpack.c.l.b16 %v294_v60 }
  0x3f   : > { %v549_v22 = vunpack.c.l.b16 %v296_v61  ;;  %v408_v25 = vor.u32 %v407_v13, %v404_v11  ;;  %v411_v26 = vshll.u32 %v295_v12, 16  ;;  %v616_v28 = vor.u32 %v615_v15, %v612_v14 }
  0x40   : > { %v629_v18 = vpack.c.b16 %v424_v9, %v423_v6  ;;  %v297_v23 = vsel %vm279_vm10, %v189_v56, %v261_v16  ;;  %v497_v24 = vpack.c.b16 %v493_v21, %v492_v38 }
  0x41   : > { %v619_v29 = vshll.u32 %v297_v23, 16  ;;  %v553_v30 = vpack.c.b16 %v549_v22, %v493_v21  ;;  %v409_v31 = vrot.slane %v408_v25, 4  ;;  %v413_v32 = vrot.slane %v411_v26, 5 }
  0x42   : > { %v617_v33 = vrot.slane %v616_v28, 4 }
  0x43   : > { %v621_v35 = vrot.slane %v619_v29, 5  ;;  %v414_v36 = vsel %vm956_vm15, %v409_v31, %v413_v32 }
  0x44   : > { %v425_v27 = vunpack.c.l.b16 %v414_v36 }
  0x45   : > { %v622_v39 = vsel %vm956_vm15, %v617_v33, %v621_v35 }
  0x46   : > { %v626_v20 = vunpack.c.l.b16 %v622_v39  ;;  %v429_v40 = vpack.c.b16 %v425_v27, %v424_v9 }
  0x47   : > { %786 = vmatmul.msk.bf16.gmra.mxu0 %vm436_vm0, %v428_v17  ;;  %814 = vmatmul.msk.bf16.gmra.mxu3 %vm436_vm0, %v629_v18 }
  0x48   : > { %v630_v41 = vpack.c.b16 %v626_v20, %v425_v27 }
  0x4c   : > { %805 = vmatmul.msk.bf16.gmra.mxu2 %vm436_vm0, %v553_v30 }
  0x4e   : > { %795 = vmatmul.msk.bf16.gmra.mxu1 %vm436_vm0, %v497_v24 }
  0x57   : > { %787 = vmatmul.msk.bf16.gmra.mxu0 %vm436_vm0, %v429_v40  ;;  %815 = vmatmul.msk.bf16.gmra.mxu3 %vm436_vm0, %v630_v41  ;;  %vm706_vm0 = vcmask 60416  }
  0x9b   : > { %v525_v19 = vpop.f32.mrf.mxu1 }
  0x9f   : > { %v581_v38 = vpop.f32.mrf.mxu2 }
  0xa3   : > { %v527_v43 = vpop.f32.mrf.mxu1 }
  0xa4   : > { %v458_v44 = vpop.f32.mrf.mxu0 }
  0xa5   : > { %v526_v46 = vadd.f32 %v525_v19, %v458_v44 }
  0xa7   : > { %v583_v47 = vpop.f32.mrf.mxu2  ;;  %v601_v48 = vadd.f32 %v581_v38, %v526_v46 }
  0xaa   : > { %v658_v49 = vpop.f32.mrf.mxu3 }
  0xab   : > { %v678_v50 = vadd.f32 %v658_v49, %v601_v48  ;;  %v530_v51 = vpop.f32.mrf.mxu1 }
  0xac   : > { %v460_v52 = vpop.f32.mrf.mxu0 }
  0xad   : > { %v690_v53 = vadd.f32 %v1133_v63, %v678_v50  ;;  %v528_v54 = vadd.f32 %v527_v43, %v460_v52 }
  0xaf   : > { %v698_v55 = vpack.c.bf16 %v690_v53, %v690_v53  ;;  %v586_v56 = vpop.f32.mrf.mxu2  ;;  %v602_v57 = vadd.f32 %v583_v47, %v528_v54 }
  0xb1   : > { %707 = vst.msk [vmem:[%s1140_s4] sm:$0xf] %vm706_vm0, %v698_v55 }
  0xb2   : > { %v660_v34 = vpop.f32.mrf.mxu3 }
  0xb3   : > { %v679_v42 = vadd.f32 %v660_v34, %v602_v57  ;;  %v532_v59 = vpop.f32.mrf.mxu1 }
  0xb4   : > { %v463_v58 = vpop.f32.mrf.mxu0 }
  0xb5   : > { %v691_v60 = vadd.f32 %v1133_v63, %v679_v42  ;;  %v531_v61 = vadd.f32 %v530_v51, %v463_v58 }
  0xb7   : > { %v699_v37 = vpack.c.bf16 %v691_v60, %v691_v60  ;;  %v603_v45 = vadd.f32 %v586_v56, %v531_v61  ;;  %v588_v62 = vpop.f32.mrf.mxu2 }
  0xb9   : > { %708 = vst.msk [vmem:[%s1140_s4 + $0x4] sm:$0xf] %vm706_vm0, %v699_v37 }
  0xba   : > { %v663_v0 = vpop.f32.mrf.mxu3 }
  0xbb   : > { %v680_v1 = vadd.f32 %v663_v0, %v603_v45  ;;  %v535_v5 = vpop.f32.mrf.mxu1 }
  0xbc   : > { %v465_v2 = vpop.f32.mrf.mxu0 }
  0xbd   : > { %v692_v3 = vadd.f32 %v1133_v63, %v680_v1  ;;  %v533_v4 = vadd.f32 %v532_v59, %v465_v2 }
  0xbf   : > { %v700_v7 = vpack.c.bf16 %v692_v3, %v692_v3  ;;  %v604_v6 = vadd.f32 %v588_v62, %v533_v4  ;;  %v591_v8 = vpop.f32.mrf.mxu2 }
  0xc1   : > { %709 = vst.msk [vmem:[%s1140_s4 + $0x8] sm:$0xf] %vm706_vm0, %v700_v7 }
  0xc2   : > { %v665_v9 = vpop.f32.mrf.mxu3 }
  0xc3   : > { %v681_v10 = vadd.f32 %v665_v9, %v604_v6  ;;  %v537_v16 = vpop.f32.mrf.mxu1 }
  0xc4   : > { %v468_v11 = vpop.f32.mrf.mxu0 }
  0xc5   : > { %v693_v13 = vadd.f32 %v1133_v63, %v681_v10  ;;  %v536_v14 = vadd.f32 %v535_v5, %v468_v11 }
  0xc7   : > { %v701_v15 = vpack.c.bf16 %v693_v13, %v693_v13  ;;  %v605_v12 = vadd.f32 %v591_v8, %v536_v14  ;;  %v593_v21 = vpop.f32.mrf.mxu2 }
  0xc9   : > { %710 = vst.msk [vmem:[%s1140_s4 + $0xc] sm:$0xf] %vm706_vm0, %v701_v15 }
  0xca   : > { %v668_v17 = vpop.f32.mrf.mxu3 }
  0xcb   : > { %v682_v18 = vadd.f32 %v668_v17, %v605_v12  ;;  %v540_v29 = vpop.f32.mrf.mxu1 }
  0xcc   : > { %v470_v22 = vpop.f32.mrf.mxu0 }
  0xcd   : > { %v694_v23 = vadd.f32 %v1133_v63, %v682_v18  ;;  %v538_v25 = vadd.f32 %v537_v16, %v470_v22 }
  0xcf   : > { %v702_v26 = vpack.c.bf16 %v694_v23, %v694_v23  ;;  %v606_v28 = vadd.f32 %v593_v21, %v538_v25  ;;  %v596_v24 = vpop.f32.mrf.mxu2 }
  0xd1   : > { %711 = vst.msk [vmem:[%s1140_s4 + $0x10] sm:$0xf] %vm706_vm0, %v702_v26 }
  0xd2   : > { %v670_v30 = vpop.f32.mrf.mxu3 }
  0xd3   : > { %v683_v31 = vadd.f32 %v670_v30, %v606_v28  ;;  %v542_v40 = vpop.f32.mrf.mxu1 }
  0xd4   : > { %v473_v32 = vpop.f32.mrf.mxu0 }
  0xd5   : > { %v695_v33 = vadd.f32 %v1133_v63, %v683_v31  ;;  %v541_v35 = vadd.f32 %v540_v29, %v473_v32 }
  0xd7   : > { %v703_v36 = vpack.c.bf16 %v695_v33, %v695_v33  ;;  %v607_v39 = vadd.f32 %v596_v24, %v541_v35  ;;  %v598_v44 = vpop.f32.mrf.mxu2 }
  0xd9   : > { %712 = vst.msk [vmem:[%s1140_s4 + $0x14] sm:$0xf] %vm706_vm0, %v703_v36 }
  0xda   : > { %v673_v27 = vpop.f32.mrf.mxu3 }
  0xdb   : > { %v684_v20 = vadd.f32 %v673_v27, %v607_v39 }
  0xdc   : > { %v475_v41 = vpop.f32.mrf.mxu0 }
  0xdd   : > { %v696_v19 = vadd.f32 %v1133_v63, %v684_v20  ;;  %v543_v38 = vadd.f32 %v542_v40, %v475_v41 }
  0xdf   : > { %v704_v43 = vpack.c.bf16 %v696_v19, %v696_v19  ;;  %v608_v46 = vadd.f32 %v598_v44, %v543_v38 }
  0xe1   : > { %713 = vst.msk [vmem:[%s1140_s4 + $0x18] sm:$0xf] %vm706_vm0, %v704_v43 }
  0xe2   : > { %v675_v47 = vpop.f32.mrf.mxu3 }
  0xe3   : > { %v685_v48 = vadd.f32 %v675_v47, %v608_v46 }
  0xe5   : > { %v697_v49 = vadd.f32 %v1133_v63, %v685_v48 }
  0xe7   : > { %v705_v50 = vpack.c.bf16 %v697_v49, %v697_v49 }
  0xe9   : > { %714 = vst.msk [vmem:[%s1140_s4 + $0x1c] sm:$0xf] %vm706_vm0, %v705_v50 }
  0xea PF: > { %s13_s12 = sadd.s32 1, %s839_s12  }
  0xeb   : > { %p10_p4 = scmp.ge.s32.totalorder %s13_s12, 4  }
  0xed   :  { %12 = sbr.rel (!%p10_p4) target bundleno = 1 (0x1), region = 65 }

// kernel: unet_block_innermost.3
= control target key start
LH: loop header
LB: loop body
LE: loop exit
PB: predicated region body
PF: predicated region fallthrough
CT: control target
= control target key end

     0   :  { %s3256_s9 = smov 0   ;;  %s4877_s0 = inlined_call_operand.vmem [shape: bf16[2,8,8,8], index: 0, kind: input, shape index: {}]   ;;  %s4878_s1 = inlined_call_operand.vmem [shape: bf16[9,4,8,4], index: 1, kind: input, shape index: {}]   ;;  %s4879_s2 = inlined_call_operand.vmem [shape: f32[2,4,8,8,4], index: 2, kind: output, shape index: {}]  }
   0x1 LB: > { %s2898_s10 = sadd.s32 4294967295, %s3237_s9   ;;  %p2902_p0 = scmp.ge.s32.totalorder %s3237_s9, 1  ;;  %s3237_s9 = sphi %s3256_s9, %s12_s9  }
   0x2   : > { %p112_p1 = scmp.lt.s32.totalorder %s3237_s9, 3 }
   0x4   : > { %p113_p2 = pnand %p2902_p0, %p112_p1 }
   0x5   : > { %p134_p3 = scmp.lt.s32.totalorder (!%p113_p2), %s2898_s10, 1 }
   0x6   : > { %116 = sbr.rel (%p113_p2) target bundleno = 836 (0x344), region = 28 }
   0xb   : > { %v342_v0 = vld [vmem:[%s4878_s1] sm:$0xf]  ;;  %vm499_vm0 = vcmask 1043456   ;;  %v2907_v1 = vld [vmem:[%s4878_s1 + $0x4] sm:$0xf]  ;;  %vm145_vm1 = vcmask 60416  }
   0xc   : > { %v565_v2 = vsel %vm499_vm0, %v342_v0, 0  ;;  %v631_v3 = vsel %vm499_vm0, %v2907_v1, 0  ;;  %v2910_v4 = vld [vmem:[%s4878_s1 + $0x10] sm:$0xf]  ;;  %s4889_s10 = smov (!%p134_p3, %s2898_s10), 1  ;;  %v3239_v5 = vmov 0  }
   0xd   : > { %574 = vmatpush.bf16.msra.mxu1 %v565_v2  ;;  %640 = vmatpush.bf16.msra.mxu3 %v631_v3  ;;  %146 = vst.msk [vmem:[#allocation2] sm:$0xf] %vm145_vm1, %v3239_v5  ;;  %v501_v6 = vsel %vm499_vm0, %v2910_v4, 0  ;;  %v2935_v7 = vld [vmem:[%s4878_s1 + $0x14] sm:$0xf]  ;;  %s3184_s19 = sshll.u32 %s4889_s10, 5 }
   0xe   : > { %149 = vst.msk [vmem:[#allocation2 + $0x8] sm:$0xf] %vm145_vm1, %v3239_v5  ;;  %510 = vmatpush.bf16.msra.mxu0 %v501_v6  ;;  %v599_v8 = vsel %vm499_vm0, %v2935_v7, 0  ;;  %s3292_s22 = scalar_lea.vmem %s4877_s0, %s3184_s19  ;;  %vm281_vm2 = vsmask.f32 7938  ;;  %vm147_vm3 = vcmask 57344  }
   0xf   : > { %151 = vst.msk [vmem:[#allocation2 + $0x10] sm:$0xf] %vm145_vm1, %v3239_v5  ;;  %608 = vmatpush.bf16.msra.mxu2 %v599_v8  ;;  %v3199_v9 = vld [vmem:[%s3292_s22] sm:$0xff]   ;;  %v3300_v10 = vld [vmem:[%s3292_s22 + $0x8] sm:$0xff]   ;;  %vm287_vm4 = vsmask.f32 256  ;;  %vm3341_vm5 = vmand %vm145_vm1, %vm281_vm2 }
  0x10   : > { %153 = vst.msk [vmem:[#allocation2 + $0x18] sm:$0xf] %vm145_vm1, %v3239_v5  ;;  %v3200_v11 = vunpack.c.l.bf16 %v3199_v9  ;;  %v3201_v12 = vunpack.c.h.bf16 %v3199_v9  ;;  %v3204_v13 = vunpack.c.l.bf16 %v3300_v10  ;;  %v2953_v20 = vld [vmem:[%s4878_s1 + $0x1c] sm:$0xf]  ;;  %v2909_v23 = vld [vmem:[%s4878_s1 + $0xc] sm:$0xf]  ;;  %v3205_v46 = vunpack.c.h.bf16 %v3300_v10  ;;  %vm3353_vm7 = vmand %vm147_vm3, %vm287_vm4 }
  0x11   : > { %155 = vst.msk [vmem:[#allocation2 + $0x20] sm:$0xf] %vm145_vm1, %v3239_v5  ;;  %v731_v22 = vsel %vm499_vm0, %v2953_v20, 0  ;;  %v3325_v29 = vld [vmem:[%s3292_s22 + $0x10] sm:$0xff]   ;;  %v763_v31 = vsel %vm499_vm0, %v2909_v23, 0  ;;  %vm486_vm9 = vcmask 64512  }
  0x12   : > { %157 = vst.msk [vmem:[#allocation2 + $0x28] sm:$0xf] %vm145_vm1, %v3239_v5  ;;  %v183_v14 = vmax.f32 %v3200_v11, 0.0  ;;  %v184_v15 = vmax.f32 %v3201_v12, 0.0  ;;  %v185_v24 = vmax.f32 %v3204_v13, 0.0  ;;  %772 = vmatpush.bf16.msrb.mxu3 %v763_v31  ;;  %v3208_v52 = vunpack.c.l.bf16 %v3325_v29  ;;  %s3185_s7 = sshll.u32 %s4889_s10, 8 }
  0x13   : > { %159 = vst.msk [vmem:[#allocation2 + $0x30] sm:$0xf] %vm145_vm1, %v3239_v5  ;;  %740 = vmatpush.bf16.msrb.mxu2 %v731_v22  ;;  %v2944_v32 = vld [vmem:[%s4878_s1 + $0x18] sm:$0xf]  ;;  %v2908_v37 = vld [vmem:[%s4878_s1 + $0x8] sm:$0xf]  ;;  %v3209_v7 = vunpack.c.h.bf16 %v3325_v29  ;;  %s4802_s11 = scalar_lea.vmem %s4879_s2, %s3185_s7 }
  0x14   : > { %161 = vst.msk [vmem:[#allocation2 + $0x38] sm:$0xf] %vm145_vm1, %v3239_v5  ;;  %v334_v16 = vld [vmem:[#allocation2] sm:$0xf]  ;;  %v191_v17 = vpack.c.bf16 %v183_v14, %v183_v14  ;;  %v192_v21 = vpack.c.bf16 %v184_v15, %v184_v15  ;;  %v193_v33 = vpack.c.bf16 %v185_v24, %v185_v24  ;;  %v665_v36 = vsel %vm499_vm0, %v2944_v32, 0  ;;  %v3383_v14 = vld [vmem:[%s3292_s22 + $0x18] sm:$0xff]  }
  0x15   : > { %163 = vst.msk [vmem:[#allocation2 + $0x40] sm:$0xf] %vm145_vm1, %v3239_v5  ;;  %v361_v18 = vshrl.u32 %v334_v16, 16  ;;  %v364_v19 = vshll.u32 %v334_v16, 16  ;;  %v283_v30 = vld [vmem:[#allocation2 + $0x8] sm:$0xf]  ;;  %674 = vmatpush.bf16.msrb.mxu0 %v665_v36 }
  0x16   : > { %165 = vst.msk [vmem:[#allocation2 + $0x48] sm:$0xf] %vm145_vm1, %v3239_v5  ;;  %v200_v25 = vshrl.u32 %v191_v17, 16  ;;  %v203_v26 = vshll.u32 %v191_v17, 16  ;;  %v208_v34 = vshrl.u32 %v192_v21, 16  ;;  %v697_v39 = vsel %vm499_vm0, %v2908_v37, 0 }
  0x17   : > { %148 = vst.msk [vmem:[#allocation2 + $0x4] sm:$0x1] %vm147_vm3, %v3239_v5  ;;  %v363_v27 = vrot.slane %v361_v18, 4  ;;  %v366_v28 = vrot.slane %v364_v19, 5  ;;  %v211_v41 = vshll.u32 %v192_v21, 16  ;;  %v216_v42 = vshrl.u32 %v193_v33, 16  ;;  %706 = vmatpush.bf16.msrb.mxu1 %v697_v39 }
  0x18   : > { %150 = vst.msk [vmem:[#allocation2 + $0xc] sm:$0x1] %vm147_vm3, %v3239_v5  ;;  %v202_v35 = vrot.slane %v200_v25, 7  ;;  %v210_v40 = vrot.slane %v208_v34, 7  ;;  %vm357_vm6 = vsmask.f32 3328  ;;  %v3212_v18 = vunpack.c.l.bf16 %v3383_v14 }
  0x19   : > { %152 = vst.msk [vmem:[#allocation2 + $0x14] sm:$0x1] %vm147_vm3, %v3239_v5  ;;  %v219_v45 = vshll.u32 %v193_v33, 16  ;;  %v218_v50 = vrot.slane %v216_v42, 7  ;;  %v292_v51 = vld [vmem:[#allocation2 + $0x10] sm:$0xf]  ;;  %v367_v57 = vor.u32 %v366_v28, %v363_v27 }
  0x1a   : > { %154 = vst.msk [vmem:[#allocation2 + $0x1c] sm:$0x1] %vm147_vm3, %v3239_v5  ;;  %v205_v43 = vor.u32 %v203_v26, %v202_v35  ;;  %v206_v44 = vrot.slane %v202_v35, 4  ;;  %v213_v48 = vor.u32 %v211_v41, %v210_v40  ;;  %v214_v49 = vrot.slane %v210_v40, 4  ;;  %v298_v55 = vld [vmem:[#allocation2 + $0x18] sm:$0xf] }
  0x1b   : > { %156 = vst.msk [vmem:[#allocation2 + $0x24] sm:$0x1] %vm147_vm3, %v3239_v5  ;;  %v221_v59 = vor.u32 %v219_v45, %v218_v50  ;;  %v222_v61 = vrot.slane %v218_v50, 4  ;;  %v186_v0 = vmax.f32 %v3205_v46, 0.0  ;;  %v187_v3 = vmax.f32 %v3208_v52, 0.0 }
  0x1c   : > { %158 = vst.msk [vmem:[#allocation2 + $0x2c] sm:$0x1] %vm147_vm3, %v3239_v5  ;;  %v284_v53 = vsel %vm3341_vm5, %v205_v43, %v283_v30  ;;  %v293_v62 = vsel %vm3341_vm5, %v213_v48, %v292_v51  ;;  %vm358_vm8 = vsmask.f32 7440  ;;  %v2917_v8 = vld [vmem:[#allocation2] sm:$0xf] }
  0x1d   : > { %160 = vst.msk [vmem:[#allocation2 + $0x34] sm:$0x1] %vm147_vm3, %v3239_v5  ;;  %v299_v1 = vsel %vm3341_vm5, %v221_v59, %v298_v55  ;;  %v194_v6 = vpack.c.bf16 %v186_v0, %v186_v0  ;;  %v368_v9 = vrot.slane %v367_v57, 4  ;;  %v195_v11 = vpack.c.bf16 %v187_v3, %v187_v3  ;;  %vm3392_vm10 = vmor %vm357_vm6, %vm358_vm8  ;;  %v304_v32 = vld [vmem:[#allocation2 + $0x20] sm:$0xf] }
  0x1e   : > { %v3362_v54 = vld [vmem:[#allocation2 + $0x4] sm:$0x1]  ;;  %162 = vst.msk [vmem:[#allocation2 + $0x3c] sm:$0x1] %vm147_vm3, %v3239_v5  ;;  %v189_v33 = vmax.f32 %v3212_v18, 0.0  ;;  %vm818_vm11 = vcmask 1042432  }
  0x1f   : > { %285 = vst [vmem:[#allocation2 + $0x8] sm:$0xf] %v284_v53  ;;  %v289_v56 = vld [vmem:[#allocation2 + $0xc] sm:$0x1]  ;;  %v370_v58 = vshll.u32 %v3362_v54, 16  ;;  %v224_v13 = vshrl.u32 %v194_v6, 16 }
  0x20   : > { %v290_v60 = vsel %vm3353_vm7, %v206_v44, %v289_v56  ;;  %164 = vst.msk [vmem:[#allocation2 + $0x44] sm:$0x1] %vm147_vm3, %v3239_v5  ;;  %v295_v63 = vld [vmem:[#allocation2 + $0x14] sm:$0x1]  ;;  %v227_v15 = vshll.u32 %v194_v6, 16  ;;  %v232_v16 = vshrl.u32 %v195_v11, 16  ;;  %v197_v59 = vpack.c.bf16 %v189_v33, %v189_v33 }
  0x21   : > { %291 = vst [vmem:[#allocation2 + $0xc] sm:$0x1] %v290_v60  ;;  %v301_v2 = vld [vmem:[#allocation2 + $0x1c] sm:$0x1]  ;;  %v296_v4 = vsel %vm3353_vm7, %v214_v49, %v295_v63  ;;  %v372_v12 = vrot.slane %v370_v58, 5  ;;  %v235_v17 = vshll.u32 %v195_v11, 16 }
  0x22   : > { %166 = vst.msk [vmem:[#allocation2 + $0x4c] sm:$0x1] %vm147_vm3, %v3239_v5  ;;  %v302_v10 = vsel %vm3353_vm7, %v222_v61, %v301_v2  ;;  %v188_v5 = vmax.f32 %v3209_v7, 0.0  ;;  %v226_v26 = vrot.slane %v224_v13, 7  ;;  %v234_v28 = vrot.slane %v232_v16, 7 }
  0x23   : > { %294 = vst [vmem:[#allocation2 + $0x10] sm:$0xf] %v293_v62  ;;  %v373_v34 = vsel %vm3392_vm10, %v368_v9, %v372_v12  ;;  %v310_v39 = vld [vmem:[#allocation2 + $0x28] sm:$0xf]  ;;  %v307_v46 = vld [vmem:[#allocation2 + $0x24] sm:$0x1] }
  0x24   : > { %300 = vst [vmem:[#allocation2 + $0x18] sm:$0xf] %v299_v1  ;;  %v3386_v21 = vpack.c.bf16 %v188_v5, %v188_v5  ;;  %v229_v36 = vor.u32 %v227_v15, %v226_v26  ;;  %v230_v37 = vrot.slane %v226_v26, 4  ;;  %v237_v45 = vor.u32 %v235_v17, %v234_v28  ;;  %v313_v58 = vld [vmem:[#allocation2 + $0x2c] sm:$0x1] }
  0x25   : > { %297 = vst [vmem:[#allocation2 + $0x14] sm:$0x1] %v296_v4  ;;  %v238_v52 = vrot.slane %v234_v28, 4  ;;  %v474_v60 = vunpack.c.l.b16 %v373_v34  ;;  %v248_v13 = vshrl.u32 %v197_v59, 16  ;;  %v251_v16 = vshll.u32 %v197_v59, 16 }
  0x26   : > { %v3186_v19 = vld [vmem:[#allocation2 + $0x4] sm:$0xf0]  ;;  %303 = vst [vmem:[#allocation2 + $0x1c] sm:$0x1] %v302_v10  ;;  %v240_v40 = vshrl.u32 %v3386_v21, 16  ;;  %v305_v57 = vsel %vm3341_vm5, %v229_v36, %v304_v32  ;;  %v311_v2 = vsel %vm3341_vm5, %v237_v45, %v310_v39  ;;  %v308_v3 = vsel %vm3353_vm7, %v230_v37, %v307_v46 }
  0x27   : > { %v335_v20 = vld [vmem:[#allocation2 + $0x8] sm:$0xf]  ;;  %v3388_v22 = vor.u32 %v3186_v19, %v2917_v8  ;;  %306 = vst [vmem:[#allocation2 + $0x20] sm:$0xf] %v305_v57  ;;  %v314_v10 = vsel %vm3353_vm7, %v238_v52, %v313_v58  ;;  %v243_v12 = vshll.u32 %v3386_v21, 16  ;;  %v250_v19 = vrot.slane %v248_v13, 7 }
  0x28   : > { %v375_v24 = vshrl.u32 %v335_v20, 16  ;;  %v378_v25 = vshll.u32 %v335_v20, 16  ;;  %v3396_v27 = vld [vmem:[#allocation2 + $0xc] sm:$0x1]  ;;  %312 = vst [vmem:[#allocation2 + $0x28] sm:$0xf] %v311_v2 }
  0x29   : > { %2931 = vmatmul.msk.bf16.vlgmr.msra.gmra.mxu1 %vm486_vm9, %v3388_v22  ;;  %2940 = vmatmul.msk.bf16.vlgmr.msra.gmra.mxu3 %vm486_vm9, %v3388_v22  ;;  %v384_v31 = vshll.u32 %v3396_v27, 16  ;;  %309 = vst [vmem:[#allocation2 + $0x24] sm:$0x1] %v308_v3  ;;  %v242_v11 = vrot.slane %v240_v40, 7  ;;  %v316_v20 = vld [vmem:[#allocation2 + $0x30] sm:$0xf] }
  0x2a   : > { %v377_v29 = vrot.slane %v375_v24, 4  ;;  %v380_v30 = vrot.slane %v378_v25, 5  ;;  %v336_v35 = vld [vmem:[#allocation2 + $0x10] sm:$0xf]  ;;  %315 = vst [vmem:[#allocation2 + $0x2c] sm:$0x1] %v314_v10 }
  0x2b   : > { %v386_v42 = vrot.slane %v384_v31, 5  ;;  %v337_v43 = vld [vmem:[#allocation2 + $0x18] sm:$0xf]  ;;  %v389_v44 = vshrl.u32 %v336_v35, 16  ;;  %v392_v49 = vshll.u32 %v336_v35, 16  ;;  %v245_v17 = vor.u32 %v243_v12, %v242_v11 }
  0x2c   : > { %v381_v41 = vor.u32 %v380_v30, %v377_v29  ;;  %v3406_v48 = vld [vmem:[#allocation2 + $0x14] sm:$0x1]  ;;  %v403_v50 = vshrl.u32 %v337_v43, 16  ;;  %v406_v51 = vshll.u32 %v337_v43, 16  ;;  %v2921_v6 = vld [vmem:[#allocation2 + $0x10] sm:$0xf]  ;;  %v253_v31 = vor.u32 %v251_v16, %v250_v19 }
  0x2d   : > { %v3408_v55 = vld [vmem:[#allocation2 + $0x1c] sm:$0x1]  ;;  %v391_v56 = vrot.slane %v389_v44, 4  ;;  %v394_v61 = vrot.slane %v392_v49, 5  ;;  %v398_v1 = vshll.u32 %v3406_v48, 16  ;;  %v246_v18 = vrot.slane %v242_v11, 4 }
  0x2e   : > { %v382_v53 = vrot.slane %v381_v41, 4  ;;  %v405_v62 = vrot.slane %v403_v50, 4  ;;  %v408_v63 = vrot.slane %v406_v51, 5  ;;  %v412_v9 = vshll.u32 %v3408_v55, 16  ;;  %v3187_v15 = vld [vmem:[#allocation2 + $0x14] sm:$0xf0] }
  0x2f   : > { %v395_v7 = vor.u32 %v394_v61, %v391_v56  ;;  %v322_v24 = vld [vmem:[#allocation2 + $0x38] sm:$0xf]  ;;  %v400_v26 = vrot.slane %v398_v1, 5  ;;  %v319_v29 = vld [vmem:[#allocation2 + $0x34] sm:$0x1]  ;;  %v3429_v30 = vor.u32 %v3187_v15, %v2921_v6  ;;  %v254_v32 = vrot.slane %v250_v19, 4 }
  0x30   : > { %v387_v0 = vsel %vm3392_vm10, %v382_v53, %v386_v42  ;;  %v409_v8 = vor.u32 %v408_v63, %v405_v62  ;;  %v414_v28 = vrot.slane %v412_v9, 5  ;;  %v325_v33 = vld [vmem:[#allocation2 + $0x3c] sm:$0x1]  ;;  %v338_v34 = vld [vmem:[#allocation2 + $0x20] sm:$0xf]  ;;  %v317_v35 = vsel %vm3341_vm5, %v245_v17, %v316_v20 }
  0x31   : > { %v475_v4 = vunpack.c.l.b16 %v387_v0  ;;  %v396_v25 = vrot.slane %v395_v7, 4  ;;  %v339_v36 = vld [vmem:[#allocation2 + $0x28] sm:$0xf]  ;;  %318 = vst [vmem:[#allocation2 + $0x30] sm:$0xf] %v317_v35  ;;  %v323_v37 = vsel %vm3341_vm5, %v253_v31, %v322_v24  ;;  %v320_v39 = vsel %vm3353_vm7, %v246_v18, %v319_v29 }
  0x32   : > { %v410_v21 = vrot.slane %v409_v8, 4  ;;  %v326_v42 = vsel %vm3353_vm7, %v254_v32, %v325_v33  ;;  %v417_v43 = vshrl.u32 %v338_v34, 16  ;;  %v420_v44 = vshll.u32 %v338_v34, 16  ;;  %324 = vst [vmem:[#allocation2 + $0x38] sm:$0xf] %v323_v37 }
  0x33   : > { %v3423_v5 = vpack.c.b16 %v475_v4, %v474_v60  ;;  %v401_v40 = vsel %vm3392_vm10, %v396_v25, %v400_v26  ;;  %v431_v45 = vshrl.u32 %v339_v36, 16  ;;  %v434_v46 = vshll.u32 %v339_v36, 16  ;;  %321 = vst [vmem:[#allocation2 + $0x34] sm:$0x1] %v320_v39  ;;  %v3447_v57 = vld [vmem:[#allocation2 + $0x24] sm:$0x1] }
  0x34   : > { %v415_v41 = vsel %vm3392_vm10, %v410_v21, %v414_v28  ;;  %327 = vst [vmem:[#allocation2 + $0x3c] sm:$0x1] %v326_v42  ;;  %v476_v49 = vunpack.c.l.b16 %v401_v40  ;;  %v419_v51 = vrot.slane %v417_v43, 4  ;;  %v422_v52 = vrot.slane %v420_v44, 5  ;;  %v3449_v58 = vld [vmem:[#allocation2 + $0x2c] sm:$0x1] }
  0x35   : > { %2911 = vmatmul.msk.bf16.vlgmr.msra.gmra.mxu0 %vm486_vm9, %v3423_v5  ;;  %2936 = vmatmul.msk.bf16.vlgmr.msra.gmra.mxu2 %vm486_vm9, %v3423_v5  ;;  %v477_v50 = vunpack.c.l.b16 %v415_v41  ;;  %v433_v53 = vrot.slane %v431_v45, 4  ;;  %v436_v56 = vrot.slane %v434_v46, 5  ;;  %v2925_v60 = vld [vmem:[#allocation2 + $0x20] sm:$0xf]  ;;  %v3188_v61 = vld [vmem:[#allocation2 + $0x24] sm:$0xf0] }
  0x36   : > { %v423_v62 = vor.u32 %v422_v52, %v419_v51  ;;  %v426_v63 = vshll.u32 %v3447_v57, 16  ;;  %v440_v1 = vshll.u32 %v3449_v58, 16  ;;  %v3459_v2 = vor.u32 %v3188_v61, %v2925_v60  ;;  %v2980_v41 = vld [vmem:[%s4878_s1 + $0x28] sm:$0xf]  ;;  %v2985_v42 = vld [vmem:[%s4878_s1 + $0x2c] sm:$0xf] }
  0x37   : > { %v3451_v59 = vpack.c.b16 %v477_v50, %v476_v49  ;;  %v437_v0 = vor.u32 %v436_v56, %v433_v53  ;;  %v2970_v43 = vld [vmem:[%s4878_s1 + $0x20] sm:$0xf]  ;;  %v964_v45 = vsel %vm499_vm0, %v2980_v41, 0  ;;  %v1006_v46 = vsel %vm499_vm0, %v2985_v42, 0  ;;  %v2975_v50 = vld [vmem:[%s4878_s1 + $0x24] sm:$0xf] }
  0x38   : > { %v340_v3 = vld [vmem:[#allocation2 + $0x30] sm:$0xf]  ;;  %v424_v4 = vrot.slane %v423_v62, 4  ;;  %v428_v6 = vrot.slane %v426_v63, 5  ;;  %v442_v8 = vrot.slane %v440_v1, 5  ;;  %v880_v49 = vsel %vm499_vm0, %v2970_v43, 0  ;;  %973 = vmatpush.bf16.msra.mxu2 %v964_v45  ;;  %1015 = vmatpush.bf16.msra.mxu3 %v1006_v46 }
  0x39   : > { %2932 = vmatmul.msk.bf16.gmra.mxu1 %vm486_vm9, %v3429_v30  ;;  %2941 = vmatmul.msk.bf16.gmra.mxu3 %vm486_vm9, %v3429_v30  ;;  %v438_v7 = vrot.slane %v437_v0, 4  ;;  %v341_v9 = vld [vmem:[#allocation2 + $0x38] sm:$0xf]  ;;  %v445_v10 = vshrl.u32 %v340_v3, 16  ;;  %v448_v11 = vshll.u32 %v340_v3, 16  ;;  %v922_v51 = vsel %vm499_vm0, %v2975_v50, 0 }
  0x3a   : > { %v429_v12 = vsel %vm3392_vm10, %v424_v4, %v428_v6  ;;  %v459_v15 = vshrl.u32 %v341_v9, 16  ;;  %v462_v16 = vshll.u32 %v341_v9, 16  ;;  %v3469_v24 = vld [vmem:[#allocation2 + $0x34] sm:$0x1]  ;;  %v2929_v33 = vld [vmem:[#allocation2 + $0x30] sm:$0xf]  ;;  %889 = vmatpush.bf16.msra.mxu0 %v880_v49  ;;  %931 = vmatpush.bf16.msra.mxu1 %v922_v51 }
  0x3b   : > { %v443_v13 = vsel %vm3392_vm10, %v438_v7, %v442_v8  ;;  %v447_v17 = vrot.slane %v445_v10, 4  ;;  %v450_v18 = vrot.slane %v448_v11, 5  ;;  %v478_v19 = vunpack.c.l.b16 %v429_v12  ;;  %v3471_v25 = vld [vmem:[#allocation2 + $0x3c] sm:$0x1]  ;;  %v3189_v34 = vld [vmem:[#allocation2 + $0x34] sm:$0xf0] }
  0x3c   : > { %v479_v20 = vunpack.c.l.b16 %v443_v13  ;;  %v461_v26 = vrot.slane %v459_v15, 4  ;;  %v464_v21 = vrot.slane %v462_v16, 5  ;;  %v454_v29 = vshll.u32 %v3469_v24, 16  ;;  %v794_v0 = vld [vmem:[#allocation2] sm:$0xe] }
  0x3d   : > { %v451_v28 = vor.u32 %v450_v18, %v447_v17  ;;  %v468_v31 = vshll.u32 %v3471_v25, 16  ;;  %v2930_v40 = vor.u32 %v3189_v34, %v2929_v33  ;;  %v823_v62 = vrot.slane %v3362_v54, 5  ;;  %v795_v1 = vld [vmem:[#allocation2 + $0x8] sm:$0xe]  ;;  %v3021_v8 = vld [vmem:[%s4878_s1 + $0x3c] sm:$0xf] }
  0x3e   : > { %v484_v32 = vpack.c.b16 %v479_v20, %v478_v19  ;;  %v465_v35 = vor.u32 %v464_v21, %v461_v26  ;;  %v456_v37 = vrot.slane %v454_v29, 5  ;;  %v827_v63 = vrot.slane %v3396_v27, 5  ;;  %v3011_v10 = vld [vmem:[%s4878_s1 + $0x34] sm:$0xf]  ;;  %v796_v15 = vld [vmem:[#allocation2 + $0x10] sm:$0xe] }
  0x3f   : > { %v452_v36 = vrot.slane %v451_v28, 4  ;;  %v470_v39 = vrot.slane %v468_v31, 5  ;;  %vm819_vm12 = vcmask 1046532   ;;  %v2963_v3 = vrot.slane %v795_v1, 9  ;;  %v797_v16 = vld [vmem:[#allocation2 + $0x18] sm:$0xe] }
  0x40   : > { %v466_v44 = vrot.slane %v465_v35, 4  ;;  %vm3515_vm13 = vmor %vm818_vm11, %vm819_vm12  ;;  %v1214_v9 = vsel %vm499_vm0, %v3021_v8, 0  ;;  %v1130_v12 = vsel %vm499_vm0, %v3011_v10, 0  ;;  %v2964_v17 = vrot.slane %v796_v15, 9  ;;  %v800_v1 = vld [vmem:[#allocation2 + $0x30] sm:$0xe] }
  0x41   : > { %v457_v52 = vsel %vm3392_vm10, %v452_v36, %v456_v37  ;;  %v828_v27 = vsel %vm3515_vm13, %v2963_v3, %v827_v63  ;;  %v831_v18 = vrot.slane %v3406_v48, 5  ;;  %v2965_v19 = vrot.slane %v797_v16, 9  ;;  %v798_v36 = vld [vmem:[#allocation2 + $0x20] sm:$0xe]  ;;  %v801_v3 = vld [vmem:[#allocation2 + $0x38] sm:$0xe] }
  0x42   : > { %v471_v53 = vsel %vm3392_vm10, %v466_v44, %v470_v39  ;;  %v480_v56 = vunpack.c.l.b16 %v457_v52  ;;  %v835_v20 = vrot.slane %v3408_v55, 5  ;;  %v799_v39 = vld [vmem:[#allocation2 + $0x28] sm:$0xe]  ;;  %v2966_v42 = vrot.slane %v798_v36, 9 }
  0x43   : > { %v481_v60 = vunpack.c.l.b16 %v471_v53  ;;  %v832_v28 = vsel %vm3515_vm13, %v2964_v17, %v831_v18  ;;  %v839_v44 = vrot.slane %v3447_v57, 5  ;;  %v2967_v45 = vrot.slane %v799_v39, 9 }
  0x44   : > { %v836_v29 = vsel %vm3515_vm13, %v2965_v19, %v835_v20  ;;  %v843_v46 = vrot.slane %v3449_v58, 5  ;;  %vm2622_vm14 = vcmask 31744  }
  0x45   : > { %2912 = vmatmul.msk.bf16.gmra.mxu0 %vm486_vm9, %v3451_v59  ;;  %2937 = vmatmul.msk.bf16.gmra.mxu2 %vm486_vm9, %v3451_v59  ;;  %v485_v61 = vpack.c.b16 %v481_v60, %v480_v56  ;;  %v858_v33 = vunpack.c.l.b16 %v836_v29  ;;  %v840_v51 = vsel %vm3515_vm13, %v2966_v42, %v839_v44 }
  0x46   : > { %v844_v52 = vsel %vm3515_vm13, %v2967_v45, %v843_v46  ;;  %v2993_v45 = vld [vmem:[#allocation2 + $0x8] sm:$0xf]  ;;  %v3190_v46 = vld [vmem:[#allocation2 + $0xc] sm:$0xf0] }
  0x49   : > { %2933 = vmatmul.msk.bf16.gmra.mxu1 %vm486_vm9, %v3459_v2  ;;  %2942 = vmatmul.msk.bf16.gmra.mxu3 %vm486_vm9, %v3459_v2 }
  0x55   : > { %2913 = vmatmul.msk.bf16.gmra.mxu0 %vm486_vm9, %v484_v32  ;;  %2938 = vmatmul.msk.bf16.gmra.mxu2 %vm486_vm9, %v484_v32 }
  0x59   : > { %2934 = vmatmul.msk.bf16.gmra.mxu1 %vm486_vm9, %v2930_v40  ;;  %2943 = vmatmul.msk.bf16.gmra.mxu3 %vm486_vm9, %v2930_v40 }
  0x65   : > { %2914 = vmatmul.msk.bf16.gmra.mxu0 %vm486_vm9, %v485_v61  ;;  %2939 = vmatmul.msk.bf16.gmra.mxu2 %vm486_vm9, %v485_v61 }
  0x69   : > { %2949 = vmatmul.msk.bf16.vlgmr.msrb.gmra.mxu1 %vm486_vm9, %v3388_v22  ;;  %2958 = vmatmul.msk.bf16.vlgmr.msrb.gmra.mxu3 %vm486_vm9, %v3388_v22  ;;  %v2962_v22 = vrot.slane %v794_v0, 9 }
  0x6a   : > { %1223 = vmatpush.bf16.msrb.mxu3 %v1214_v9  ;;  %1139 = vmatpush.bf16.msrb.mxu1 %v1130_v12 }
  0x6b   : > { %v824_v54 = vsel %vm3515_vm13, %v2962_v22, %v823_v62  ;;  %v860_v62 = vunpack.c.l.b16 %v844_v52  ;;  %v2994_v52 = vor.u32 %v3190_v46, %v2993_v45  ;;  %v1253_v45 = vld [vmem:[#allocation2 + $0x8] sm:$0xf]  ;;  %v1255_v46 = vld [vmem:[#allocation2 + $0x10] sm:$0xf] }
  0x75   : > { %2945 = vmatmul.msk.bf16.vlgmr.msrb.gmra.mxu0 %vm486_vm9, %v3423_v5  ;;  %2954 = vmatmul.msk.bf16.vlgmr.msrb.gmra.mxu2 %vm486_vm9, %v3423_v5  ;;  %v855_v5 = vunpack.c.l.b16 %v824_v54 }
  0x79   : > { %2950 = vmatmul.msk.bf16.gmra.mxu1 %vm486_vm9, %v3429_v30  ;;  %2959 = vmatmul.msk.bf16.gmra.mxu3 %vm486_vm9, %v3429_v30  ;;  %v856_v30 = vunpack.c.l.b16 %v828_v27 }
  0x7b   : > { %v863_v6 = vpack.c.b16 %v856_v30, %v855_v5  ;;  %v2968_v5 = vrot.slane %v800_v1, 9 }
  0x85   : > { %2946 = vmatmul.msk.bf16.gmra.mxu0 %vm486_vm9, %v3451_v59  ;;  %2955 = vmatmul.msk.bf16.gmra.mxu2 %vm486_vm9, %v3451_v59  ;;  %v3016_v59 = vld [vmem:[%s4878_s1 + $0x38] sm:$0xf] }
  0x86   : > { %v1172_v7 = vsel %vm499_vm0, %v3016_v59, 0  ;;  %v2969_v59 = vrot.slane %v801_v3, 9 }
  0x87   : > { %1181 = vmatpush.bf16.msrb.mxu2 %v1172_v7  ;;  %v851_v7 = vrot.slane %v3471_v25, 5  ;;  %v3036_v25 = vld [vmem:[%s4878_s1 + $0x48] sm:$0xf] }
  0x88   : > { %v1492_v19 = vsel %vm499_vm0, %v3036_v25, 0 }
  0x89   : > { %2951 = vmatmul.msk.bf16.gmra.mxu1 %vm486_vm9, %v3459_v2  ;;  %2960 = vmatmul.msk.bf16.gmra.mxu3 %vm486_vm9, %v3459_v2  ;;  %v2990_v2 = vld [vmem:[%s4878_s1 + $0x30] sm:$0xf]  ;;  %v852_v10 = vsel %vm3515_vm13, %v2969_v59, %v851_v7 }
  0x8a   : > { %v1088_v11 = vsel %vm499_vm0, %v2990_v2, 0  ;;  %v862_v16 = vunpack.c.l.b16 %v852_v10  ;;  %v3191_v10 = vld [vmem:[#allocation2 + $0x1c] sm:$0xf0] }
  0x8b   : > { %1097 = vmatpush.bf16.msrb.mxu0 %v1088_v11 }
  0x95   : > { %2947 = vmatmul.msk.bf16.gmra.mxu0 %vm486_vm9, %v484_v32  ;;  %2956 = vmatmul.msk.bf16.gmra.mxu2 %vm486_vm9, %v484_v32  ;;  %v857_v32 = vunpack.c.l.b16 %v832_v28 }
  0x97   : > { %v864_v48 = vpack.c.b16 %v858_v33, %v857_v32  ;;  %v3031_v32 = vld [vmem:[%s4878_s1 + $0x44] sm:$0xf] }
  0x99   : > { %2952 = vmatmul.msk.bf16.gmra.mxu1 %vm486_vm9, %v2930_v40  ;;  %2961 = vmatmul.msk.bf16.gmra.mxu3 %vm486_vm9, %v2930_v40 }
  0xa5   : > { %2948 = vmatmul.msk.bf16.gmra.mxu0 %vm486_vm9, %v485_v61  ;;  %2957 = vmatmul.msk.bf16.gmra.mxu2 %vm486_vm9, %v485_v61  ;;  %v859_v61 = vunpack.c.l.b16 %v840_v51 }
  0xa6   : > { %v576_v13 = vpop.f32.mrf.mxu1 }
  0xa7   : > { %v865_v58 = vpack.c.b16 %v860_v62, %v859_v61 }
  0xa9   : > { %2976 = vmatmul.msk.bf16.vlgmr.msra.gmra.mxu1 %vm486_vm9, %v863_v6  ;;  %2986 = vmatmul.msk.bf16.vlgmr.msra.gmra.mxu3 %vm486_vm9, %v863_v6 }
  0xac   : > { %v642_v26 = vpop.f32.mrf.mxu3 }
  0xae   : > { %v578_v21 = vpop.f32.mrf.mxu1 }
  0xb2   : > { %v512_v31 = vpop.f32.mrf.mxu0 }
  0xb3   : > { %v3561_v34 = vadd.f32 %v576_v13, %v512_v31  ;;  %v3026_v31 = vld [vmem:[%s4878_s1 + $0x40] sm:$0xf] }
  0xb4   : > { %v644_v35 = vpop.f32.mrf.mxu3 }
  0xb5   : > { %2971 = vmatmul.msk.bf16.vlgmr.msra.gmra.mxu0 %vm486_vm9, %v863_v6  ;;  %2981 = vmatmul.msk.bf16.vlgmr.msra.gmra.mxu2 %vm486_vm9, %v863_v6  ;;  %v847_v6 = vrot.slane %v3469_v24, 5 }
  0xb6   : > { %v581_v55 = vpop.f32.mrf.mxu1  ;;  %1501 = vmatpush.bf16.msra.mxu2 %v1492_v19 }
  0xb7   : > { %v848_v2 = vsel %vm3515_vm13, %v2968_v5, %v847_v6 }
  0xb8   : > { %v610_v37 = vpop.f32.mrf.mxu2  ;;  %v861_v15 = vunpack.c.l.b16 %v848_v2  ;;  %v2997_v2 = vld [vmem:[#allocation2 + $0x18] sm:$0xf] }
  0xb9   : > { %v3565_v40 = vadd.f32 %v642_v26, %v610_v37  ;;  %2977 = vmatmul.msk.bf16.gmra.mxu1 %vm486_vm9, %v864_v48  ;;  %2987 = vmatmul.msk.bf16.gmra.mxu3 %vm486_vm9, %v864_v48  ;;  %v3041_v26 = vld [vmem:[%s4878_s1 + $0x4c] sm:$0xf] }
  0xba   : > { %v514_v41 = vpop.f32.mrf.mxu0  ;;  %v866_v18 = vpack.c.b16 %v862_v16, %v861_v15  ;;  %v1534_v28 = vsel %vm499_vm0, %v3041_v26, 0 }
  0xbb   : > { %v3569_v43 = vadd.f32 %v578_v21, %v514_v41  ;;  %1543 = vmatpush.bf16.msra.mxu3 %v1534_v28 }
  0xbc   : > { %v647_v49 = vpop.f32.mrf.mxu3 }
  0xbe   : > { %v583_v50 = vpop.f32.mrf.mxu1 }
  0xc0   : > { %v612_v53 = vpop.f32.mrf.mxu2 }
  0xc1   : > { %v3577_v56 = vadd.f32 %v644_v35, %v612_v53  ;;  %v1408_v35 = vsel %vm499_vm0, %v3026_v31, 0  ;;  %v3001_v31 = vld [vmem:[#allocation2 + $0x28] sm:$0xf] }
  0xc2   : > { %v517_v60 = vpop.f32.mrf.mxu0  ;;  %1417 = vmatpush.bf16.msra.mxu0 %v1408_v35 }
  0xc3   : > { %v3579_v63 = vadd.f32 %v581_v55, %v517_v60 }
  0xc4   : > { %v649_v57 = vpop.f32.mrf.mxu3 }
  0xc5   : > { %2972 = vmatmul.msk.bf16.gmra.mxu0 %vm486_vm9, %v864_v48  ;;  %2982 = vmatmul.msk.bf16.gmra.mxu2 %vm486_vm9, %v864_v48  ;;  %v1450_v48 = vsel %vm499_vm0, %v3031_v32, 0  ;;  %v3192_v32 = vld [vmem:[#allocation2 + $0x2c] sm:$0xf0] }
  0xc6   : > { %v586_v0 = vpop.f32.mrf.mxu1  ;;  %1459 = vmatpush.bf16.msra.mxu1 %v1450_v48  ;;  %v3002_v35 = vor.u32 %v3192_v32, %v3001_v31  ;;  %v3069_v31 = vld [vmem:[%s4878_s1 + $0x5c] sm:$0xf] }
  0xc8   : > { %v615_v22 = vpop.f32.mrf.mxu2 }
  0xc9   : > { %v3583_v54 = vadd.f32 %v647_v49, %v615_v22  ;;  %2978 = vmatmul.msk.bf16.gmra.mxu1 %vm486_vm9, %v865_v58  ;;  %2988 = vmatmul.msk.bf16.gmra.mxu3 %vm486_vm9, %v865_v58  ;;  %v3213_v49 = vunpack.c.h.bf16 %v3383_v14 }
  0xca   : > { %v519_v27 = vpop.f32.mrf.mxu0 }
  0xcb   : > { %v3587_v30 = vadd.f32 %v583_v50, %v519_v27  ;;  %v190_v51 = vmax.f32 %v3213_v49, 0.0  ;;  %v328_v27 = vld [vmem:[#allocation2 + $0x40] sm:$0xf] }
  0xcc   : > { %v652_v8 = vpop.f32.mrf.mxu3 }
  0xcd   : > { %v198_v60 = vpack.c.bf16 %v190_v51, %v190_v51  ;;  %v1273_v51 = vshll.u32 %v1253_v45, 16 }
  0xce   : > { %v588_v9 = vpop.f32.mrf.mxu1 }
  0xcf   : > { %v259_v1 = vshll.u32 %v198_v60, 16 }
  0xd0   : > { %v617_v11 = vpop.f32.mrf.mxu2 }
  0xd1   : > { %v3595_v12 = vadd.f32 %v649_v57, %v617_v11  ;;  %v256_v57 = vshrl.u32 %v198_v60, 16  ;;  %v1287_v60 = vshll.u32 %v1255_v46, 16 }
  0xd2   : > { %v522_v13 = vpop.f32.mrf.mxu0 }
  0xd3   : > { %v3597_v17 = vadd.f32 %v586_v0, %v522_v13  ;;  %v3636_v14 = vrot.slane %v256_v57, 7  ;;  %v2998_v13 = vor.u32 %v3191_v10, %v2997_v2  ;;  %v3671_v2 = vld [vmem:[#allocation2 + $0x14] sm:$0x1] }
  0xd4   : > { %v654_v24 = vpop.f32.mrf.mxu3 }
  0xd5   : > { %2973 = vmatmul.msk.bf16.gmra.mxu0 %vm486_vm9, %v865_v58  ;;  %2983 = vmatmul.msk.bf16.gmra.mxu2 %vm486_vm9, %v865_v58  ;;  %v261_v3 = vor.u32 %v259_v1, %v3636_v14 }
  0xd6   : > { %v591_v20 = vpop.f32.mrf.mxu1 }
  0xd7   : > { %v329_v6 = vsel %vm3341_vm5, %v261_v3, %v328_v27  ;;  %v3005_v27 = vld [vmem:[#allocation2 + $0x38] sm:$0xf] }
  0xd8   : > { %v620_v21 = vpop.f32.mrf.mxu2  ;;  %330 = vst [vmem:[#allocation2 + $0x40] sm:$0xf] %v329_v6 }
  0xd9   : > { %v3609_v29 = vadd.f32 %v652_v8, %v620_v21  ;;  %2979 = vmatmul.msk.bf16.gmra.mxu1 %vm486_vm9, %v866_v18  ;;  %2989 = vmatmul.msk.bf16.gmra.mxu3 %vm486_vm9, %v866_v18 }
  0xda   : > { %v524_v33 = vpop.f32.mrf.mxu0 }
  0xdb   : > { %v3621_v55 = vadd.f32 %v588_v9, %v524_v33 }
  0xdc   : > { %v657_v36 = vpop.f32.mrf.mxu3 }
  0xde   : > { %v593_v37 = vpop.f32.mrf.mxu1 }
  0xe0   : > { %v622_v39 = vpop.f32.mrf.mxu2 }
  0xe1   : > { %v3623_v41 = vadd.f32 %v654_v24, %v622_v39 }
  0xe2   : > { %v527_v42 = vpop.f32.mrf.mxu0 }
  0xe3   : > { %v3625_v44 = vadd.f32 %v591_v20, %v527_v42 }
  0xe4   : > { %v659_v50 = vpop.f32.mrf.mxu3 }
  0xe5   : > { %2974 = vmatmul.msk.bf16.gmra.mxu0 %vm486_vm9, %v866_v18  ;;  %2984 = vmatmul.msk.bf16.gmra.mxu2 %vm486_vm9, %v866_v18 }
  0xe6   : > { %v708_v53 = vpop.f32.mrf.mxu1 }
  0xe8   : > { %v625_v61 = vpop.f32.mrf.mxu2 }
  0xe9   : > { %v3630_v62 = vadd.f32 %v657_v36, %v625_v61  ;;  %3012 = vmatmul.msk.bf16.vlgmr.msrb.gmra.mxu1 %vm486_vm9, %v2994_v52  ;;  %3022 = vmatmul.msk.bf16.vlgmr.msrb.gmra.mxu3 %vm486_vm9, %v2994_v52 }
  0xea   : > { %v529_v58 = vpop.f32.mrf.mxu0 }
  0xeb   : > { %v3634_v0 = vadd.f32 %v593_v37, %v529_v58 }
  0xec   : > { %v774_v22 = vpop.f32.mrf.mxu3 }
  0xee   : > { %v710_v5 = vpop.f32.mrf.mxu1 }
  0xf0   : > { %v627_v59 = vpop.f32.mrf.mxu2 }
  0xf1   : > { %v3641_v7 = vadd.f32 %v659_v50, %v627_v59  ;;  %v1270_v50 = vshrl.u32 %v1253_v45, 16  ;;  %v1289_v59 = vrot.slane %v1287_v60, 5  ;;  %v1257_v60 = vld [vmem:[#allocation2 + $0x18] sm:$0xf] }
  0xf2   : > { %v676_v8 = vpop.f32.mrf.mxu0 }
  0xf3   : > { %v3643_v9 = vadd.f32 %v708_v53, %v676_v8  ;;  %v1284_v53 = vshrl.u32 %v1255_v46, 16  ;;  %v1272_v1 = vrot.slane %v1270_v50, 4  ;;  %v3669_v8 = vld [vmem:[#allocation2 + $0xc] sm:$0x1] }
  0xf4   : > { %v776_v11 = vpop.f32.mrf.mxu3 }
  0xf5   : > { %3007 = vmatmul.msk.bf16.vlgmr.msrb.gmra.mxu0 %vm486_vm9, %v2994_v52  ;;  %3017 = vmatmul.msk.bf16.vlgmr.msrb.gmra.mxu2 %vm486_vm9, %v2994_v52  ;;  %v1286_v6 = vrot.slane %v1284_v53, 4 }
  0xf6   : > { %v713_v15 = vpop.f32.mrf.mxu1 }
  0xf8   : > { %v742_v16 = vpop.f32.mrf.mxu2 }
  0xf9   : > { %v3647_v24 = vadd.f32 %v774_v22, %v742_v16  ;;  %3013 = vmatmul.msk.bf16.gmra.mxu1 %vm486_vm9, %v2998_v13  ;;  %3023 = vmatmul.msk.bf16.gmra.mxu3 %vm486_vm9, %v2998_v13  ;;  %v1275_v22 = vrot.slane %v1273_v51, 5 }
  0xfa   : > { %v678_v38 = vpop.f32.mrf.mxu0 }
  0xfb   : > { %v3651_v25 = vadd.f32 %v710_v5, %v678_v38  ;;  %v3193_v5 = vld [vmem:[#allocation2 + $0x3c] sm:$0xf0]  ;;  %v1279_v38 = vshll.u32 %v3669_v8, 16 }
  0xfc   : > { %v779_v18 = vpop.f32.mrf.mxu3 }
  0xfd   : > { %v1281_v50 = vrot.slane %v1279_v38, 5 }
  0xfe   : > { %v715_v19 = vpop.f32.mrf.mxu1 }
 0x100   : > { %v744_v20 = vpop.f32.mrf.mxu2 }
 0x101   : > { %v3653_v26 = vadd.f32 %v776_v11, %v744_v20  ;;  %v3006_v11 = vor.u32 %v3193_v5, %v3005_v27 }
 0x102   : > { %v681_v21 = vpop.f32.mrf.mxu0 }
 0x103   : > { %v3655_v28 = vadd.f32 %v713_v15, %v681_v21  ;;  %v3064_v15 = vld [vmem:[%s4878_s1 + $0x58] sm:$0xf] }
 0x104   : > { %v781_v33 = vpop.f32.mrf.mxu3  ;;  %v1740_v20 = vsel %vm499_vm0, %v3064_v15, 0 }
 0x105   : > { %3008 = vmatmul.msk.bf16.gmra.mxu0 %vm486_vm9, %v2998_v13  ;;  %3018 = vmatmul.msk.bf16.gmra.mxu2 %vm486_vm9, %v2998_v13  ;;  %v1276_v13 = vor.u32 %v1275_v22, %v1272_v1  ;;  %v1298_v1 = vshrl.u32 %v1257_v60, 16  ;;  %v1301_v22 = vshll.u32 %v1257_v60, 16  ;;  %v331_v60 = vld [vmem:[#allocation2 + $0x44] sm:$0x1] }
 0x106   : > { %v718_v48 = vpop.f32.mrf.mxu1  ;;  %1749 = vmatpush.bf16.msrb.mxu2 %v1740_v20 }
 0x107   : > { %v1300_v20 = vrot.slane %v1298_v1, 4 }
 0x108   : > { %v747_v36 = vpop.f32.mrf.mxu2 }
 0x109   : > { %v3659_v37 = vadd.f32 %v779_v18, %v747_v36  ;;  %3014 = vmatmul.msk.bf16.gmra.mxu1 %vm486_vm9, %v3002_v35  ;;  %3024 = vmatmul.msk.bf16.gmra.mxu3 %vm486_vm9, %v3002_v35  ;;  %v1290_v18 = vor.u32 %v1289_v59, %v1286_v6 }
 0x10a   : > { %v683_v39 = vpop.f32.mrf.mxu0 }
 0x10b   : > { %v3663_v42 = vadd.f32 %v715_v19, %v683_v39  ;;  %v1293_v19 = vshll.u32 %v3671_v2, 16  ;;  %v1277_v39 = vrot.slane %v1276_v13, 4  ;;  %v1291_v51 = vrot.slane %v1290_v18, 4 }
 0x10c   : > { %v784_v49 = vpop.f32.mrf.mxu3 }
 0x10d   : > { %v1295_v53 = vrot.slane %v1293_v19, 5  ;;  %v1282_v5 = vsel %vm3392_vm10, %v1277_v39, %v1281_v50  ;;  %v3710_v39 = vld [vmem:[#allocation2 + $0x24] sm:$0x1] }
 0x10e   : > { %v720_v52 = vpop.f32.mrf.mxu1  ;;  %v1383_v18 = vunpack.c.l.b16 %v1282_v5 }
 0x10f   : > { %v1296_v6 = vsel %vm3392_vm10, %v1291_v51, %v1295_v53  ;;  %v1321_v53 = vshll.u32 %v3710_v39, 16 }
 0x110   : > { %v749_v61 = vpop.f32.mrf.mxu2  ;;  %v1384_v19 = vunpack.c.l.b16 %v1296_v6 }
 0x111   : > { %v3665_v57 = vadd.f32 %v781_v33, %v749_v61  ;;  %v1782_v33 = vsel %vm499_vm0, %v3069_v31, 0  ;;  %v1259_v61 = vld [vmem:[#allocation2 + $0x20] sm:$0xf] }
 0x112   : > { %v686_v58 = vpop.f32.mrf.mxu0  ;;  %1791 = vmatpush.bf16.msrb.mxu3 %v1782_v33  ;;  %v1315_v59 = vshll.u32 %v1259_v61, 16 }
 0x113   : > { %v3667_v3 = vadd.f32 %v718_v48, %v686_v58  ;;  %v3059_v48 = vld [vmem:[%s4878_s1 + $0x54] sm:$0xf] }
 0x114   : > { %v786_v10 = vpop.f32.mrf.mxu3  ;;  %v1698_v46 = vsel %vm499_vm0, %v3059_v48, 0  ;;  %v262_v48 = vrot.slane %v3636_v14, 4 }
 0x115   : > { %3009 = vmatmul.msk.bf16.gmra.mxu0 %vm486_vm9, %v3002_v35  ;;  %3019 = vmatmul.msk.bf16.gmra.mxu2 %vm486_vm9, %v3002_v35  ;;  %v3054_v35 = vld [vmem:[%s4878_s1 + $0x50] sm:$0xf] }
 0x116   : > { %v723_v16 = vpop.f32.mrf.mxu1  ;;  %v1656_v45 = vsel %vm499_vm0, %v3054_v35, 0  ;;  %1707 = vmatpush.bf16.msrb.mxu1 %v1698_v46  ;;  %v1317_v35 = vrot.slane %v1315_v59, 5  ;;  %v332_v1 = vsel %vm3353_vm7, %v262_v48, %v331_v60 }
 0x117   : > { %1665 = vmatpush.bf16.msrb.mxu0 %v1656_v45  ;;  %333 = vst [vmem:[#allocation2 + $0x44] sm:$0x1] %v332_v1 }
 0x118   : > { %v752_v21 = vpop.f32.mrf.mxu2 }
 0x119   : > { %v3684_v32 = vadd.f32 %v784_v49, %v752_v21  ;;  %3015 = vmatmul.msk.bf16.gmra.mxu1 %vm486_vm9, %v3006_v11  ;;  %3025 = vmatmul.msk.bf16.gmra.mxu3 %vm486_vm9, %v3006_v11  ;;  %v1303_v21 = vrot.slane %v1301_v22, 5 }
 0x11a   : > { %v688_v36 = vpop.f32.mrf.mxu0 }
 0x11b   : > { %v3697_v49 = vadd.f32 %v720_v52, %v688_v36  ;;  %v1312_v52 = vshrl.u32 %v1259_v61, 16  ;;  %v3708_v36 = vld [vmem:[#allocation2 + $0x1c] sm:$0x1]  ;;  %v1304_v46 = vor.u32 %v1303_v21, %v1300_v20 }
 0x11c   : > { %v789_v58 = vpop.f32.mrf.mxu3  ;;  %v1307_v51 = vshll.u32 %v3708_v36, 16 }
 0x11d   : > { %v1314_v33 = vrot.slane %v1312_v52, 4  ;;  %v1305_v5 = vrot.slane %v1304_v46, 4 }
 0x11e   : > { %v725_v27 = vpop.f32.mrf.mxu1  ;;  %v1309_v52 = vrot.slane %v1307_v51, 5 }
 0x120   : > { %v754_v13 = vpop.f32.mrf.mxu2  ;;  %v1310_v21 = vsel %vm3392_vm10, %v1305_v5, %v1309_v52  ;;  %v3742_v5 = vld [vmem:[#allocation2 + $0x2c] sm:$0x1]  ;;  %v3744_v52 = vld [vmem:[#allocation2 + $0x34] sm:$0x1] }
 0x121   : > { %v3703_v15 = vadd.f32 %v786_v10, %v754_v13  ;;  %v1391_v10 = vpack.c.b16 %v1384_v19, %v1383_v18  ;;  %v1323_v13 = vrot.slane %v1321_v53, 5 }
 0x122   : > { %v691_v38 = vpop.f32.mrf.mxu0 }
 0x123   : > { %v3705_v31 = vadd.f32 %v723_v16, %v691_v38  ;;  %v1318_v16 = vor.u32 %v1317_v35, %v1314_v33  ;;  %v1263_v38 = vld [vmem:[#allocation2 + $0x30] sm:$0xf] }
 0x124   : > { %v791_v45 = vpop.f32.mrf.mxu3  ;;  %v1343_v35 = vshll.u32 %v1263_v38, 16 }
 0x125   : > { %3010 = vmatmul.msk.bf16.gmra.mxu0 %vm486_vm9, %v3006_v11  ;;  %3020 = vmatmul.msk.bf16.gmra.mxu2 %vm486_vm9, %v3006_v11  ;;  %v1319_v59 = vrot.slane %v1318_v16, 4 }
 0x126   : > { %v933_v50 = vpop.f32.mrf.mxu1 }
 0x127   : > { %v3717_v14 = vadd.f32 %v933_v50, %v3565_v40  ;;  %v1261_v40 = vld [vmem:[#allocation2 + $0x28] sm:$0xf]  ;;  %v1324_v33 = vsel %vm3392_vm10, %v1319_v59, %v1323_v13 }
 0x128   : > { %v757_v61 = vpop.f32.mrf.mxu2  ;;  %v1329_v19 = vshll.u32 %v1261_v40, 16  ;;  %v1386_v16 = vunpack.c.l.b16 %v1324_v33 }
 0x129   : > { %v3721_v22 = vadd.f32 %v789_v58, %v757_v61  ;;  %3032 = vmatmul.msk.bf16.vlgmr.msra.gmra.mxu1 %vm486_vm9, %v1391_v10  ;;  %3042 = vmatmul.msk.bf16.vlgmr.msra.gmra.mxu3 %vm486_vm9, %v1391_v10  ;;  %v1326_v58 = vshrl.u32 %v1261_v40, 16 }
 0x12a   : > { %v693_v11 = vpop.f32.mrf.mxu0  ;;  %v1331_v60 = vrot.slane %v1329_v19, 5 }
 0x12b   : > { %v3725_v6 = vadd.f32 %v725_v27, %v693_v11  ;;  %v1340_v27 = vshrl.u32 %v1263_v38, 16  ;;  %v1328_v53 = vrot.slane %v1326_v58, 4  ;;  %v1345_v11 = vrot.slane %v1343_v35, 5 }
 0x12c   : > { %v1017_v18 = vpop.f32.mrf.mxu3 }
 0x12d   : > { %v3728_v47 = vadd.f32 %v1017_v18, %v3647_v24  ;;  %v1385_v24 = vunpack.c.l.b16 %v1310_v21  ;;  %v1342_v1 = vrot.slane %v1340_v27, 4  ;;  %v1332_v13 = vor.u32 %v1331_v60, %v1328_v53 }
 0x12e   : > { %v935_v20 = vpop.f32.mrf.mxu1  ;;  %v1349_v18 = vshll.u32 %v3744_v52, 16 }
 0x12f   : > { %v3735_v48 = vadd.f32 %v935_v20, %v3577_v56  ;;  %v1346_v38 = vor.u32 %v1345_v11, %v1342_v1 }
 0x130   : > { %v759_v46 = vpop.f32.mrf.mxu2  ;;  %v1351_v35 = vrot.slane %v1349_v18, 5 }
 0x131   : > { %v3737_v50 = vadd.f32 %v791_v45, %v759_v46  ;;  %v1392_v45 = vpack.c.b16 %v1386_v16, %v1385_v24  ;;  %v1347_v27 = vrot.slane %v1346_v38, 4  ;;  %v1265_v46 = vld [vmem:[#allocation2 + $0x38] sm:$0xf] }
 0x132   : > { %v891_v51 = vpop.f32.mrf.mxu0  ;;  %v1357_v16 = vshll.u32 %v1265_v46, 16 }
 0x133   : > { %v3740_v61 = vadd.f32 %v891_v51, %v3561_v34  ;;  %v1335_v34 = vshll.u32 %v3742_v5, 16  ;;  %v1267_v51 = vld [vmem:[#allocation2 + $0x40] sm:$0xf]  ;;  %v1352_v1 = vsel %vm3392_vm10, %v1347_v27, %v1351_v35  ;;  %v3780_v27 = vld [vmem:[#allocation2 + $0x3c] sm:$0x1] }
 0x134   : > { %v1019_v59 = vpop.f32.mrf.mxu3  ;;  %v1371_v11 = vshll.u32 %v1267_v51, 16  ;;  %v1388_v38 = vunpack.c.l.b16 %v1352_v1  ;;  %v3782_v35 = vld [vmem:[#allocation2 + $0x44] sm:$0x1] }
 0x135   : > { %3027 = vmatmul.msk.bf16.vlgmr.msra.gmra.mxu0 %vm486_vm9, %v1391_v10  ;;  %3037 = vmatmul.msk.bf16.vlgmr.msra.gmra.mxu2 %vm486_vm9, %v1391_v10  ;;  %v3749_v56 = vadd.f32 %v1019_v59, %v3653_v26  ;;  %v1333_v26 = vrot.slane %v1332_v13, 4  ;;  %v1337_v33 = vrot.slane %v1335_v34, 5 }
 0x136   : > { %v938_v40 = vpop.f32.mrf.mxu1 }
 0x137   : > { %v3754_v58 = vadd.f32 %v938_v40, %v3583_v54  ;;  %v1338_v60 = vsel %vm3392_vm10, %v1333_v26, %v1337_v33  ;;  %v1373_v33 = vrot.slane %v1371_v11, 5 }
 0x138   : > { %v975_v19 = vpop.f32.mrf.mxu2  ;;  %v1387_v34 = vunpack.c.l.b16 %v1338_v60 }
 0x139   : > { %v3757_v20 = vadd.f32 %v975_v19, %v3643_v9  ;;  %3033 = vmatmul.msk.bf16.gmra.mxu1 %vm486_vm9, %v1392_v45  ;;  %3043 = vmatmul.msk.bf16.gmra.mxu3 %vm486_vm9, %v1392_v45  ;;  %v1354_v9 = vshrl.u32 %v1265_v46, 16  ;;  %v1359_v19 = vrot.slane %v1357_v16, 5  ;;  %v1377_v16 = vshll.u32 %v3782_v35, 16 }
 0x13a   : > { %v893_v21 = vpop.f32.mrf.mxu0  ;;  %v1393_v46 = vpack.c.b16 %v1388_v38, %v1387_v34 }
 0x13b   : > { %v3762_v10 = vadd.f32 %v893_v21, %v3569_v43  ;;  %v1368_v43 = vshrl.u32 %v1267_v51, 16  ;;  %v1356_v18 = vrot.slane %v1354_v9, 4 }
 0x13c   : > { %v1022_v54 = vpop.f32.mrf.mxu3 }
 0x13d   : > { %v3765_v24 = vadd.f32 %v1022_v54, %v3659_v37  ;;  %v1370_v26 = vrot.slane %v1368_v43, 4  ;;  %v1360_v51 = vor.u32 %v1359_v19, %v1356_v18 }
 0x13e   : > { %v940_v53 = vpop.f32.mrf.mxu1 }
 0x13f   : > { %v3772_v59 = vadd.f32 %v940_v53, %v3595_v12  ;;  %v1374_v9 = vor.u32 %v1373_v33, %v1370_v26 }
 0x140   : > { %v977_v13 = vpop.f32.mrf.mxu2 }
 0x141   : > { %v3775_v40 = vadd.f32 %v977_v13, %v3651_v25  ;;  %v1375_v13 = vrot.slane %v1374_v9, 4 }
 0x142   : > { %v896_v37 = vpop.f32.mrf.mxu0 }
 0x143   : > { %v3778_v21 = vadd.f32 %v896_v37, %v3579_v63  ;;  %v1363_v63 = vshll.u32 %v3780_v27, 16  ;;  %v1379_v37 = vrot.slane %v1377_v16, 5  ;;  %v1573_v16 = vld [vmem:[#allocation2 + $0x8] sm:$0xe] }
 0x144   : > { %v1024_v12 = vpop.f32.mrf.mxu3 }
 0x145   : > { %3028 = vmatmul.msk.bf16.gmra.mxu0 %vm486_vm9, %v1392_v45  ;;  %3038 = vmatmul.msk.bf16.gmra.mxu2 %vm486_vm9, %v1392_v45  ;;  %v3787_v25 = vadd.f32 %v1024_v12, %v3665_v57  ;;  %v1361_v57 = vrot.slane %v1360_v51, 4  ;;  %v1365_v11 = vrot.slane %v1363_v63, 5  ;;  %v1380_v18 = vsel %vm3392_vm10, %v1375_v13, %v1379_v37  ;;  %v3074_v13 = vld [vmem:[%s4878_s1 + $0x60] sm:$0xf] }
 0x146   : > { %v943_v54 = vpop.f32.mrf.mxu1  ;;  %v1390_v51 = vunpack.c.l.b16 %v1380_v18  ;;  %v1599_v18 = vrot.slane %v3669_v8, 5 }
 0x147   : > { %v3792_v53 = vadd.f32 %v943_v54, %v3609_v29 }
 0x148   : > { %v980_v60 = vpop.f32.mrf.mxu2 }
 0x149   : > { %v3795_v1 = vadd.f32 %v980_v60, %v3655_v28  ;;  %3034 = vmatmul.msk.bf16.gmra.mxu1 %vm486_vm9, %v1393_v46  ;;  %3044 = vmatmul.msk.bf16.gmra.mxu3 %vm486_vm9, %v1393_v46  ;;  %v1366_v28 = vsel %vm3392_vm10, %v1361_v57, %v1365_v11  ;;  %v1574_v57 = vld [vmem:[#allocation2 + $0x10] sm:$0xe] }
 0x14a   : > { %v898_v43 = vpop.f32.mrf.mxu0  ;;  %v1389_v12 = vunpack.c.l.b16 %v1366_v28 }
 0x14b   : > { %v3800_v45 = vadd.f32 %v898_v43, %v3587_v30 }
 0x14c   : > { %v1027_v34 = vpop.f32.mrf.mxu3 }
 0x14d   : > { %v3803_v29 = vadd.f32 %v1027_v34, %v3684_v32  ;;  %v3046_v34 = vrot.slane %v1573_v16, 9 }
 0x14e   : > { %v945_v38 = vpop.f32.mrf.mxu1 }
 0x14f   : > { %v3810_v19 = vadd.f32 %v945_v38, %v3623_v41  ;;  %v1394_v41 = vpack.c.b16 %v1390_v51, %v1389_v12  ;;  %v1865_v38 = vsel %vm499_vm0, %v3074_v13, 0  ;;  %v1575_v13 = vld [vmem:[#allocation2 + $0x18] sm:$0xe] }
 0x150   : > { %v982_v26 = vpop.f32.mrf.mxu2  ;;  %1874 = vmatpush.bf16.msra.mxu0 %v1865_v38  ;;  %v1607_v38 = vrot.slane %v3708_v36, 5 }
 0x151   : > { %v3813_v30 = vadd.f32 %v982_v26, %v3663_v42  ;;  %v3100_v42 = vld [vmem:[%s4878_s1 + $0x68] sm:$0xf]  ;;  %v3047_v26 = vrot.slane %v1574_v57, 9 }
 0x152   : > { %v901_v33 = vpop.f32.mrf.mxu0  ;;  %v1949_v60 = vsel %vm499_vm0, %v3100_v42, 0  ;;  %v1600_v42 = vsel %vm3515_vm13, %v3046_v34, %v1599_v18 }
 0x153   : > { %v3816_v32 = vadd.f32 %v901_v33, %v3597_v17  ;;  %1958 = vmatpush.bf16.msra.mxu2 %v1949_v60  ;;  %v1603_v33 = vrot.slane %v3671_v2, 5  ;;  %v1631_v60 = vunpack.c.l.b16 %v1600_v42 }
 0x154   : > { %v1029_v54 = vpop.f32.mrf.mxu3 }
 0x155   : > { %3029 = vmatmul.msk.bf16.gmra.mxu0 %vm486_vm9, %v1393_v46  ;;  %3039 = vmatmul.msk.bf16.gmra.mxu2 %vm486_vm9, %v1393_v46  ;;  %v3821_v63 = vadd.f32 %v1029_v54, %v3703_v15  ;;  %v3105_v15 = vld [vmem:[%s4878_s1 + $0x6c] sm:$0xf] }
 0x156   : > { %v948_v9 = vpop.f32.mrf.mxu1  ;;  %v1991_v11 = vsel %vm499_vm0, %v3105_v15, 0 }
 0x157   : > { %v3828_v17 = vadd.f32 %v948_v9, %v3630_v62  ;;  %v3095_v62 = vld [vmem:[%s4878_s1 + $0x64] sm:$0xf]  ;;  %2000 = vmatpush.bf16.msra.mxu3 %v1991_v11 }
 0x158   : > { %v985_v43 = vpop.f32.mrf.mxu2 }
 0x159   : > { %v3834_v46 = vadd.f32 %v985_v43, %v3667_v3  ;;  %3035 = vmatmul.msk.bf16.gmra.mxu1 %vm486_vm9, %v1394_v41  ;;  %3045 = vmatmul.msk.bf16.gmra.mxu3 %vm486_vm9, %v1394_v41  ;;  %v1907_v3 = vsel %vm499_vm0, %v3095_v62, 0 }
 0x15a   : > { %v903_v37 = vpop.f32.mrf.mxu0  ;;  %1916 = vmatpush.bf16.msra.mxu1 %v1907_v3 }
 0x15b   : > { %v3848_v28 = vadd.f32 %v903_v37, %v3621_v55  ;;  %v1604_v55 = vsel %vm3515_vm13, %v3047_v26, %v1603_v33  ;;  %v1576_v37 = vld [vmem:[#allocation2 + $0x20] sm:$0xe] }
 0x15c   : > { %v1032_v12 = vpop.f32.mrf.mxu3  ;;  %v1632_v43 = vunpack.c.l.b16 %v1604_v55  ;;  %v3049_v3 = vrot.slane %v1576_v37, 9 }
 0x15d   : > { %v3853_v51 = vadd.f32 %v1032_v12, %v3721_v22 }
 0x15e   : > { %v950_v54 = vpop.f32.mrf.mxu1 }
 0x15f   : > { %v3860_v9 = vadd.f32 %v950_v54, %v3641_v7  ;;  %v1639_v7 = vpack.c.b16 %v1632_v43, %v1631_v60  ;;  %v1577_v43 = vld [vmem:[#allocation2 + $0x28] sm:$0xe] }
 0x160   : > { %v987_v8 = vpop.f32.mrf.mxu2 }
 0x161   : > { %v3863_v2 = vadd.f32 %v987_v8, %v3697_v49 }
 0x162   : > { %v906_v16 = vpop.f32.mrf.mxu0 }
 0x163   : > { %v3866_v22 = vadd.f32 %v906_v16, %v3625_v44 }
 0x164   : > { %v1034_v57 = vpop.f32.mrf.mxu3 }
 0x165   : > { %3030 = vmatmul.msk.bf16.gmra.mxu0 %vm486_vm9, %v1394_v41  ;;  %3040 = vmatmul.msk.bf16.gmra.mxu2 %vm486_vm9, %v1394_v41  ;;  %v3871_v15 = vadd.f32 %v1034_v57, %v3737_v50  ;;  %v3048_v41 = vrot.slane %v1575_v13, 9 }
 0x166   : > { %v1141_v11 = vpop.f32.mrf.mxu1 }
 0x167   : > { %v3874_v49 = vadd.f32 %v1141_v11, %v3717_v14  ;;  %v1611_v14 = vrot.slane %v3710_v39, 5  ;;  %v1608_v33 = vsel %vm3515_vm13, %v3048_v41, %v1607_v38  ;;  %v1578_v11 = vld [vmem:[#allocation2 + $0x30] sm:$0xe] }
 0x168   : > { %v990_v62 = vpop.f32.mrf.mxu2  ;;  %v1633_v39 = vunpack.c.l.b16 %v1608_v33  ;;  %v3051_v37 = vrot.slane %v1578_v11, 9 }
 0x169   : > { %v3877_v34 = vadd.f32 %v990_v62, %v3705_v31  ;;  %3060 = vmatmul.msk.bf16.vlgmr.msrb.gmra.mxu1 %vm486_vm9, %v1639_v7  ;;  %3070 = vmatmul.msk.bf16.vlgmr.msrb.gmra.mxu3 %vm486_vm9, %v1639_v7  ;;  %v1612_v12 = vsel %vm3515_vm13, %v3049_v3, %v1611_v14  ;;  %v1615_v62 = vrot.slane %v3742_v5, 5 }
 0x16a   : > { %v908_v44 = vpop.f32.mrf.mxu0  ;;  %v1634_v55 = vunpack.c.l.b16 %v1612_v12 }
 0x16b   : > { %v3882_v50 = vadd.f32 %v908_v44, %v3634_v0 }
 0x16c   : > { %v1225_v18 = vpop.f32.mrf.mxu3 }
 0x16d   : > { %v3887_v26 = vadd.f32 %v1225_v18, %v3728_v47 }
 0x16e   : > { %v1143_v31 = vpop.f32.mrf.mxu1 }
 0x16f   : > { %v3894_v54 = vadd.f32 %v1143_v31, %v3735_v48  ;;  %v1640_v48 = vpack.c.b16 %v1634_v55, %v1633_v39  ;;  %v1580_v55 = vld [vmem:[#allocation2 + $0x40] sm:$0xe] }
 0x170   : > { %v992_v0 = vpop.f32.mrf.mxu2 }
 0x171   : > { %v3897_v36 = vadd.f32 %v992_v0, %v3725_v6 }
 0x172   : > { %v1099_v42 = vpop.f32.mrf.mxu0 }
 0x173   : > { %v3900_v47 = vadd.f32 %v1099_v42, %v3740_v61  ;;  %v1579_v42 = vld [vmem:[#allocation2 + $0x38] sm:$0xe] }
 0x174   : > { %v1227_v8 = vpop.f32.mrf.mxu3 }
 0x175   : > { %3055 = vmatmul.msk.bf16.vlgmr.msrb.gmra.mxu0 %vm486_vm9, %v1639_v7  ;;  %3065 = vmatmul.msk.bf16.vlgmr.msrb.gmra.mxu2 %vm486_vm9, %v1639_v7  ;;  %v3905_v16 = vadd.f32 %v1227_v8, %v3749_v56  ;;  %v3050_v7 = vrot.slane %v1577_v43, 9  ;;  %v3053_v43 = vrot.slane %v1580_v55, 9 }
 0x176   : > { %v1146_v60 = vpop.f32.mrf.mxu1 }
 0x177   : > { %v3908_v6 = vadd.f32 %v1146_v60, %v3754_v58  ;;  %v1619_v58 = vrot.slane %v3744_v52, 5  ;;  %v1616_v38 = vsel %vm3515_vm13, %v3050_v7, %v1615_v62  ;;  %v1623_v60 = vrot.slane %v3780_v27, 5 }
 0x178   : > { %v1183_v57 = vpop.f32.mrf.mxu2  ;;  %v1635_v52 = vunpack.c.l.b16 %v1616_v38 }
 0x179   : > { %v3911_v13 = vadd.f32 %v1183_v57, %v3757_v20  ;;  %3061 = vmatmul.msk.bf16.gmra.mxu1 %vm486_vm9, %v1640_v48  ;;  %3071 = vmatmul.msk.bf16.gmra.mxu3 %vm486_vm9, %v1640_v48  ;;  %v1620_v3 = vsel %vm3515_vm13, %v3051_v37, %v1619_v58 }
 0x17a   : > { %v1101_v61 = vpop.f32.mrf.mxu0  ;;  %v1636_v31 = vunpack.c.l.b16 %v1620_v3 }
 0x17b   : > { %v3916_v56 = vadd.f32 %v1101_v61, %v3762_v10 }
 0x17c   : > { %v1230_v44 = vpop.f32.mrf.mxu3 }
 0x17d   : > { %v3921_v41 = vadd.f32 %v1230_v44, %v3765_v24 }
 0x17e   : > { %v1148_v20 = vpop.f32.mrf.mxu1 }
 0x17f   : > { %v3928_v14 = vadd.f32 %v1148_v20, %v3772_v59  ;;  %v1641_v59 = vpack.c.b16 %v1636_v31, %v1635_v52  ;;  %v3110_v31 = vld [vmem:[%s4878_s1 + $0x70] sm:$0xf] }
 0x180   : > { %v1185_v10 = vpop.f32.mrf.mxu2 }
 0x181   : > { %v3931_v5 = vadd.f32 %v1185_v10, %v3775_v40 }
 0x182   : > { %v1104_v18 = vpop.f32.mrf.mxu0 }
 0x183   : > { %v3934_v24 = vadd.f32 %v1104_v18, %v3778_v21  ;;  %v3125_v18 = vld [vmem:[%s4878_s1 + $0x7c] sm:$0xf] }
 0x184   : > { %v1232_v33 = vpop.f32.mrf.mxu3  ;;  %v2311_v52 = vsel %vm499_vm0, %v3125_v18, 0 }
 0x185   : > { %3056 = vmatmul.msk.bf16.gmra.mxu0 %vm486_vm9, %v1640_v48  ;;  %3066 = vmatmul.msk.bf16.gmra.mxu2 %vm486_vm9, %v1640_v48  ;;  %v3939_v12 = vadd.f32 %v1232_v33, %v3787_v25  ;;  %v3052_v48 = vrot.slane %v1579_v42, 9 }
 0x186   : > { %v1151_v0 = vpop.f32.mrf.mxu1  ;;  %2320 = vmatpush.bf16.msrb.mxu3 %v2311_v52 }
 0x187   : > { %v3942_v40 = vadd.f32 %v1151_v0, %v3792_v53  ;;  %v1627_v53 = vrot.slane %v3782_v35, 5  ;;  %v1624_v61 = vsel %vm3515_vm13, %v3052_v48, %v1623_v60 }
 0x188   : > { %v1188_v39 = vpop.f32.mrf.mxu2  ;;  %v1637_v35 = vunpack.c.l.b16 %v1624_v61 }
 0x189   : > { %v3945_v8 = vadd.f32 %v1188_v39, %v3795_v1  ;;  %3062 = vmatmul.msk.bf16.gmra.mxu1 %vm486_vm9, %v1641_v59  ;;  %3072 = vmatmul.msk.bf16.gmra.mxu3 %vm486_vm9, %v1641_v59  ;;  %v1628_v7 = vsel %vm3515_vm13, %v3053_v43, %v1627_v53 }
 0x18a   : > { %v1106_v21 = vpop.f32.mrf.mxu0  ;;  %v1638_v58 = vunpack.c.l.b16 %v1628_v7 }
 0x18b   : > { %v3950_v25 = vadd.f32 %v1106_v21, %v3800_v45 }
 0x18c   : > { %v1235_v57 = vpop.f32.mrf.mxu3 }
 0x18d   : > { %v3955_v11 = vadd.f32 %v1235_v57, %v3803_v29  ;;  %v3194_v57 = vld [vmem:[#allocation2 + $0x14] sm:$0xf0] }
 0x18e   : > { %v1153_v1 = vpop.f32.mrf.mxu1 }
 0x18f   : > { %v3962_v62 = vadd.f32 %v1153_v1, %v3810_v19  ;;  %v1642_v19 = vpack.c.b16 %v1638_v58, %v1637_v35 }
 0x190   : > { %v1190_v45 = vpop.f32.mrf.mxu2 }
 0x191   : > { %v3965_v27 = vadd.f32 %v1190_v45, %v3813_v30  ;;  %v3120_v30 = vld [vmem:[%s4878_s1 + $0x78] sm:$0xf] }
 0x192   : > { %v1109_v37 = vpop.f32.mrf.mxu0  ;;  %v2269_v3 = vsel %vm499_vm0, %v3120_v30, 0 }
 0x193   : > { %v3968_v29 = vadd.f32 %v1109_v37, %v3816_v32  ;;  %2278 = vmatpush.bf16.msrb.mxu2 %v2269_v3  ;;  %v3195_v3 = vld [vmem:[#allocation2 + $0x24] sm:$0xf0] }
 0x194   : > { %v1237_v44 = vpop.f32.mrf.mxu3 }
 0x195   : > { %3057 = vmatmul.msk.bf16.gmra.mxu0 %vm486_vm9, %v1641_v59  ;;  %3067 = vmatmul.msk.bf16.gmra.mxu2 %vm486_vm9, %v1641_v59  ;;  %v3973_v20 = vadd.f32 %v1237_v44, %v3821_v63  ;;  %v2185_v59 = vsel %vm499_vm0, %v3110_v31, 0 }
 0x196   : > { %v1156_v38 = vpop.f32.mrf.mxu1  ;;  %2194 = vmatpush.bf16.msrb.mxu0 %v2185_v59 }
 0x197   : > { %v3980_v10 = vadd.f32 %v1156_v38, %v3828_v17  ;;  %v3115_v17 = vld [vmem:[%s4878_s1 + $0x74] sm:$0xf]  ;;  %v3081_v38 = vld [vmem:[#allocation2 + $0x20] sm:$0xf] }
 0x198   : > { %v1193_v32 = vpop.f32.mrf.mxu2 }
 0x199   : > { %v3986_v63 = vadd.f32 %v1193_v32, %v3834_v46  ;;  %3063 = vmatmul.msk.bf16.gmra.mxu1 %vm486_vm9, %v1642_v19  ;;  %3073 = vmatmul.msk.bf16.gmra.mxu3 %vm486_vm9, %v1642_v19  ;;  %v2227_v46 = vsel %vm499_vm0, %v3115_v17, 0 }
 0x19a   : > { %v1111_v33 = vpop.f32.mrf.mxu0  ;;  %2236 = vmatpush.bf16.msrb.mxu1 %v2227_v46 }
 0x19b   : > { %v4000_v0 = vadd.f32 %v1111_v33, %v3848_v28  ;;  %v3077_v28 = vld [vmem:[#allocation2 + $0x10] sm:$0xf] }
 0x19c   : > { %v1240_v42 = vpop.f32.mrf.mxu3 }
 0x19d   : > { %v4003_v39 = vadd.f32 %v1240_v42, %v3853_v51 }
 0x19e   : > { %v1158_v55 = vpop.f32.mrf.mxu1 }
 0x19f   : > { %v4006_v21 = vadd.f32 %v1158_v55, %v3860_v9  ;;  %v3078_v9 = vor.u32 %v3194_v57, %v3077_v28  ;;  %v3085_v55 = vld [vmem:[#allocation2 + $0x30] sm:$0xf] }
 0x1a0   : > { %v1195_v48 = vpop.f32.mrf.mxu2 }
 0x1a1   : > { %v4009_v60 = vadd.f32 %v1195_v48, %v3863_v2  ;;  %v3196_v48 = vld [vmem:[#allocation2 + $0x34] sm:$0xf0] }
 0x1a2   : > { %v1114_v43 = vpop.f32.mrf.mxu0 }
 0x1a3   : > { %v4012_v53 = vadd.f32 %v1114_v43, %v3866_v22 }
 0x1a4   : > { %v1242_v1 = vpop.f32.mrf.mxu3 }
 0x1a5   : > { %3058 = vmatmul.msk.bf16.gmra.mxu0 %vm486_vm9, %v1642_v19  ;;  %3068 = vmatmul.msk.bf16.gmra.mxu2 %vm486_vm9, %v1642_v19  ;;  %v4017_v51 = vadd.f32 %v1242_v1, %v3871_v15 }
 0x1a6   : > { %v1461_v61 = vpop.f32.mrf.mxu1 }
 0x1a7   : > { %v4020_v7 = vadd.f32 %v1461_v61, %v3874_v49 }
 0x1a8   : > { %v1198_v2 = vpop.f32.mrf.mxu2 }
 0x1a9   : > { %v4023_v45 = vadd.f32 %v1198_v2, %v3877_v34  ;;  %3096 = vmatmul.msk.bf16.vlgmr.msra.gmra.mxu1 %vm486_vm9, %v3078_v9  ;;  %3106 = vmatmul.msk.bf16.vlgmr.msra.gmra.mxu3 %vm486_vm9, %v3078_v9 }
 0x1aa   : > { %v1116_v22 = vpop.f32.mrf.mxu0 }
 0x1ab   : > { %v4028_v37 = vadd.f32 %v1116_v22, %v3882_v50 }
 0x1ac   : > { %v1545_v35 = vpop.f32.mrf.mxu3 }
 0x1ad   : > { %v4031_v15 = vadd.f32 %v1545_v35, %v3887_v26 }
 0x1ae   : > { %v1463_v58 = vpop.f32.mrf.mxu1 }
 0x1af   : > { %v4034_v49 = vadd.f32 %v1463_v58, %v3894_v54  ;;  %v3082_v54 = vor.u32 %v3195_v3, %v3081_v38 }
 0x1b0   : > { %v1200_v44 = vpop.f32.mrf.mxu2 }
 0x1b1   : > { %v4037_v34 = vadd.f32 %v1200_v44, %v3897_v36 }
 0x1b2   : > { %v1419_v19 = vpop.f32.mrf.mxu0 }
 0x1b3   : > { %v4040_v30 = vadd.f32 %v1419_v19, %v3900_v47 }
 0x1b4   : > { %v1547_v50 = vpop.f32.mrf.mxu3 }
 0x1b5   : > { %3091 = vmatmul.msk.bf16.vlgmr.msra.gmra.mxu0 %vm486_vm9, %v3078_v9  ;;  %3101 = vmatmul.msk.bf16.vlgmr.msra.gmra.mxu2 %vm486_vm9, %v3078_v9  ;;  %v4045_v26 = vadd.f32 %v1547_v50, %v3905_v16  ;;  %v2030_v9 = vld [vmem:[#allocation2 + $0x10] sm:$0xf] }
 0x1b6   : > { %v1466_v32 = vpop.f32.mrf.mxu1  ;;  %v2050_v22 = vshll.u32 %v2030_v9, 16 }
 0x1b7   : > { %v4048_v18 = vadd.f32 %v1466_v32, %v3908_v6  ;;  %v3197_v32 = vld [vmem:[#allocation2 + $0x44] sm:$0xf0] }
 0x1b8   : > { %v1503_v36 = vpop.f32.mrf.mxu2  ;;  %v2052_v50 = vrot.slane %v2050_v22, 5 }
 0x1b9   : > { %v4051_v52 = vadd.f32 %v1503_v36, %v3911_v13  ;;  %3097 = vmatmul.msk.bf16.gmra.mxu1 %vm486_vm9, %v3082_v54  ;;  %3107 = vmatmul.msk.bf16.gmra.mxu3 %vm486_vm9, %v3082_v54 }
 0x1ba   : > { %v1421_v47 = vpop.f32.mrf.mxu0 }
 0x1bb   : > { %v4056_v31 = vadd.f32 %v1421_v47, %v3916_v56 }
 0x1bc   : > { %v1550_v17 = vpop.f32.mrf.mxu3 }
 0x1bd   : > { %v4059_v16 = vadd.f32 %v1550_v17, %v3921_v41  ;;  %v4098_v17 = vld [vmem:[#allocation2 + $0x14] sm:$0x1] }
 0x1be   : > { %v1468_v33 = vpop.f32.mrf.mxu1 }
 0x1bf   : > { %v4062_v6 = vadd.f32 %v1468_v33, %v3928_v14  ;;  %v3086_v14 = vor.u32 %v3196_v48, %v3085_v55  ;;  %v4100_v33 = vld [vmem:[#allocation2 + $0x1c] sm:$0x1]  ;;  %v2056_v48 = vshll.u32 %v4098_v17, 16 }
 0x1c0   : > { %v1505_v59 = vpop.f32.mrf.mxu2 }
 0x1c1   : > { %v4065_v13 = vadd.f32 %v1505_v59, %v3931_v5 }
 0x1c2   : > { %v1424_v46 = vpop.f32.mrf.mxu0 }
 0x1c3   : > { %v4068_v42 = vadd.f32 %v1424_v46, %v3934_v24 }
 0x1c4   : > { %v1552_v56 = vpop.f32.mrf.mxu3 }
 0x1c5   : > { %3092 = vmatmul.msk.bf16.gmra.mxu0 %vm486_vm9, %v3082_v54  ;;  %3102 = vmatmul.msk.bf16.gmra.mxu2 %vm486_vm9, %v3082_v54  ;;  %v4073_v41 = vadd.f32 %v1552_v56, %v3939_v12  ;;  %v2032_v12 = vld [vmem:[#allocation2 + $0x18] sm:$0xf] }
 0x1c6   : > { %v1471_v43 = vpop.f32.mrf.mxu1  ;;  %v2061_v58 = vshrl.u32 %v2032_v12, 16 }
 0x1c7   : > { %v4076_v28 = vadd.f32 %v1471_v43, %v3942_v40  ;;  %v2047_v40 = vshrl.u32 %v2030_v9, 16  ;;  %v2070_v43 = vshll.u32 %v4100_v33, 16 }
 0x1c8   : > { %v1508_v5 = vpop.f32.mrf.mxu2  ;;  %v2063_v36 = vrot.slane %v2061_v58, 4 }
 0x1c9   : > { %v4079_v57 = vadd.f32 %v1508_v5, %v3945_v8  ;;  %3098 = vmatmul.msk.bf16.gmra.mxu1 %vm486_vm9, %v3086_v14  ;;  %3108 = vmatmul.msk.bf16.gmra.mxu3 %vm486_vm9, %v3086_v14  ;;  %v2064_v8 = vshll.u32 %v2032_v12, 16  ;;  %v2049_v3 = vrot.slane %v2047_v40, 4 }
 0x1ca   : > { %v1426_v24 = vpop.f32.mrf.mxu0 }
 0x1cb   : > { %v4084_v1 = vadd.f32 %v1426_v24, %v3950_v25  ;;  %v2066_v47 = vrot.slane %v2064_v8, 5  ;;  %v2053_v46 = vor.u32 %v2052_v50, %v2049_v3  ;;  %v2058_v8 = vrot.slane %v2056_v48, 5  ;;  %v2034_v3 = vld [vmem:[#allocation2 + $0x20] sm:$0xf]  ;;  %v2036_v50 = vld [vmem:[#allocation2 + $0x28] sm:$0xf] }
 0x1cc   : > { %v1555_v61 = vpop.f32.mrf.mxu3 }
 0x1cd   : > { %v4087_v2 = vadd.f32 %v1555_v61, %v3955_v11  ;;  %v3089_v11 = vld [vmem:[#allocation2 + $0x40] sm:$0xf]  ;;  %v2067_v56 = vor.u32 %v2066_v47, %v2063_v36  ;;  %v2054_v22 = vrot.slane %v2053_v46, 4  ;;  %v2075_v36 = vshrl.u32 %v2034_v3, 16 }
 0x1ce   : > { %v1473_v35 = vpop.f32.mrf.mxu1  ;;  %v3090_v59 = vor.u32 %v3197_v32, %v3089_v11  ;;  %v3138_v61 = vld [vmem:[%s4878_s1 + $0x80] sm:$0xf]  ;;  %v2078_v47 = vshll.u32 %v2034_v3, 16 }
 0x1cf   : > { %v4090_v44 = vadd.f32 %v1473_v35, %v3962_v62  ;;  %v2433_v35 = vsel %vm499_vm0, %v3138_v61, 0  ;;  %v2059_v46 = vsel %vm3392_vm10, %v2054_v22, %v2058_v8  ;;  %v4152_v22 = vld [vmem:[#allocation2 + $0x24] sm:$0x1] }
 0x1d0   : > { %v1510_v19 = vpop.f32.mrf.mxu2  ;;  %2442 = vmatpush.bf16.msra.mxu0 %v2433_v35  ;;  %v4154_v35 = vld [vmem:[#allocation2 + $0x2c] sm:$0x1] }
 0x1d1   : > { %v4093_v38 = vadd.f32 %v1510_v19, %v3965_v27  ;;  %v2068_v19 = vrot.slane %v2067_v56, 4  ;;  %v2098_v3 = vshll.u32 %v4154_v35, 16 }
 0x1d2   : > { %v1429_v25 = vpop.f32.mrf.mxu0 }
 0x1d3   : > { %v4096_v54 = vadd.f32 %v1429_v25, %v3968_v29  ;;  %v3148_v29 = vld [vmem:[%s4878_s1 + $0x88] sm:$0xf]  ;;  %v2072_v25 = vrot.slane %v2070_v43, 5 }
 0x1d4   : > { %v1557_v62 = vpop.f32.mrf.mxu3  ;;  %v2517_v5 = vsel %vm499_vm0, %v3148_v29, 0  ;;  %v2089_v29 = vshrl.u32 %v2036_v50, 16 }
 0x1d5   : > { %3093 = vmatmul.msk.bf16.gmra.mxu0 %vm486_vm9, %v3086_v14  ;;  %3103 = vmatmul.msk.bf16.gmra.mxu2 %vm486_vm9, %v3086_v14  ;;  %v4105_v27 = vadd.f32 %v1557_v62, %v3973_v20  ;;  %v3153_v20 = vld [vmem:[%s4878_s1 + $0x8c] sm:$0xf] }
 0x1d6   : > { %v1476_v55 = vpop.f32.mrf.mxu1  ;;  %2526 = vmatpush.bf16.msra.mxu2 %v2517_v5  ;;  %v2559_v12 = vsel %vm499_vm0, %v3153_v20, 0  ;;  %v2160_v5 = vunpack.c.l.b16 %v2059_v46  ;;  %v2077_v20 = vrot.slane %v2075_v36, 4 }
 0x1d7   : > { %v4114_v24 = vadd.f32 %v1476_v55, %v3980_v10  ;;  %v3143_v10 = vld [vmem:[%s4878_s1 + $0x84] sm:$0xf]  ;;  %2568 = vmatpush.bf16.msra.mxu3 %v2559_v12  ;;  %v2092_v55 = vshll.u32 %v2036_v50, 16  ;;  %v2080_v12 = vrot.slane %v2078_v47, 5 }
 0x1d8   : > { %v1513_v14 = vpop.f32.mrf.mxu2 }
 0x1d9   : > { %v4120_v9 = vadd.f32 %v1513_v14, %v3986_v63  ;;  %3099 = vmatmul.msk.bf16.gmra.mxu1 %vm486_vm9, %v3090_v59  ;;  %3109 = vmatmul.msk.bf16.gmra.mxu3 %vm486_vm9, %v3090_v59  ;;  %v2475_v63 = vsel %vm499_vm0, %v3143_v10, 0  ;;  %v2091_v10 = vrot.slane %v2089_v29, 4  ;;  %v2081_v8 = vor.u32 %v2080_v12, %v2077_v20  ;;  %v2038_v29 = vld [vmem:[#allocation2 + $0x30] sm:$0xf] }
 0x1da   : > { %v1431_v40 = vpop.f32.mrf.mxu0  ;;  %2484 = vmatpush.bf16.msra.mxu1 %v2475_v63 }
 0x1db   : > { %v4134_v58 = vadd.f32 %v1431_v40, %v4000_v0  ;;  %v2073_v0 = vsel %vm3392_vm10, %v2068_v19, %v2072_v25  ;;  %v2094_v40 = vrot.slane %v2092_v55, 5  ;;  %v2040_v55 = vld [vmem:[#allocation2 + $0x38] sm:$0xf] }
 0x1dc   : > { %v1560_v11 = vpop.f32.mrf.mxu3  ;;  %v2161_v14 = vunpack.c.l.b16 %v2073_v0  ;;  %v2100_v0 = vrot.slane %v2098_v3, 5  ;;  %v2120_v12 = vshll.u32 %v2040_v55, 16 }
 0x1dd   : > { %v4137_v32 = vadd.f32 %v1560_v11, %v4003_v39  ;;  %v2095_v25 = vor.u32 %v2094_v40, %v2091_v10 }
 0x1de   : > { %v1478_v62 = vpop.f32.mrf.mxu1  ;;  %v2168_v63 = vpack.c.b16 %v2161_v14, %v2160_v5 }
 0x1df   : > { %v4144_v48 = vadd.f32 %v1478_v62, %v4006_v21  ;;  %v2096_v46 = vrot.slane %v2095_v25, 4 }
 0x1e0   : > { %v1515_v56 = vpop.f32.mrf.mxu2 }
 0x1e1   : > { %v4147_v43 = vadd.f32 %v1515_v56, %v4009_v60  ;;  %v2101_v20 = vsel %vm3392_vm10, %v2096_v46, %v2100_v0 }
 0x1e2   : > { %v1434_v39 = vpop.f32.mrf.mxu0 }
 0x1e3   : > { %v4150_v61 = vadd.f32 %v1434_v39, %v4012_v53  ;;  %v2084_v53 = vshll.u32 %v4152_v22, 16  ;;  %v2106_v39 = vshll.u32 %v2038_v29, 16 }
 0x1e4   : > { %v1562_v21 = vpop.f32.mrf.mxu3 }
 0x1e5   : > { %3094 = vmatmul.msk.bf16.gmra.mxu0 %vm486_vm9, %v3090_v59  ;;  %3104 = vmatmul.msk.bf16.gmra.mxu2 %vm486_vm9, %v3090_v59  ;;  %v4159_v60 = vadd.f32 %v1562_v21, %v4017_v51  ;;  %v2082_v51 = vrot.slane %v2081_v8, 4  ;;  %v2086_v62 = vrot.slane %v2084_v53, 5  ;;  %v2108_v25 = vrot.slane %v2106_v39, 5 }
 0x1e6   : > { %v1709_v19 = vpop.f32.mrf.mxu1 }
 0x1e7   : > { %v4164_v50 = vadd.f32 %v1709_v19, %v4020_v7  ;;  %v2087_v14 = vsel %vm3392_vm10, %v2082_v51, %v2086_v62  ;;  %v2163_v19 = vunpack.c.l.b16 %v2101_v20  ;;  %v4190_v51 = vld [vmem:[#allocation2 + $0x34] sm:$0x1]  ;;  %v4192_v62 = vld [vmem:[#allocation2 + $0x3c] sm:$0x1] }
 0x1e8   : > { %v1518_v11 = vpop.f32.mrf.mxu2  ;;  %v2162_v8 = vunpack.c.l.b16 %v2087_v14 }
 0x1e9   : > { %v4167_v36 = vadd.f32 %v1518_v11, %v4023_v45  ;;  %3116 = vmatmul.msk.bf16.vlgmr.msrb.gmra.mxu1 %vm486_vm9, %v2168_v63  ;;  %3126 = vmatmul.msk.bf16.vlgmr.msrb.gmra.mxu3 %vm486_vm9, %v2168_v63  ;;  %v2103_v45 = vshrl.u32 %v2038_v29, 16 }
 0x1ea   : > { %v1436_v47 = vpop.f32.mrf.mxu0  ;;  %v2169_v46 = vpack.c.b16 %v2163_v19, %v2162_v8 }
 0x1eb   : > { %v4172_v59 = vadd.f32 %v1436_v47, %v4028_v37  ;;  %v2117_v37 = vshrl.u32 %v2040_v55, 16  ;;  %v2105_v53 = vrot.slane %v2103_v45, 4  ;;  %v2122_v47 = vrot.slane %v2120_v12, 5 }
 0x1ec   : > { %v1793_v7 = vpop.f32.mrf.mxu3 }
 0x1ed   : > { %v4175_v56 = vadd.f32 %v1793_v7, %v4031_v15  ;;  %v2119_v11 = vrot.slane %v2117_v37, 4  ;;  %v2109_v0 = vor.u32 %v2108_v25, %v2105_v53  ;;  %v2126_v7 = vshll.u32 %v4192_v62, 16 }
 0x1ee   : > { %v1711_v5 = vpop.f32.mrf.mxu1 }
 0x1ef   : > { %v4182_v10 = vadd.f32 %v1711_v5, %v4034_v49  ;;  %v2123_v55 = vor.u32 %v2122_v47, %v2119_v11  ;;  %v2128_v12 = vrot.slane %v2126_v7, 5 }
 0x1f0   : > { %v1520_v40 = vpop.f32.mrf.mxu2 }
 0x1f1   : > { %v4185_v21 = vadd.f32 %v1520_v40, %v4037_v34  ;;  %v2124_v37 = vrot.slane %v2123_v55, 4  ;;  %v2042_v40 = vld [vmem:[#allocation2 + $0x40] sm:$0xf] }
 0x1f2   : > { %v1667_v15 = vpop.f32.mrf.mxu0  ;;  %v2134_v19 = vshll.u32 %v2042_v40, 16 }
 0x1f3   : > { %v4188_v3 = vadd.f32 %v1667_v15, %v4040_v30  ;;  %v2112_v30 = vshll.u32 %v4190_v51, 16  ;;  %v2044_v15 = vld [vmem:[#allocation2 + $0x48] sm:$0xf]  ;;  %v2129_v11 = vsel %vm3392_vm10, %v2124_v37, %v2128_v12  ;;  %v4228_v37 = vld [vmem:[#allocation2 + $0x44] sm:$0x1] }
 0x1f4   : > { %v1795_v49 = vpop.f32.mrf.mxu3  ;;  %v2148_v47 = vshll.u32 %v2044_v15, 16  ;;  %v2165_v55 = vunpack.c.l.b16 %v2129_v11  ;;  %v4230_v12 = vld [vmem:[#allocation2 + $0x4c] sm:$0x1] }
 0x1f5   : > { %3111 = vmatmul.msk.bf16.vlgmr.msrb.gmra.mxu0 %vm486_vm9, %v2168_v63  ;;  %3121 = vmatmul.msk.bf16.vlgmr.msrb.gmra.mxu2 %vm486_vm9, %v2168_v63  ;;  %v4197_v34 = vadd.f32 %v1795_v49, %v4045_v26  ;;  %v2110_v26 = vrot.slane %v2109_v0, 4  ;;  %v2114_v20 = vrot.slane %v2112_v30, 5 }
 0x1f6   : > { %v1714_v29 = vpop.f32.mrf.mxu1 }
 0x1f7   : > { %v4202_v45 = vadd.f32 %v1714_v29, %v4048_v18  ;;  %v2115_v25 = vsel %vm3392_vm10, %v2110_v26, %v2114_v20  ;;  %v2150_v20 = vrot.slane %v2148_v47, 5 }
 0x1f8   : > { %v1751_v39 = vpop.f32.mrf.mxu2  ;;  %v2164_v30 = vunpack.c.l.b16 %v2115_v25 }
 0x1f9   : > { %v4205_v5 = vadd.f32 %v1751_v39, %v4051_v52  ;;  %3117 = vmatmul.msk.bf16.gmra.mxu1 %vm486_vm9, %v2169_v46  ;;  %3127 = vmatmul.msk.bf16.gmra.mxu3 %vm486_vm9, %v2169_v46  ;;  %v2131_v52 = vshrl.u32 %v2042_v40, 16  ;;  %v2136_v39 = vrot.slane %v2134_v19, 5  ;;  %v2154_v19 = vshll.u32 %v4230_v12, 16 }
 0x1fa   : > { %v1669_v14 = vpop.f32.mrf.mxu0  ;;  %v2170_v40 = vpack.c.b16 %v2165_v55, %v2164_v30 }
 0x1fb   : > { %v4210_v63 = vadd.f32 %v1669_v14, %v4056_v31  ;;  %v2145_v31 = vshrl.u32 %v2044_v15, 16  ;;  %v2133_v7 = vrot.slane %v2131_v52, 4 }
 0x1fc   : > { %v1798_v18 = vpop.f32.mrf.mxu3 }
 0x1fd   : > { %v4213_v8 = vadd.f32 %v1798_v18, %v4059_v16  ;;  %v2147_v26 = vrot.slane %v2145_v31, 4  ;;  %v2137_v15 = vor.u32 %v2136_v39, %v2133_v7 }
 0x1fe   : > { %v1716_v53 = vpop.f32.mrf.mxu1 }
 0x1ff   : > { %v4220_v49 = vadd.f32 %v1716_v53, %v4062_v6  ;;  %v2151_v52 = vor.u32 %v2150_v20, %v2147_v26 }
 0x200   : > { %v1753_v0 = vpop.f32.mrf.mxu2 }
 0x201   : > { %v4223_v29 = vadd.f32 %v1753_v0, %v4065_v13  ;;  %v2152_v0 = vrot.slane %v2151_v52, 4  ;;  %v2350_v52 = vld [vmem:[#allocation2 + $0x10] sm:$0xe] }
 0x202   : > { %v1672_v16 = vpop.f32.mrf.mxu0 }
 0x203   : > { %v4226_v14 = vadd.f32 %v1672_v16, %v4068_v42  ;;  %v2140_v42 = vshll.u32 %v4228_v37, 16  ;;  %v2156_v16 = vrot.slane %v2154_v19, 5 }
 0x204   : > { %v1800_v6 = vpop.f32.mrf.mxu3 }
 0x205   : > { %3112 = vmatmul.msk.bf16.gmra.mxu0 %vm486_vm9, %v2169_v46  ;;  %3122 = vmatmul.msk.bf16.gmra.mxu2 %vm486_vm9, %v2169_v46  ;;  %v4235_v13 = vadd.f32 %v1800_v6, %v4073_v41  ;;  %v2138_v41 = vrot.slane %v2137_v15, 4  ;;  %v2142_v47 = vrot.slane %v2140_v42, 5  ;;  %v2157_v7 = vsel %vm3392_vm10, %v2152_v0, %v2156_v16 }
 0x206   : > { %v1719_v18 = vpop.f32.mrf.mxu1  ;;  %v2167_v15 = vunpack.c.l.b16 %v2157_v7 }
 0x207   : > { %v4240_v53 = vadd.f32 %v1719_v18, %v4076_v28 }
 0x208   : > { %v1756_v25 = vpop.f32.mrf.mxu2 }
 0x209   : > { %v4243_v11 = vadd.f32 %v1756_v25, %v4079_v57  ;;  %3118 = vmatmul.msk.bf16.gmra.mxu1 %vm486_vm9, %v2170_v40  ;;  %3128 = vmatmul.msk.bf16.gmra.mxu3 %vm486_vm9, %v2170_v40  ;;  %v2143_v57 = vsel %vm3392_vm10, %v2138_v41, %v2142_v47  ;;  %v2351_v25 = vld [vmem:[#allocation2 + $0x18] sm:$0xe]  ;;  %v2376_v41 = vrot.slane %v4098_v17, 5 }
 0x20a   : > { %v1674_v31 = vpop.f32.mrf.mxu0  ;;  %v2166_v6 = vunpack.c.l.b16 %v2143_v57  ;;  %v3131_v47 = vrot.slane %v2351_v25, 9  ;;  %v2384_v25 = vrot.slane %v4152_v22, 5 }
 0x20b   : > { %v4248_v46 = vadd.f32 %v1674_v31, %v4084_v1 }
 0x20c   : > { %v1803_v30 = vpop.f32.mrf.mxu3 }
 0x20d   : > { %v4251_v28 = vadd.f32 %v1803_v30, %v4087_v2 }
 0x20e   : > { %v1721_v55 = vpop.f32.mrf.mxu1 }
 0x20f   : > { %v4258_v39 = vadd.f32 %v1721_v55, %v4090_v44  ;;  %v2171_v44 = vpack.c.b16 %v2167_v15, %v2166_v6 }
 0x210   : > { %v1758_v26 = vpop.f32.mrf.mxu2 }
 0x211   : > { %v4261_v1 = vadd.f32 %v1758_v26, %v4093_v38 }
 0x212   : > { %v1677_v20 = vpop.f32.mrf.mxu0 }
 0x213   : > { %v4264_v2 = vadd.f32 %v1677_v20, %v4096_v54 }
 0x214   : > { %v1805_v18 = vpop.f32.mrf.mxu3 }
 0x215   : > { %3113 = vmatmul.msk.bf16.gmra.mxu0 %vm486_vm9, %v2170_v40  ;;  %3123 = vmatmul.msk.bf16.gmra.mxu2 %vm486_vm9, %v2170_v40  ;;  %v4269_v23 = vadd.f32 %v1805_v18, %v4105_v27  ;;  %v3130_v40 = vrot.slane %v2350_v52, 9  ;;  %v2352_v18 = vld [vmem:[#allocation2 + $0x20] sm:$0xe]  ;;  %v2353_v52 = vld [vmem:[#allocation2 + $0x28] sm:$0xe] }
 0x216   : > { %v1724_v42 = vpop.f32.mrf.mxu1 }
 0x217   : > { %v4272_v38 = vadd.f32 %v1724_v42, %v4114_v24  ;;  %v2380_v24 = vrot.slane %v4100_v33, 5  ;;  %v2377_v30 = vsel %vm3515_vm13, %v3130_v40, %v2376_v41 }
 0x218   : > { %v1761_v19 = vpop.f32.mrf.mxu2  ;;  %v2408_v33 = vunpack.c.l.b16 %v2377_v30 }
 0x219   : > { %v4275_v31 = vadd.f32 %v1761_v19, %v4120_v9  ;;  %3119 = vmatmul.msk.bf16.gmra.mxu1 %vm486_vm9, %v2171_v44  ;;  %3129 = vmatmul.msk.bf16.gmra.mxu3 %vm486_vm9, %v2171_v44  ;;  %v2381_v55 = vsel %vm3515_vm13, %v3131_v47, %v2380_v24 }
 0x21a   : > { %v1679_v54 = vpop.f32.mrf.mxu0  ;;  %v2409_v26 = vunpack.c.l.b16 %v2381_v55 }
 0x21b   : > { %v4280_v27 = vadd.f32 %v1679_v54, %v4134_v58  ;;  %v3133_v54 = vrot.slane %v2353_v52, 9 }
 0x21c   : > { %v1808_v0 = vpop.f32.mrf.mxu3 }
 0x21d   : > { %v4285_v16 = vadd.f32 %v1808_v0, %v4137_v32 }
 0x21e   : > { %v1726_v9 = vpop.f32.mrf.mxu1 }
 0x21f   : > { %v4292_v57 = vadd.f32 %v1726_v9, %v4144_v48  ;;  %v2416_v48 = vpack.c.b16 %v2409_v26, %v2408_v33  ;;  %v2354_v33 = vld [vmem:[#allocation2 + $0x30] sm:$0xe] }
 0x220   : > { %v1763_v58 = vpop.f32.mrf.mxu2 }
 0x221   : > { %v4295_v17 = vadd.f32 %v1763_v58, %v4147_v43 }
 0x222   : > { %v1682_v7 = vpop.f32.mrf.mxu0 }
 0x223   : > { %v4298_v32 = vadd.f32 %v1682_v7, %v4150_v61 }
 0x224   : > { %v1810_v20 = vpop.f32.mrf.mxu3 }
 0x225   : > { %3114 = vmatmul.msk.bf16.gmra.mxu0 %vm486_vm9, %v2171_v44  ;;  %3124 = vmatmul.msk.bf16.gmra.mxu2 %vm486_vm9, %v2171_v44  ;;  %v4303_v6 = vadd.f32 %v1810_v20, %v4159_v60  ;;  %v3132_v44 = vrot.slane %v2352_v18, 9  ;;  %v2355_v20 = vld [vmem:[#allocation2 + $0x38] sm:$0xe]  ;;  %v2392_v18 = vrot.slane %v4190_v51, 5 }
 0x226   : > { %v1918_v15 = vpop.f32.mrf.mxu1 }
 0x227   : > { %v4306_v43 = vadd.f32 %v1918_v15, %v4164_v50  ;;  %v2388_v50 = vrot.slane %v4154_v35, 5  ;;  %v2385_v47 = vsel %vm3515_vm13, %v3132_v44, %v2384_v25 }
 0x228   : > { %v1766_v42 = vpop.f32.mrf.mxu2  ;;  %v2410_v35 = vunpack.c.l.b16 %v2385_v47 }
 0x229   : > { %v4309_v19 = vadd.f32 %v1766_v42, %v4167_v36  ;;  %3144 = vmatmul.msk.bf16.vlgmr.msra.gmra.mxu1 %vm486_vm9, %v2416_v48  ;;  %3154 = vmatmul.msk.bf16.vlgmr.msra.gmra.mxu3 %vm486_vm9, %v2416_v48  ;;  %v2389_v24 = vsel %vm3515_vm13, %v3133_v54, %v2388_v50  ;;  %v3135_v42 = vrot.slane %v2355_v20, 9 }
 0x22a   : > { %v1684_v61 = vpop.f32.mrf.mxu0  ;;  %v2411_v30 = vunpack.c.l.b16 %v2389_v24 }
 0x22b   : > { %v4314_v60 = vadd.f32 %v1684_v61, %v4172_v59 }
 0x22c   : > { %v2002_v40 = vpop.f32.mrf.mxu3 }
 0x22d   : > { %v4319_v41 = vadd.f32 %v2002_v40, %v4175_v56 }
 0x22e   : > { %v1920_v36 = vpop.f32.mrf.mxu1 }
 0x22f   : > { %v4326_v0 = vadd.f32 %v1920_v36, %v4182_v10  ;;  %v2417_v10 = vpack.c.b16 %v2411_v30, %v2410_v35  ;;  %v2357_v35 = vld [vmem:[#allocation2 + $0x48] sm:$0xe] }
 0x230   : > { %v1768_v59 = vpop.f32.mrf.mxu2 }
 0x231   : > { %v4329_v22 = vadd.f32 %v1768_v59, %v4185_v21  ;;  %v2356_v59 = vld [vmem:[#allocation2 + $0x40] sm:$0xe] }
 0x232   : > { %v1876_v9 = vpop.f32.mrf.mxu0 }
 0x233   : > { %v4332_v56 = vadd.f32 %v1876_v9, %v4188_v3 }
 0x234   : > { %v2004_v55 = vpop.f32.mrf.mxu3 }
 0x235   : > { %3139 = vmatmul.msk.bf16.vlgmr.msra.gmra.mxu0 %vm486_vm9, %v2416_v48  ;;  %3149 = vmatmul.msk.bf16.vlgmr.msra.gmra.mxu2 %vm486_vm9, %v2416_v48  ;;  %v4337_v58 = vadd.f32 %v2004_v55, %v4197_v34  ;;  %v3134_v48 = vrot.slane %v2354_v33, 9  ;;  %v3136_v55 = vrot.slane %v2356_v59, 9 }
 0x236   : > { %v1923_v7 = vpop.f32.mrf.mxu1 }
 0x237   : > { %v4340_v21 = vadd.f32 %v1923_v7, %v4202_v45  ;;  %v2396_v45 = vrot.slane %v4192_v62, 5  ;;  %v2393_v44 = vsel %vm3515_vm13, %v3134_v48, %v2392_v18  ;;  %v3137_v7 = vrot.slane %v2357_v35, 9 }
 0x238   : > { %v1960_v26 = vpop.f32.mrf.mxu2  ;;  %v2412_v62 = vunpack.c.l.b16 %v2393_v44 }
 0x239   : > { %v4343_v15 = vadd.f32 %v1960_v26, %v4205_v5  ;;  %3145 = vmatmul.msk.bf16.gmra.mxu1 %vm486_vm9, %v2417_v10  ;;  %3155 = vmatmul.msk.bf16.gmra.mxu3 %vm486_vm9, %v2417_v10  ;;  %v2397_v25 = vsel %vm3515_vm13, %v3135_v42, %v2396_v45 }
 0x23a   : > { %v1878_v3 = vpop.f32.mrf.mxu0  ;;  %v2413_v40 = vunpack.c.l.b16 %v2397_v25 }
 0x23b   : > { %v4348_v34 = vadd.f32 %v1878_v3, %v4210_v63 }
 0x23c   : > { %v2007_v52 = vpop.f32.mrf.mxu3 }
 0x23d   : > { %v4353_v61 = vadd.f32 %v2007_v52, %v4213_v8 }
 0x23e   : > { %v1925_v5 = vpop.f32.mrf.mxu1 }
 0x23f   : > { %v4360_v54 = vadd.f32 %v1925_v5, %v4220_v49  ;;  %v2418_v49 = vpack.c.b16 %v2413_v40, %v2412_v62 }
 0x240   : > { %v1962_v63 = vpop.f32.mrf.mxu2 }
 0x241   : > { %v4363_v51 = vadd.f32 %v1962_v63, %v4223_v29 }
 0x242   : > { %v1881_v50 = vpop.f32.mrf.mxu0 }
 0x243   : > { %v4366_v8 = vadd.f32 %v1881_v50, %v4226_v14 }
 0x244   : > { %v2009_v36 = vpop.f32.mrf.mxu3 }
 0x245   : > { %3140 = vmatmul.msk.bf16.gmra.mxu0 %vm486_vm9, %v2417_v10  ;;  %3150 = vmatmul.msk.bf16.gmra.mxu2 %vm486_vm9, %v2417_v10  ;;  %v4371_v47 = vadd.f32 %v2009_v36, %v4235_v13  ;;  %v2400_v10 = vrot.slane %v4228_v37, 5 }
 0x246   : > { %v1928_v24 = vpop.f32.mrf.mxu1 }
 0x247   : > { %v4374_v29 = vadd.f32 %v1928_v24, %v4240_v53  ;;  %v2404_v53 = vrot.slane %v4230_v12, 5  ;;  %v2401_v20 = vsel %vm3515_vm13, %v3136_v55, %v2400_v10 }
 0x248   : > { %v1965_v9 = vpop.f32.mrf.mxu2  ;;  %v2414_v12 = vunpack.c.l.b16 %v2401_v20 }
 0x249   : > { %v4377_v30 = vadd.f32 %v1965_v9, %v4243_v11  ;;  %3146 = vmatmul.msk.bf16.gmra.mxu1 %vm486_vm9, %v2418_v49  ;;  %3156 = vmatmul.msk.bf16.gmra.mxu3 %vm486_vm9, %v2418_v49  ;;  %v2405_v3 = vsel %vm3515_vm13, %v3137_v7, %v2404_v53 }
 0x24a   : > { %v1883_v14 = vpop.f32.mrf.mxu0  ;;  %v2415_v42 = vunpack.c.l.b16 %v2405_v3 }
 0x24b   : > { %v4382_v13 = vadd.f32 %v1883_v14, %v4248_v46 }
 0x24c   : > { %v2012_v33 = vpop.f32.mrf.mxu3 }
 0x24d   : > { %v4387_v26 = vadd.f32 %v2012_v33, %v4251_v28 }
 0x24e   : > { %v1930_v11 = vpop.f32.mrf.mxu1 }
 0x24f   : > { %v4394_v48 = vadd.f32 %v1930_v11, %v4258_v39  ;;  %v2419_v39 = vpack.c.b16 %v2415_v42, %v2414_v12 }
 0x250   : > { %v1967_v46 = vpop.f32.mrf.mxu2 }
 0x251   : > { %v4397_v37 = vadd.f32 %v1967_v46, %v4261_v1 }
 0x252   : > { %v1886_v18 = vpop.f32.mrf.mxu0 }
 0x253   : > { %v4400_v28 = vadd.f32 %v1886_v18, %v4264_v2 }
 0x254   : > { %v2014_v45 = vpop.f32.mrf.mxu3 }
 0x255   : > { %3141 = vmatmul.msk.bf16.gmra.mxu0 %vm486_vm9, %v2418_v49  ;;  %3151 = vmatmul.msk.bf16.gmra.mxu2 %vm486_vm9, %v2418_v49  ;;  %v4405_v4 = vadd.f32 %v2014_v45, %v4269_v23 }
 0x256   : > { %v1933_v52 = vpop.f32.mrf.mxu1 }
 0x257   : > { %v4408_v5 = vadd.f32 %v1933_v52, %v4272_v38 }
 0x258   : > { %v1970_v1 = vpop.f32.mrf.mxu2 }
 0x259   : > { %v4411_v44 = vadd.f32 %v1970_v1, %v4275_v31  ;;  %3147 = vmatmul.msk.bf16.gmra.mxu1 %vm486_vm9, %v2419_v39  ;;  %3157 = vmatmul.msk.bf16.gmra.mxu3 %vm486_vm9, %v2419_v39 }
 0x25a   : > { %v1888_v25 = vpop.f32.mrf.mxu0 }
 0x25b   : > { %v4416_v2 = vadd.f32 %v1888_v25, %v4280_v27 }
 0x25c   : > { %v2017_v63 = vpop.f32.mrf.mxu3 }
 0x25d   : > { %v4419_v23 = vadd.f32 %v2017_v63, %v4285_v16 }
 0x25e   : > { %v1935_v50 = vpop.f32.mrf.mxu1 }
 0x25f   : > { %v4422_v38 = vadd.f32 %v1935_v50, %v4292_v57 }
 0x260   : > { %v1972_v62 = vpop.f32.mrf.mxu2 }
 0x261   : > { %v4425_v31 = vadd.f32 %v1972_v62, %v4295_v17 }
 0x262   : > { %v1891_v40 = vpop.f32.mrf.mxu0 }
 0x263   : > { %v4428_v36 = vadd.f32 %v1891_v40, %v4298_v32 }
 0x264   : > { %v2019_v49 = vpop.f32.mrf.mxu3 }
 0x265   : > { %3142 = vmatmul.msk.bf16.gmra.mxu0 %vm486_vm9, %v2419_v39  ;;  %3152 = vmatmul.msk.bf16.gmra.mxu2 %vm486_vm9, %v2419_v39  ;;  %v4433_v27 = vadd.f32 %v2019_v49, %v4303_v6 }
 0x266   : > { %v2238_v16 = vpop.f32.mrf.mxu1 }
 0x267   : > { %v4436_v57 = vadd.f32 %v2238_v16, %v4306_v43 }
 0x268   : > { %v1975_v24 = vpop.f32.mrf.mxu2 }
 0x269   : > { %v1986_v17 = vadd.f32 %v1975_v24, %v4309_v19 }
 0x26a   : > { %v1893_v59 = vpop.f32.mrf.mxu0 }
 0x26b   : > { %v4440_v9 = vadd.f32 %v1893_v59, %v4314_v60 }
 0x26c   : > { %v2322_v32 = vpop.f32.mrf.mxu3 }
 0x26d   : > { %v4443_v35 = vadd.f32 %v2322_v32, %v4319_v41 }
 0x26e   : > { %v2240_v14 = vpop.f32.mrf.mxu1 }
 0x26f   : > { %v4446_v55 = vadd.f32 %v2240_v14, %v4326_v0 }
 0x270   : > { %v1977_v6 = vpop.f32.mrf.mxu2 }
 0x271   : > { %v4449_v10 = vadd.f32 %v1977_v6, %v4329_v22 }
 0x272   : > { %v2196_v43 = vpop.f32.mrf.mxu0 }
 0x273   : > { %v2216_v7 = vadd.f32 %v2196_v43, %v4332_v56 }
 0x274   : > { %v2324_v19 = vpop.f32.mrf.mxu3 }
 0x275   : > { %v4453_v53 = vadd.f32 %v2324_v19, %v4337_v58 }
 0x276   : > { %v2243_v60 = vpop.f32.mrf.mxu1 }
 0x277   : > { %v4456_v33 = vadd.f32 %v2243_v60, %v4340_v21 }
 0x278   : > { %v2280_v41 = vpop.f32.mrf.mxu2 }
 0x279   : > { %v2300_v11 = vadd.f32 %v2280_v41, %v4343_v15 }
 0x27a   : > { %v2198_v0 = vpop.f32.mrf.mxu0 }
 0x27b   : > { %v2217_v20 = vadd.f32 %v2198_v0, %v4348_v34 }
 0x27c   : > { %v2327_v3 = vpop.f32.mrf.mxu3 }
 0x27d   : > { %v4461_v22 = vadd.f32 %v2327_v3, %v4353_v61 }
 0x27e   : > { %v2245_v46 = vpop.f32.mrf.mxu1 }
 0x27f   : > { %v4464_v56 = vadd.f32 %v2245_v46, %v4360_v54 }
 0x280   : > { %v2282_v58 = vpop.f32.mrf.mxu2 }
 0x281   : > { %v4467_v18 = vadd.f32 %v2282_v58, %v4363_v51 }
 0x282   : > { %v2201_v21 = vpop.f32.mrf.mxu0 }
 0x283   : > { %v4470_v12 = vadd.f32 %v2201_v21, %v4366_v8 }
 0x284   : > { %v2329_v15 = vpop.f32.mrf.mxu3 }
 0x285   : > { %v4473_v42 = vadd.f32 %v2329_v15, %v4371_v47 }
 0x286   : > { %v2248_v34 = vpop.f32.mrf.mxu1 }
 0x287   : > { %v4476_v61 = vadd.f32 %v2248_v34, %v4374_v29 }
 0x288   : > { %v2285_v45 = vpop.f32.mrf.mxu2 }
 0x289   : > { %v4479_v54 = vadd.f32 %v2285_v45, %v4377_v30 }
 0x28a   : > { %v2203_v39 = vpop.f32.mrf.mxu0 }
 0x28b   : > { %v4482_v51 = vadd.f32 %v2203_v39, %v4382_v13 }
 0x28c   : > { %v2332_v52 = vpop.f32.mrf.mxu3 }
 0x28d   : > { %v4485_v8 = vadd.f32 %v2332_v52, %v4387_v26 }
 0x28e   : > { %v2250_v1 = vpop.f32.mrf.mxu1 }
 0x28f   : > { %v4488_v47 = vadd.f32 %v2250_v1, %v4394_v48 }
 0x290   : > { %v2287_v25 = vpop.f32.mrf.mxu2 }
 0x291   : > { %v4491_v29 = vadd.f32 %v2287_v25, %v4397_v37 }
 0x292   : > { %v2206_v63 = vpop.f32.mrf.mxu0 }
 0x293   : > { %v4494_v30 = vadd.f32 %v2206_v63, %v4400_v28 }
 0x294   : > { %v2334_v50 = vpop.f32.mrf.mxu3 }
 0x295   : > { %v4497_v13 = vadd.f32 %v2334_v50, %v4405_v4 }
 0x296   : > { %v2253_v62 = vpop.f32.mrf.mxu1 }
 0x297   : > { %v4500_v26 = vadd.f32 %v2253_v62, %v4408_v5 }
 0x298   : > { %v2290_v40 = vpop.f32.mrf.mxu2 }
 0x299   : > { %v4503_v48 = vadd.f32 %v2290_v40, %v4411_v44 }
 0x29a   : > { %v2208_v49 = vpop.f32.mrf.mxu0 }
 0x29b   : > { %v4506_v37 = vadd.f32 %v2208_v49, %v4416_v2 }
 0x29c   : > { %v2337_v16 = vpop.f32.mrf.mxu3 }
 0x29d   : > { %v4509_v28 = vadd.f32 %v2337_v16, %v4419_v23 }
 0x29e   : > { %v4511_v24 = vpop.f32.mrf.mxu1 }
 0x2a0   : > { %v2292_v4 = vpop.f32.mrf.mxu2 }
 0x2a1   : > { %v4514_v59 = vadd.f32 %v2292_v4, %v4425_v31 }
 0x2a2   : > { %v2211_v5 = vpop.f32.mrf.mxu0 }
 0x2a3   : > { %v4517_v32 = vadd.f32 %v2211_v5, %v4428_v36 }
 0x2a4   : > { %v4519_v44 = vpop.f32.mrf.mxu3 }
 0x2a6   : > { %v2486_v14 = vpop.f32.mrf.mxu1 }
 0x2a7   : > { %v4530_v36 = vadd.f32 %v2486_v14, %v4436_v57 }
 0x2a8   : > { %v2295_v6 = vpop.f32.mrf.mxu2 }
 0x2a9   : > { %v4521_v2 = vadd.f32 %v2295_v6, %v1986_v17  ;;  %v2652_v45 = vmul.f32 %v4530_v36, %v4530_v36 }
 0x2aa   : > { %v4523_v43 = vpop.f32.mrf.mxu0 }
 0x2ac   : > { %v2570_v23 = vpop.f32.mrf.mxu3 }
 0x2ad   : > { %v4548_v39 = vadd.f32 %v2570_v23, %v4443_v35 }
 0x2ae   : > { %v2488_v19 = vpop.f32.mrf.mxu1 }
 0x2af   : > { %v4539_v34 = vadd.f32 %v2488_v19, %v4446_v55  ;;  %v2684_v49 = vmul.f32 %v4548_v39, %v4548_v39 }
 0x2b0   : > { %v4525_v60 = vpop.f32.mrf.mxu2 }
 0x2b1   : > { %v2653_v25 = vmul.f32 %v4539_v34, %v4539_v34 }
 0x2b2   : > { %v2444_v41 = vpop.f32.mrf.mxu0 }
 0x2b3   : > { %v4527_v31 = vadd.f32 %v2444_v41, %v2216_v7 }
 0x2b4   : > { %v2572_v0 = vpop.f32.mrf.mxu3 }
 0x2b5   : > { %v2644_v17 = vmul.f32 %v4527_v31, %v4527_v31  ;;  %v2598_v7 = vadd.f32 %v4530_v36, %v4527_v31  ;;  %v4556_v50 = vadd.f32 %v2572_v0, %v4453_v53 }
 0x2b6   : > { %v2491_v3 = vpop.f32.mrf.mxu1 }
 0x2b7   : > { %v4573_v23 = vadd.f32 %v2491_v3, %v4456_v33 }
 0x2b8   : > { %v2528_v46 = vpop.f32.mrf.mxu2 }
 0x2b9   : > { %v4532_v58 = vadd.f32 %v2528_v46, %v2300_v11  ;;  %v2654_v33 = vmul.f32 %v4573_v23, %v4573_v23 }
 0x2ba   : > { %v2446_v21 = vpop.f32.mrf.mxu0 }
 0x2bb   : > { %v4536_v15 = vadd.f32 %v2446_v21, %v2217_v20  ;;  %v2668_v57 = vmul.f32 %v4532_v58, %v4532_v58  ;;  %v2606_v52 = vadd.f32 %v2598_v7, %v4532_v58  ;;  %v2660_v20 = vadd.f32 %v2652_v45, %v2644_v17 }
 0x2bc   : > { %v2575_v11 = vpop.f32.mrf.mxu3 }
 0x2bd   : > { %v2645_v55 = vmul.f32 %v4536_v15, %v4536_v15  ;;  %v2676_v62 = vadd.f32 %v2668_v57, %v2660_v20  ;;  %v2599_v40 = vadd.f32 %v4539_v34, %v4536_v15  ;;  %v2614_v16 = vadd.f32 %v2606_v52, %v4548_v39 }
 0x2be   : > { %v2493_v1 = vpop.f32.mrf.mxu1  ;;  %v4585_v3 = vadd.f32 %v2575_v11, %v4461_v22 }
 0x2bf   : > { %v2661_v5 = vadd.f32 %v2653_v25, %v2645_v55  ;;  %v2692_v19 = vadd.f32 %v2684_v49, %v2676_v62  ;;  %v2623_v21 = vsel %vm2622_vm14, %v2614_v16, 0.0 }
 0x2c0   : > { %v2530_v63 = vpop.f32.mrf.mxu2 }
 0x2c1   : > { %v4561_v35 = vadd.f32 %v2530_v63, %v4467_v18  ;;  %v2685_v18 = vmul.f32 %v4556_v50, %v4556_v50  ;;  %v2700_v20 = vsel %vm2622_vm14, %v2692_v19, 0.0 }
 0x2c2   : > { %v2449_v4 = vpop.f32.mrf.mxu0 }
 0x2c3   : > { %v2607_v14 = vadd.f32 %v2599_v40, %v4561_v35  ;;  %v2669_v53 = vmul.f32 %v4561_v35, %v4561_v35  ;;  %v4570_v6 = vadd.f32 %v2449_v4, %v4470_v12  ;;  %v4601_v4 = vadd.f32 %v2493_v1, %v4464_v56 }
 0x2c4   : > { %v2577_v46 = vpop.f32.mrf.mxu3 }
 0x2c5   : > { %v2615_v41 = vadd.f32 %v2607_v14, %v4556_v50  ;;  %v2677_v0 = vadd.f32 %v2669_v53, %v2661_v5  ;;  %v2646_v12 = vmul.f32 %v4570_v6, %v4570_v6  ;;  %v2600_v25 = vadd.f32 %v4573_v23, %v4570_v6 }
 0x2c6   : > { %v2496_v45 = vpop.f32.mrf.mxu1  ;;  %v2686_v5 = vmul.f32 %v4585_v3, %v4585_v3  ;;  %v4612_v56 = vadd.f32 %v2577_v46, %v4473_v42 }
 0x2c7   : > { %v2624_v17 = vsel %vm2622_vm14, %v2615_v41, 0.0  ;;  %v2693_v7 = vadd.f32 %v2685_v18, %v2677_v0  ;;  %v2662_v49 = vadd.f32 %v2654_v33, %v2646_v12  ;;  %v2655_v41 = vmul.f32 %v4601_v4, %v4601_v4 }
 0x2c8   : > { %v2625_v57 = vadd.f32 %v2624_v17, %v2623_v21  ;;  %v2533_v52 = vpop.f32.mrf.mxu2  ;;  %v2687_v46 = vmul.f32 %v4612_v56, %v4612_v56 }
 0x2c9   : > { %v2701_v55 = vsel %vm2622_vm14, %v2693_v7, 0.0  ;;  %v4592_v63 = vadd.f32 %v2533_v52, %v4479_v54 }
 0x2ca   : > { %v2702_v62 = vadd.f32 %v2701_v55, %v2700_v20  ;;  %v2451_v40 = vpop.f32.mrf.mxu0 }
 0x2cb   : > { %v2608_v16 = vadd.f32 %v2600_v25, %v4592_v63  ;;  %v2670_v22 = vmul.f32 %v4592_v63, %v4592_v63  ;;  %v4598_v11 = vadd.f32 %v2451_v40, %v4482_v51  ;;  %v4629_v25 = vadd.f32 %v2496_v45, %v4476_v61 }
 0x2cc   : > { %v2580_v0 = vpop.f32.mrf.mxu3 }
 0x2cd   : > { %v2616_v54 = vadd.f32 %v2608_v16, %v4585_v3  ;;  %v2678_v14 = vadd.f32 %v2670_v22, %v2662_v49  ;;  %v2647_v19 = vmul.f32 %v4598_v11, %v4598_v11  ;;  %v2601_v17 = vadd.f32 %v4601_v4, %v4598_v11 }
 0x2ce   : > { %v2498_v7 = vpop.f32.mrf.mxu1  ;;  %v4636_v22 = vadd.f32 %v2580_v0, %v4485_v8  ;;  %v2656_v61 = vmul.f32 %v4629_v25, %v4629_v25 }
 0x2cf   : > { %v2626_v53 = vsel %vm2622_vm14, %v2616_v54, 0.0  ;;  %v2694_v18 = vadd.f32 %v2686_v5, %v2678_v14  ;;  %v2663_v20 = vadd.f32 %v2655_v41, %v2647_v19 }
 0x2d0   : > { %v2627_v51 = vadd.f32 %v2626_v53, %v2625_v57  ;;  %v2535_v21 = vpop.f32.mrf.mxu2 }
 0x2d1   : > { %v2703_v1 = vsel %vm2622_vm14, %v2694_v18, 0.0  ;;  %v4618_v12 = vadd.f32 %v2535_v21, %v4491_v29 }
 0x2d2   : > { %v2704_v33 = vadd.f32 %v2703_v1, %v2702_v62  ;;  %v2454_v52 = vpop.f32.mrf.mxu0  ;;  %v2688_v1 = vmul.f32 %v4636_v22, %v4636_v22 }
 0x2d3   : > { %v2609_v55 = vadd.f32 %v2601_v17, %v4618_v12  ;;  %v2671_v57 = vmul.f32 %v4618_v12, %v4618_v12  ;;  %v4624_v42 = vadd.f32 %v2454_v52, %v4494_v30  ;;  %v4639_v30 = vadd.f32 %v2498_v7, %v4488_v47 }
 0x2d4   : > { %v2582_v19 = vpop.f32.mrf.mxu3 }
 0x2d5   : > { %v2617_v29 = vadd.f32 %v2609_v55, %v4612_v56  ;;  %v2679_v40 = vadd.f32 %v2671_v57, %v2663_v20  ;;  %v2648_v16 = vmul.f32 %v4624_v42, %v4624_v42  ;;  %v2602_v14 = vadd.f32 %v4629_v25, %v4624_v42 }
 0x2d6   : > { %v2501_v0 = vpop.f32.mrf.mxu1  ;;  %v4666_v57 = vadd.f32 %v2582_v19, %v4497_v13 }
 0x2d7   : > { %v2628_v62 = vsel %vm2622_vm14, %v2617_v29, 0.0  ;;  %v2695_v49 = vadd.f32 %v2687_v46, %v2679_v40  ;;  %v2664_v41 = vadd.f32 %v2656_v61, %v2648_v16  ;;  %v4669_v46 = vadd.f32 %v2501_v0, %v4500_v26 }
 0x2d8   : > { %v2629_v5 = vadd.f32 %v2628_v62, %v2627_v51  ;;  %v2538_v54 = vpop.f32.mrf.mxu2  ;;  %v2689_v26 = vmul.f32 %v4666_v57, %v4666_v57 }
 0x2d9   : > { %v2705_v45 = vsel %vm2622_vm14, %v2695_v49, 0.0  ;;  %v4647_v53 = vadd.f32 %v2538_v54, %v4503_v48  ;;  %v2657_v48 = vmul.f32 %v4639_v30, %v4639_v30 }
 0x2da   : > { %v2706_v18 = vadd.f32 %v2705_v45, %v2704_v33  ;;  %v2456_v8 = vpop.f32.mrf.mxu0 }
 0x2db   : > { %v2610_v47 = vadd.f32 %v2602_v14, %v4647_v53  ;;  %v2672_v51 = vmul.f32 %v4647_v53, %v4647_v53  ;;  %v4653_v21 = vadd.f32 %v2456_v8, %v4506_v37 }
 0x2dc   : > { %v2585_v14 = vpop.f32.mrf.mxu3 }
 0x2dd   : > { %v2618_v17 = vadd.f32 %v2610_v47, %v4636_v22  ;;  %v2680_v7 = vadd.f32 %v2672_v51, %v2664_v41  ;;  %v2603_v33 = vadd.f32 %v4639_v30, %v4653_v21  ;;  %v2649_v52 = vmul.f32 %v4653_v21, %v4653_v21 }
 0x2de   : > { %v2503_v19 = vpop.f32.mrf.mxu1 }
 0x2df   : > { %v2630_v20 = vsel %vm2622_vm14, %v2618_v17, 0.0  ;;  %v2696_v55 = vadd.f32 %v2688_v1, %v2680_v7  ;;  %v2665_v37 = vadd.f32 %v2657_v48, %v2649_v52  ;;  %v4694_v1 = vadd.f32 %v2585_v14, %v4509_v28 }
 0x2e0   : > { %v2631_v29 = vadd.f32 %v2630_v20, %v2629_v5  ;;  %v2540_v40 = vpop.f32.mrf.mxu2  ;;  %v2658_v5 = vmul.f32 %v4669_v46, %v4669_v46 }
 0x2e1   : > { %v2707_v62 = vsel %vm2622_vm14, %v2696_v55, 0.0  ;;  %v4673_v49 = vadd.f32 %v2540_v40, %v4514_v59  ;;  %v3240_v55 = vmov 256.0  }
 0x2e2   : > { %v2708_v16 = vadd.f32 %v2707_v62, %v2706_v18  ;;  %v2459_v54 = vpop.f32.mrf.mxu0  ;;  %3227 = vrcp.f32 %v3240_v55 }
 0x2e3   : > { %v2611_v61 = vadd.f32 %v2603_v33, %v4673_v49  ;;  %v2673_v45 = vmul.f32 %v4673_v49, %v4673_v49  ;;  %v4679_v13 = vadd.f32 %v2459_v54, %v4517_v32  ;;  %v2265_v32 = vadd.f32 %v4511_v24, %v4422_v38 }
 0x2e4   : > { %v2223_v33 = vadd.f32 %v4523_v43, %v4440_v9  ;;  %v2349_v54 = vadd.f32 %v4519_v44, %v4433_v27 }
 0x2e5   : > { %v2619_v59 = vadd.f32 %v2611_v61, %v4666_v57  ;;  %v2681_v18 = vadd.f32 %v2673_v45, %v2665_v37  ;;  %v2604_v8 = vadd.f32 %v4669_v46, %v4679_v13  ;;  %v2650_v41 = vmul.f32 %v4679_v13, %v4679_v13  ;;  %v2587_v61 = vpop.f32.mrf.mxu3 }
 0x2e6   : > { %v4696_v48 = vadd.f32 %v2503_v19, %v2265_v32  ;;  %v2307_v45 = vadd.f32 %v4525_v60, %v4449_v10 }
 0x2e7   : > { %v2632_v0 = vsel %vm2622_vm14, %v2619_v59, 0.0  ;;  %v2697_v47 = vadd.f32 %v2689_v26, %v2681_v18  ;;  %v2666_v51 = vadd.f32 %v2658_v5, %v2650_v41 }
 0x2e8   : > { %v2633_v17 = vadd.f32 %v2632_v0, %v2631_v29  ;;  %v2543_v7 = vpop.f32.mrf.mxu2  ;;  %v2690_v29 = vmul.f32 %v4694_v1, %v4694_v1  ;;  %v2659_v9 = vmul.f32 %v4696_v48, %v4696_v48  ;;  %v3228_v19 = vpop.eup %3227 }
 0x2e9   : > { %v2709_v52 = vsel %vm2622_vm14, %v2697_v47, 0.0  ;;  %v4702_v20 = vadd.f32 %v2543_v7, %v4521_v2  ;;  %v2722_v10 = vmul.f32 256.0, %v3228_v19  ;;  %vm2726_vm15 = vweird.f32 %v3228_v19 }
 0x2ea   : > { %v2710_v38 = vadd.f32 %v2709_v52, %v2708_v16  ;;  %v2461_v24 = vpop.f32.mrf.mxu0 }
 0x2eb   : > { %v2612_v37 = vadd.f32 %v2604_v8, %v4702_v20  ;;  %v2674_v28 = vmul.f32 %v4702_v20, %v4702_v20  ;;  %v4707_v40 = vadd.f32 %v2461_v24, %v2223_v33  ;;  %v4723_v8 = vadd.f32 %v2587_v61, %v2349_v54 }
 0x2ec   : > { %v2723_v33 = vsub.f32 1.0, %v2722_v10 }
 0x2ed   : > { %v2620_v2 = vadd.f32 %v2612_v37, %v4694_v1  ;;  %v2682_v43 = vadd.f32 %v2674_v28, %v2666_v51  ;;  %v2605_v62 = vadd.f32 %v4696_v48, %v4707_v40  ;;  %v2651_v16 = vmul.f32 %v4707_v40, %v4707_v40 }
 0x2ee   : > { %v2691_v60 = vmul.f32 %v4723_v8, %v4723_v8  ;;  %v2724_v37 = vmul.f32 %v3228_v19, %v2723_v33 }
 0x2ef   : > { %v2634_v26 = vsel %vm2622_vm14, %v2620_v2, 0.0  ;;  %v2698_v5 = vadd.f32 %v2690_v29, %v2682_v43  ;;  %v2667_v14 = vadd.f32 %v2659_v9, %v2651_v16 }
 0x2f0   : > { %v2635_v59 = vadd.f32 %v2634_v26, %v2633_v17  ;;  %v2545_v18 = vpop.f32.mrf.mxu2  ;;  %v2725_v43 = vadd.f32 %v3228_v19, %v2724_v37 }
 0x2f1   : > { %v2711_v41 = vsel %vm2622_vm14, %v2698_v5, 0.0  ;;  %v4726_v32 = vadd.f32 %v2545_v18, %v2307_v45 }
 0x2f2   : > { %v2712_v0 = vadd.f32 %v2711_v41, %v2710_v38  ;;  %v2727_v45 = vsel %vm2726_vm15, %v3228_v19, %v2725_v43 }
 0x2f3   : > { %v2613_v27 = vadd.f32 %v2605_v62, %v4726_v32  ;;  %v2675_v44 = vmul.f32 %v4726_v32, %v4726_v32 }
 0x2f5   : > { %v2621_v47 = vadd.f32 %v2613_v27, %v4723_v8  ;;  %v2683_v51 = vadd.f32 %v2675_v44, %v2667_v14 }
 0x2f7   : > { %v2636_v17 = vsel %vm2622_vm14, %v2621_v47, 0.0  ;;  %v2699_v7 = vadd.f32 %v2691_v60, %v2683_v51 }
 0x2f8   : > { %v2637_v52 = vadd.f32 %v2636_v17, %v2635_v59 }
 0x2f9   : > { %v2713_v24 = vsel %vm2622_vm14, %v2699_v7, 0.0 }
 0x2fa   : > { %v2638_v38 = vrot.slane %v2637_v52, 4  ;;  %v2714_v55 = vadd.f32 %v2713_v24, %v2712_v0 }
 0x2fc   : > { %v2639_v28 = vadd.f32 %v2638_v38, %v2637_v52  ;;  %v2715_v29 = vrot.slane %v2714_v55, 4 }
 0x2fe   : > { %v2640_v9 = vrot.slane %v2639_v28, 2  ;;  %v2716_v2 = vadd.f32 %v2715_v29, %v2714_v55 }
 0x300   : > { %v2641_v62 = vadd.f32 %v2640_v9, %v2639_v28  ;;  %v2717_v16 = vrot.slane %v2716_v2, 2 }
 0x302   : > { %v2642_v54 = vrot.slane %v2641_v62, 1  ;;  %v2718_v61 = vadd.f32 %v2717_v16, %v2716_v2 }
 0x304   : > { %v2643_v26 = vadd.f32 %v2642_v54, %v2641_v62  ;;  %v2719_v5 = vrot.slane %v2718_v61, 1 }
 0x306   : > { %v2720_v14 = vadd.f32 %v2719_v5, %v2718_v61  ;;  %v4736_v59 = vmul.f32 %v2727_v45, %v2643_v26 }
 0x308   : > { %v2729_v18 = vmul.f32 %v2727_v45, %v2720_v14  ;;  %v2730_v41 = vmul.f32 %v4736_v59, %v4736_v59  ;;  %v2744_v0 = vsub.f32 %v4527_v31, %v4736_v59  ;;  %v2745_v27 = vsub.f32 %v4536_v15, %v4736_v59 }
 0x309   : > { %v2746_v44 = vsub.f32 %v4570_v6, %v4736_v59  ;;  %v2747_v19 = vsub.f32 %v4598_v11, %v4736_v59  ;;  %v2748_v10 = vsub.f32 %v4624_v42, %v4736_v59  ;;  %v2749_v60 = vsub.f32 %v4653_v21, %v4736_v59 }
 0x30a   : > { %v2731_v47 = vsub.f32 %v2729_v18, %v2730_v41  ;;  %v2750_v51 = vsub.f32 %v4679_v13, %v4736_v59  ;;  %v2751_v31 = vsub.f32 %v4707_v40, %v4736_v59  ;;  %v2773_v6 = vsub.f32 %v4639_v30, %v4736_v59 }
 0x30b   : > { %v2774_v11 = vsub.f32 %v4669_v46, %v4736_v59  ;;  %v2775_v42 = vsub.f32 %v4696_v48, %v4736_v59  ;;  %v2796_v21 = vsub.f32 %v4618_v12, %v4736_v59  ;;  %v2797_v13 = vsub.f32 %v4647_v53, %v4736_v59 }
 0x30c   : > { %v2732_v15 = vmax.f32 %v2731_v47, 0.0  ;;  %v2798_v40 = vsub.f32 %v4673_v49, %v4736_v59  ;;  %v2799_v30 = vsub.f32 %v4702_v20, %v4736_v59  ;;  %v2800_v46 = vsub.f32 %v4726_v32, %v4736_v59 }
 0x30d   : > { %v2822_v48 = vsub.f32 %v4636_v22, %v4736_v59  ;;  %v2823_v12 = vsub.f32 %v4666_v57, %v4736_v59  ;;  %v2824_v7 = vsub.f32 %v4694_v1, %v4736_v59  ;;  %v2825_v53 = vsub.f32 %v4723_v8, %v4736_v59 }
 0x30e   : > { %v2733_v17 = vadd.f32 1e-05, %v2732_v15  ;;  %v2768_v32 = vsub.f32 %v4530_v36, %v4736_v59  ;;  %v2769_v22 = vsub.f32 %v4539_v34, %v4736_v59  ;;  %v2770_v57 = vsub.f32 %v4573_v23, %v4736_v59 }
 0x30f   : > { %v2771_v8 = vsub.f32 %v4601_v4, %v4736_v59  ;;  %v2772_v38 = vsub.f32 %v4629_v25, %v4736_v59  ;;  %v2793_v55 = vsub.f32 %v4532_v58, %v4736_v59  ;;  %v2794_v36 = vsub.f32 %v4561_v35, %v4736_v59 }
 0x310   : > { %3229 = vrsqrt.f32 %v2733_v17  ;;  %vm2740_vm1 = vweird.f32 %v2733_v17  ;;  %v2795_v34 = vsub.f32 %v4592_v63, %v4736_v59  ;;  %v2818_v23 = vsub.f32 %v4548_v39, %v4736_v59 }
 0x311   : > { %v2819_v25 = vsub.f32 %v4556_v50, %v4736_v59  ;;  %v2820_v58 = vsub.f32 %v4585_v3, %v4736_v59  ;;  %v2821_v35 = vsub.f32 %v4612_v56, %v4736_v59 }
 0x316   : > { %v3230_v49 = vpop.eup %3229 }
 0x317   : > { %v2735_v33 = vmul.f32 %v3230_v49, %v2733_v17  ;;  %vm2741_vm0 = vweird.f32 %v3230_v49 }
 0x318   : > { %vm2742_vm2 = vmor %vm2740_vm1, %vm2741_vm0 }
 0x319   : > { %v2736_v52 = vmul.f32 %v3230_v49, %v2735_v33 }
 0x31b   : > { %v2737_v20 = vmul.f32 0.5, %v2736_v52 }
 0x31d   : > { %v2738_v24 = vsub.f32 1.5, %v2737_v20 }
 0x31f   : > { %v2739_v1 = vmul.f32 %v3230_v49, %v2738_v24 }
 0x321   : > { %v2743_v4 = vsel %vm2742_vm2, %v3230_v49, %v2739_v1 }
 0x322   : > { %v2752_v63 = vmul.f32 %v2744_v0, %v2743_v4  ;;  %v2753_v37 = vmul.f32 %v2745_v27, %v2743_v4  ;;  %v2754_v39 = vmul.f32 %v2746_v44, %v2743_v4  ;;  %v2755_v28 = vmul.f32 %v2747_v19, %v2743_v4 }
 0x323   : > { %v2756_v29 = vmul.f32 %v2748_v10, %v2743_v4  ;;  %v2757_v9 = vmul.f32 %v2749_v60, %v2743_v4  ;;  %v2758_v2 = vmul.f32 %v2750_v51, %v2743_v4  ;;  %v2759_v43 = vmul.f32 %v2751_v31, %v2743_v4 }
 0x324   : > { %2760 = vst.msk [vmem:[%s4802_s11] sm:$0xff] %vm2622_vm14, %v2752_v63  ;;  %v2776_v50 = vmul.f32 %v2768_v32, %v2743_v4  ;;  %v2777_v62 = vmul.f32 %v2769_v22, %v2743_v4  ;;  %v2778_v16 = vmul.f32 %v2770_v57, %v2743_v4  ;;  %v2779_v54 = vmul.f32 %v2771_v8, %v2743_v4 }
 0x325   : > { %2761 = vst.msk [vmem:[%s4802_s11 + $0x8] sm:$0xff] %vm2622_vm14, %v2753_v37  ;;  %v2780_v3 = vmul.f32 %v2772_v38, %v2743_v4  ;;  %v2781_v56 = vmul.f32 %v2773_v6, %v2743_v4  ;;  %v2782_v61 = vmul.f32 %v2774_v11, %v2743_v4  ;;  %v2783_v45 = vmul.f32 %v2775_v42, %v2743_v4 }
 0x326   : > { %2762 = vst.msk [vmem:[%s4802_s11 + $0x10] sm:$0xff] %vm2622_vm14, %v2754_v39  ;;  %v2801_v26 = vmul.f32 %v2793_v55, %v2743_v4  ;;  %v2802_v5 = vmul.f32 %v2794_v36, %v2743_v4  ;;  %v2803_v14 = vmul.f32 %v2795_v34, %v2743_v4  ;;  %v2804_v59 = vmul.f32 %v2796_v21, %v2743_v4 }
 0x327   : > { %2763 = vst.msk [vmem:[%s4802_s11 + $0x18] sm:$0xff] %vm2622_vm14, %v2755_v28  ;;  %v2805_v18 = vmul.f32 %v2797_v13, %v2743_v4  ;;  %v2806_v41 = vmul.f32 %v2798_v40, %v2743_v4  ;;  %v2807_v0 = vmul.f32 %v2799_v30, %v2743_v4  ;;  %v2808_v27 = vmul.f32 %v2800_v46, %v2743_v4 }
 0x328   : > { %2764 = vst.msk [vmem:[%s4802_s11 + $0x20] sm:$0xff] %vm2622_vm14, %v2756_v29  ;;  %v2826_v44 = vmul.f32 %v2818_v23, %v2743_v4  ;;  %v2827_v19 = vmul.f32 %v2819_v25, %v2743_v4  ;;  %v2828_v10 = vmul.f32 %v2820_v58, %v2743_v4  ;;  %v2829_v60 = vmul.f32 %v2821_v35, %v2743_v4 }
 0x329   : > { %2765 = vst.msk [vmem:[%s4802_s11 + $0x28] sm:$0xff] %vm2622_vm14, %v2757_v9  ;;  %v2830_v47 = vmul.f32 %v2822_v48, %v2743_v4  ;;  %v2831_v51 = vmul.f32 %v2823_v12, %v2743_v4  ;;  %v2832_v31 = vmul.f32 %v2824_v7, %v2743_v4  ;;  %v2833_v15 = vmul.f32 %v2825_v53, %v2743_v4 }
 0x32a   : > { %2766 = vst.msk [vmem:[%s4802_s11 + $0x30] sm:$0xff] %vm2622_vm14, %v2758_v2 }
 0x32b   : > { %2767 = vst.msk [vmem:[%s4802_s11 + $0x38] sm:$0xff] %vm2622_vm14, %v2759_v43 }
 0x32c   : > { %3158 = vst.msk [vmem:[%s4802_s11 + $0x40] sm:$0xff] %vm2622_vm14, %v2776_v50 }
 0x32d   : > { %3159 = vst.msk [vmem:[%s4802_s11 + $0x48] sm:$0xff] %vm2622_vm14, %v2777_v62 }
 0x32e   : > { %3160 = vst.msk [vmem:[%s4802_s11 + $0x50] sm:$0xff] %vm2622_vm14, %v2778_v16 }
 0x32f   : > { %3161 = vst.msk [vmem:[%s4802_s11 + $0x58] sm:$0xff] %vm2622_vm14, %v2779_v54 }
 0x330   : > { %3162 = vst.msk [vmem:[%s4802_s11 + $0x60] sm:$0xff] %vm2622_vm14, %v2780_v3 }
 0x331   : > { %3163 = vst.msk [vmem:[%s4802_s11 + $0x68] sm:$0xff] %vm2622_vm14, %v2781_v56 }
 0x332   : > { %3164 = vst.msk [vmem:[%s4802_s11 + $0x70] sm:$0xff] %vm2622_vm14, %v2782_v61 }
 0x333   : > { %3165 = vst.msk [vmem:[%s4802_s11 + $0x78] sm:$0xff] %vm2622_vm14, %v2783_v45 }
 0x334   : > { %3166 = vst.msk [vmem:[%s4802_s11 + $0x80] sm:$0xff] %vm2622_vm14, %v2801_v26 }
 0x335   : > { %3167 = vst.msk [vmem:[%s4802_s11 + $0x88] sm:$0xff] %vm2622_vm14, %v2802_v5 }
 0x336   : > { %3168 = vst.msk [vmem:[%s4802_s11 + $0x90] sm:$0xff] %vm2622_vm14, %v2803_v14 }
 0x337   : > { %3169 = vst.msk [vmem:[%s4802_s11 + $0x98] sm:$0xff] %vm2622_vm14, %v2804_v59 }
 0x338   : > { %3170 = vst.msk [vmem:[%s4802_s11 + $0xa0] sm:$0xff] %vm2622_vm14, %v2805_v18 }
 0x339   : > { %3171 = vst.msk [vmem:[%s4802_s11 + $0xa8] sm:$0xff] %vm2622_vm14, %v2806_v41 }
 0x33a   : > { %3172 = vst.msk [vmem:[%s4802_s11 + $0xb0] sm:$0xff] %vm2622_vm14, %v2807_v0 }
 0x33b   : > { %3173 = vst.msk [vmem:[%s4802_s11 + $0xb8] sm:$0xff] %vm2622_vm14, %v2808_v27 }
 0x33c   : > { %3174 = vst.msk [vmem:[%s4802_s11 + $0xc0] sm:$0xff] %vm2622_vm14, %v2826_v44 }
 0x33d   : > { %3175 = vst.msk [vmem:[%s4802_s11 + $0xc8] sm:$0xff] %vm2622_vm14, %v2827_v19 }
 0x33e   : > { %3176 = vst.msk [vmem:[%s4802_s11 + $0xd0] sm:$0xff] %vm2622_vm14, %v2828_v10 }
 0x33f   : > { %3177 = vst.msk [vmem:[%s4802_s11 + $0xd8] sm:$0xff] %vm2622_vm14, %v2829_v60 }
 0x340   : > { %3178 = vst.msk [vmem:[%s4802_s11 + $0xe0] sm:$0xff] %vm2622_vm14, %v2830_v47 }
 0x341   : > { %3179 = vst.msk [vmem:[%s4802_s11 + $0xe8] sm:$0xff] %vm2622_vm14, %v2831_v51 }
 0x342   : > { %3180 = vst.msk [vmem:[%s4802_s11 + $0xf0] sm:$0xff] %vm2622_vm14, %v2832_v31 }
 0x343   : > { %3181 = vst.msk [vmem:[%s4802_s11 + $0xf8] sm:$0xff] %vm2622_vm14, %v2833_v15 }
 0x344 PF: > { %s12_s9 = sadd.s32 1, %s3237_s9  }
 0x345   : > { %p9_p4 = scmp.ge.s32.totalorder %s12_s9, 4  }
 0x347   :  { %11 = sbr.rel (!%p9_p4) target bundleno = 1 (0x1), region = 98 }

</bundles_post_ra>
